<compile_context>
chip_gen: v7x
topology: tpu7x:2x2x1
jax: 0.10.0
libtpu: 0.0.40
codegen_flags: <defaults>
</compile_context>

<pallas_src>
import jax
import jax.numpy as jnp
from jax.experimental import pallas as pl


# ----------------------------- fused Pallas kernel ----------------------------

def make_fused_kernel(num_layers, eps_per_layer):
    """num_layers x GINConv -> (pool, per-layer lin1-slab accumulate) -> ReLU -> lin2 -> log_softmax."""

    def kernel(a_ref, x_ref, w1s_ref, b1s_ref, w2s_ref, b2s_ref,
               pool_ref, invc_ref, hw1s_ref, hb1_ref, hw2_ref, hb2_ref, out_ref):
        a = a_ref[...]                      # (N, N)  bf16 adjacency (no self-loop folded)
        pool = pool_ref[...]                # (G, N)  bf16, exact 0/1 add-pool matrix
        invc = invc_ref[...]                # (G, 1)  f32, 1 / (#subgraphs per graph)
        num_graphs = pool_ref.shape[0]
        hp = hb1_ref.shape[1]

        h = x_ref[...]                      # (N, Hp) bf16 node features (lane-padded)
        # head accumulator: sum over layers of (pooled h_l) @ lin1_slab_l  (replaces concat)
        t = jnp.zeros((num_graphs, hp), jnp.float32)

        for l in range(num_layers):
            # GINConv aggregation: A @ h + (1 + eps_l) * h   (per-layer eps, not folded into A)
            agg = jnp.dot(a, h, preferred_element_type=jnp.float32)
            agg = agg + (1.0 + eps_per_layer[l]) * h.astype(jnp.float32)
            # Linear(+folded eval-BN) -> Dropout(eval=id) -> ReLU
            z = jnp.dot(agg.astype(jnp.bfloat16), w1s_ref[l],
                        preferred_element_type=jnp.float32) + b1s_ref[l]
            z = jnp.maximum(z, 0.0)
            # Linear(+folded eval-BN) -> Dropout(eval=id) -> ReLU
            z = jnp.dot(z.astype(jnp.bfloat16), w2s_ref[l],
                        preferred_element_type=jnp.float32) + b2s_ref[l]
            # single bf16 cast per layer; next layer / pooling consume bf16 directly
            h = jnp.maximum(z, 0.0).astype(jnp.bfloat16)

            # global_add_pool (exact 0/1 matmul) then mean over subgraphs in f32,
            # then this layer's slab of lin1 (+folded BN) accumulated into t.
            g = jnp.dot(pool, h, preferred_element_type=jnp.float32) * invc
            t = t + jnp.dot(g.astype(jnp.bfloat16), hw1s_ref[l],
                            preferred_element_type=jnp.float32)

        # lin1 bias (+folded BN, applied since num_graphs > 1) -> Dropout(eval=id) -> ReLU
        t = jnp.maximum(t + hb1_ref[...], 0.0)

        # lin2 -> log_softmax (pad classes carry bias -1e30 -> exp underflows to 0)
        logits = jnp.dot(t.astype(jnp.bfloat16), hw2_ref[...],
                         preferred_element_type=jnp.float32) + hb2_ref[...]
        m = jnp.max(logits, axis=-1, keepdims=True)
        zc = logits - m
        lse = jnp.log(jnp.sum(jnp.exp(zc), axis=-1, keepdims=True))
        out_ref[...] = zc - lse

    return kernel


# ----------------------------- wrapper ----------------------------------------

def nested_gin_forward(a_hat, x_pad, w1s, b1s, w2s, b2s, pool, inv_counts,
                       hw1s, hb1, hw2, hb2, eps_per_layer, num_classes):
    """Single pallas_call running the whole NestedGIN forward pass (grid-less, all VMEM)."""
    flat = [a_hat, x_pad, w1s, b1s, w2s, b2s, pool, inv_counts, hw1s, hb1, hw2, hb2]

    num_layers = int(w1s.shape[0])
    n = int(a_hat.shape[0])
    hp = int(hb1.shape[1])
    g = int(pool.shape[0])
    cp = int(hw2.shape[1])

    # Everything fits VMEM at these sizes -> full-array blocks, no grid.
    in_specs = [pl.BlockSpec(arr.shape, lambda *_, nd=arr.ndim: (0,) * nd)
                for arr in flat]
    out_specs = pl.BlockSpec((g, cp), lambda *_: (0, 0))

    flops = num_layers * (2 * n * n * hp          # A @ h
                          + 2 * 2 * n * hp * hp   # two MLP linears
                          + 2 * g * n * hp        # pooling matmul
                          + 2 * g * hp * hp       # lin1 slab
                          ) + 2 * g * hp * cp     # lin2
    bytes_accessed = sum(int(a.size) * a.dtype.itemsize for a in flat) + g * cp * 4
    cost = pl.CostEstimate(flops=int(flops),
                           transcendentals=int(g * cp + g),
                           bytes_accessed=int(bytes_accessed))

    out_pad = pl.pallas_call(
        make_fused_kernel(num_layers, eps_per_layer),
        out_shape=jax.ShapeDtypeStruct((g, cp), jnp.float32),
        in_specs=in_specs,
        out_specs=out_specs,
        cost_estimate=cost,
    )(*flat)

    # drop padded classes (kernel-side store stays lane-dense / unmasked)
    return out_pad[:, :num_classes]


# ----------------------------- parameter construction -------------------------

def pad_to(a, shape):
    out = jnp.zeros(shape, a.dtype)
    return out.at[tuple(slice(0, s) for s in a.shape)].set(a)


def make_bn_scale_shift(key, dim):
    """Eval-mode BatchNorm1d -> affine (scale, shift)."""
    k1, k2, k3, k4 = jax.random.split(key, 4)
    gamma = 1.0 + 0.1 * jax.random.normal(k1, (dim,), jnp.float32)
    beta = 0.1 * jax.random.normal(k2, (dim,), jnp.float32)
    run_mean = 0.05 * jax.random.normal(k3, (dim,), jnp.float32)
    run_var = 1.0 + 0.1 * jnp.abs(jax.random.normal(k4, (dim,), jnp.float32))
    scale = gamma / jnp.sqrt(run_var + 1e-5)
    shift = beta - run_mean * scale
    return scale, shift


def make_linear(key, d_in, d_out):
    k1, k2 = jax.random.split(key)
    w_t = 0.1 * jax.random.normal(k1, (d_in, d_out), jnp.float32)   # stored as W^T
    b = 0.1 * jax.random.normal(k2, (1, d_out), jnp.float32)
    return w_t, b


def fold_bn(w_t, b, scale, shift):
    """BN_eval(x @ W^T + b) == x @ (W^T * scale) + (b*scale + shift)   (f32)."""
    return w_t * scale[None, :], b * scale[None, :] + shift[None, :]


def make_gin_layer_params(key, d_in, hidden, hp):
    ks = jax.random.split(key, 4)
    w1t, b1 = make_linear(ks[0], d_in, hidden)
    s1, t1 = make_bn_scale_shift(ks[1], hidden)
    w2t, b2 = make_linear(ks[2], hidden, hidden)
    s2, t2 = make_bn_scale_shift(ks[3], hidden)
    w1f, b1f = fold_bn(w1t, b1, s1, t1)
    w2f, b2f = fold_bn(w2t, b2, s2, t2)
    return (pad_to(w1f, (hp, hp)).astype(jnp.bfloat16), pad_to(b1f, (1, hp)),
            pad_to(w2f, (hp, hp)).astype(jnp.bfloat16), pad_to(b2f, (1, hp)))


# ----------------------------- main --------------------------------------------

if __name__ == "__main__":
    key = jax.random.PRNGKey(0)

    num_features = 8
    hidden = 32
    num_layers = 3
    num_classes = 4
    nodes_per_sub = 4
    subs_per_graph = 4
    num_graphs = 16                                  # batched so N = 256 (MXU row tile)
    num_subs = num_graphs * subs_per_graph           # 64
    num_nodes = num_subs * nodes_per_sub             # 256

    LANE = 128                                       # lane-pad target
    feat_pad = LANE
    hid_pad = LANE
    cls_pad = LANE

    k_x, k_p = jax.random.split(key)

    # node features: real dims (N, 8), lane-padded to (N, 128), bf16 into the kernel
    x_real = jax.random.normal(k_x, (num_nodes, num_features), jnp.float32)
    x_pad = pad_to(x_real, (num_nodes, feat_pad)).astype(jnp.bfloat16)

    # edge_index: directed cycle (both directions) inside each subgraph
    src_list, dst_list = [], []
    for s in range(num_subs):
        base = s * nodes_per_sub
        for j in range(nodes_per_sub):
            a, b = base + j, base + (j + 1) % nodes_per_sub
            src_list += [a, b]
            dst_list += [b, a]
    src = jnp.array(src_list, jnp.int32)
    dst = jnp.array(dst_list, jnp.int32)

    # dense adjacency A[dst, src]; the (1 + eps_l) * h self term is added per layer
    # in-kernel so per-layer eps values stay independent (train_eps=True init: eps=0).
    adj = jnp.zeros((num_nodes, num_nodes), jnp.float32).at[dst, src].add(1.0)
    a_hat = adj.astype(jnp.bfloat16)                 # entries exactly 0/1 -> bf16-exact
    eps_per_layer = tuple(0.0 for _ in range(num_layers))

    # pooling: exact 0/1 node->graph add-pool matrix (bf16-exact) + f32 mean scale
    node_to_sub = jnp.arange(num_nodes) // nodes_per_sub
    sub_to_graph = jnp.arange(num_subs) // subs_per_graph
    node_to_graph = sub_to_graph[node_to_sub]
    pool = (node_to_graph[None, :] == jnp.arange(num_graphs)[:, None]) \
        .astype(jnp.float32).astype(jnp.bfloat16)                       # (G, N)
    subs_per_graph_counts = jnp.sum(
        (sub_to_graph[None, :] == jnp.arange(num_graphs)[:, None]).astype(jnp.float32),
        axis=1, keepdims=True)
    inv_counts = (1.0 / subs_per_graph_counts).astype(jnp.float32)      # (G, 1)

    # GIN layer parameters (eval-BN folded, padded to 128 lanes, stacked per layer)
    pk = jax.random.split(k_p, num_layers + 3)
    layer_params = [make_gin_layer_params(pk[0], num_features, hidden, hid_pad)]
    for i in range(num_layers - 1):
        layer_params.append(make_gin_layer_params(pk[1 + i], hidden, hidden, hid_pad))
    w1s = jnp.stack([lp[0] for lp in layer_params])     # (L, 128, 128) bf16
    b1s = jnp.stack([lp[1] for lp in layer_params])     # (L, 1, 128)   f32
    w2s = jnp.stack([lp[2] for lp in layer_params])     # (L, 128, 128) bf16
    b2s = jnp.stack([lp[3] for lp in layer_params])     # (L, 1, 128)   f32

    # head: lin1 (+folded eval-BN) split into per-layer slabs (replaces the concat), lin2
    lin1_wt, lin1_b = make_linear(pk[num_layers], num_layers * hidden, hidden)
    bn_s, bn_t = make_bn_scale_shift(pk[num_layers + 1], hidden)
    hw1_f, hb1_f = fold_bn(lin1_wt, lin1_b, bn_s, bn_t)                 # (L*H, H), (1, H)
    hw1s = jnp.stack([pad_to(hw1_f[l * hidden:(l + 1) * hidden, :],
                             (hid_pad, hid_pad)).astype(jnp.bfloat16)
                      for l in range(num_layers)])                      # (L, 128, 128)
    hb1 = pad_to(hb1_f, (1, hid_pad))                                   # (1, 128) f32

    lin2_wt, lin2_b = make_linear(pk[num_layers + 2], hidden, num_classes)
    hw2 = pad_to(lin2_wt, (hid_pad, cls_pad)).astype(jnp.bfloat16)      # (128, 128)
    hb2 = jnp.full((1, cls_pad), -1e30, jnp.float32).at[:, :num_classes].set(lin2_b)

    # single fused forward pass
    out = nested_gin_forward(a_hat, x_pad, w1s, b1s, w2s, b2s, pool, inv_counts,
                             hw1s, hb1, hw2, hb2, eps_per_layer, num_classes)
    out = jax.block_until_ready(out)

    assert out.shape == (num_graphs, num_classes)
    assert bool(jnp.all(jnp.isfinite(out)))
    print("KERNEL_OK")
</pallas_src>

<mosaic_0001>
module attributes {stable_mosaic.version = 11 : i64} {
  func.func @kernel(%arg0: memref<256x256xbf16, #tpu.memory_space<vmem>>, %arg1: memref<256x128xbf16, #tpu.memory_space<vmem>>, %arg2: memref<3x128x128xbf16, #tpu.memory_space<vmem>>, %arg3: memref<3x1x128xf32, #tpu.memory_space<vmem>>, %arg4: memref<3x128x128xbf16, #tpu.memory_space<vmem>>, %arg5: memref<3x1x128xf32, #tpu.memory_space<vmem>>, %arg6: memref<16x256xbf16, #tpu.memory_space<vmem>>, %arg7: memref<16x1xf32, #tpu.memory_space<vmem>>, %arg8: memref<3x128x128xbf16, #tpu.memory_space<vmem>>, %arg9: memref<1x128xf32, #tpu.memory_space<vmem>>, %arg10: memref<128x128xbf16, #tpu.memory_space<vmem>>, %arg11: memref<1x128xf32, #tpu.memory_space<vmem>>, %arg12: memref<16x128xf32, #tpu.memory_space<vmem>>) attributes {dimension_semantics = [], scalar_prefetch = 0 : i64, scratch_operands = 0 : i64, tpu.core_type = #tpu.core_type<tc>} {
    %c0 = arith.constant 0 : index
    %c0_0 = arith.constant 0 : index
    %0 = vector.load %arg0[%c0, %c0_0] : memref<256x256xbf16, #tpu.memory_space<vmem>>, vector<256x256xbf16>
    %c0_1 = arith.constant 0 : index
    %c0_2 = arith.constant 0 : index
    %1 = vector.load %arg6[%c0_1, %c0_2] : memref<16x256xbf16, #tpu.memory_space<vmem>>, vector<16x256xbf16>
    %c0_3 = arith.constant 0 : index
    %c0_4 = arith.constant 0 : index
    %2 = vector.load %arg7[%c0_3, %c0_4] : memref<16x1xf32, #tpu.memory_space<vmem>>, vector<16x1xf32>
    %c0_5 = arith.constant 0 : index
    %c0_6 = arith.constant 0 : index
    %3 = vector.load %arg1[%c0_5, %c0_6] : memref<256x128xbf16, #tpu.memory_space<vmem>>, vector<256x128xbf16>
    %cst = arith.constant 0.000000e+00 : f32
    %4 = vector.broadcast %cst : f32 to vector<16x128xf32>
    %cst_7 = arith.constant dense<0.000000e+00> : vector<256x128xf32>
    %5 = tpu.matmul %0, %3, %cst_7 {dimension_numbers = #tpu.dot_dimension_numbers<[1], [0], [0], [1], [0, 0, 1, 1], [], []>} : vector<256x256xbf16>, vector<256x128xbf16>, vector<256x128xf32> -> vector<256x128xf32>
    %6 = arith.extf %3 : vector<256x128xbf16> to vector<256x128xf32>
    %cst_8 = arith.constant 1.000000e+00 : f32
    %7 = vector.broadcast %cst_8 : f32 to vector<256x128xf32>
    %8 = arith.mulf %7, %6 : vector<256x128xf32>
    %9 = arith.addf %5, %8 : vector<256x128xf32>
    %10 = arith.truncf %9 : vector<256x128xf32> to vector<256x128xbf16>
    %c0_9 = arith.constant 0 : index
    %c0_10 = arith.constant 0 : index
    %c0_11 = arith.constant 0 : index
    %11 = vector.load %arg2[%c0_9, %c0_10, %c0_11] : memref<3x128x128xbf16, #tpu.memory_space<vmem>>, vector<1x128x128xbf16>
    %12 = vector.shape_cast %11 : vector<1x128x128xbf16> to vector<128x128xbf16>
    %cst_12 = arith.constant dense<0.000000e+00> : vector<256x128xf32>
    %13 = tpu.matmul %10, %12, %cst_12 {dimension_numbers = #tpu.dot_dimension_numbers<[1], [0], [0], [1], [0, 0, 1, 1], [], []>} : vector<256x128xbf16>, vector<128x128xbf16>, vector<256x128xf32> -> vector<256x128xf32>
    %c0_13 = arith.constant 0 : index
    %c0_14 = arith.constant 0 : index
    %c0_15 = arith.constant 0 : index
    %14 = vector.load %arg3[%c0_13, %c0_14, %c0_15] : memref<3x1x128xf32, #tpu.memory_space<vmem>>, vector<1x1x128xf32>
    %15 = vector.shape_cast %14 : vector<1x1x128xf32> to vector<1x128xf32>
    %16 = vector.broadcast %15 : vector<1x128xf32> to vector<256x128xf32>
    %17 = arith.addf %13, %16 : vector<256x128xf32>
    %cst_16 = arith.constant 0.000000e+00 : f32
    %18 = vector.broadcast %cst_16 : f32 to vector<256x128xf32>
    %19 = arith.maximumf %17, %18 : vector<256x128xf32>
    %20 = arith.truncf %19 : vector<256x128xf32> to vector<256x128xbf16>
    %c0_17 = arith.constant 0 : index
    %c0_18 = arith.constant 0 : index
    %c0_19 = arith.constant 0 : index
    %21 = vector.load %arg4[%c0_17, %c0_18, %c0_19] : memref<3x128x128xbf16, #tpu.memory_space<vmem>>, vector<1x128x128xbf16>
    %22 = vector.shape_cast %21 : vector<1x128x128xbf16> to vector<128x128xbf16>
    %cst_20 = arith.constant dense<0.000000e+00> : vector<256x128xf32>
    %23 = tpu.matmul %20, %22, %cst_20 {dimension_numbers = #tpu.dot_dimension_numbers<[1], [0], [0], [1], [0, 0, 1, 1], [], []>} : vector<256x128xbf16>, vector<128x128xbf16>, vector<256x128xf32> -> vector<256x128xf32>
    %c0_21 = arith.constant 0 : index
    %c0_22 = arith.constant 0 : index
    %c0_23 = arith.constant 0 : index
    %24 = vector.load %arg5[%c0_21, %c0_22, %c0_23] : memref<3x1x128xf32, #tpu.memory_space<vmem>>, vector<1x1x128xf32>
    %25 = vector.shape_cast %24 : vector<1x1x128xf32> to vector<1x128xf32>
    %26 = vector.broadcast %25 : vector<1x128xf32> to vector<256x128xf32>
    %27 = arith.addf %23, %26 : vector<256x128xf32>
    %cst_24 = arith.constant 0.000000e+00 : f32
    %28 = vector.broadcast %cst_24 : f32 to vector<256x128xf32>
    %29 = arith.maximumf %27, %28 : vector<256x128xf32>
    %30 = arith.truncf %29 : vector<256x128xf32> to vector<256x128xbf16>
    %cst_25 = arith.constant dense<0.000000e+00> : vector<16x128xf32>
    %31 = tpu.matmul %1, %30, %cst_25 {dimension_numbers = #tpu.dot_dimension_numbers<[1], [0], [0], [1], [0, 0, 1, 1], [], []>} : vector<16x256xbf16>, vector<256x128xbf16>, vector<16x128xf32> -> vector<16x128xf32>
    %32 = vector.broadcast %2 : vector<16x1xf32> to vector<16x128xf32>
    %33 = arith.mulf %31, %32 : vector<16x128xf32>
    %34 = arith.truncf %33 : vector<16x128xf32> to vector<16x128xbf16>
    %c0_26 = arith.constant 0 : index
    %c0_27 = arith.constant 0 : index
    %c0_28 = arith.constant 0 : index
    %35 = vector.load %arg8[%c0_26, %c0_27, %c0_28] : memref<3x128x128xbf16, #tpu.memory_space<vmem>>, vector<1x128x128xbf16>
    %36 = vector.shape_cast %35 : vector<1x128x128xbf16> to vector<128x128xbf16>
    %cst_29 = arith.constant dense<0.000000e+00> : vector<16x128xf32>
    %37 = tpu.matmul %34, %36, %cst_29 {dimension_numbers = #tpu.dot_dimension_numbers<[1], [0], [0], [1], [0, 0, 1, 1], [], []>} : vector<16x128xbf16>, vector<128x128xbf16>, vector<16x128xf32> -> vector<16x128xf32>
    %38 = arith.addf %4, %37 : vector<16x128xf32>
    %cst_30 = arith.constant dense<0.000000e+00> : vector<256x128xf32>
    %39 = tpu.matmul %0, %30, %cst_30 {dimension_numbers = #tpu.dot_dimension_numbers<[1], [0], [0], [1], [0, 0, 1, 1], [], []>} : vector<256x256xbf16>, vector<256x128xbf16>, vector<256x128xf32> -> vector<256x128xf32>
    %40 = arith.extf %30 : vector<256x128xbf16> to vector<256x128xf32>
    %cst_31 = arith.constant 1.000000e+00 : f32
    %41 = vector.broadcast %cst_31 : f32 to vector<256x128xf32>
    %42 = arith.mulf %41, %40 : vector<256x128xf32>
    %43 = arith.addf %39, %42 : vector<256x128xf32>
    %44 = arith.truncf %43 : vector<256x128xf32> to vector<256x128xbf16>
    %c1 = arith.constant 1 : index
    %c0_32 = arith.constant 0 : index
    %c0_33 = arith.constant 0 : index
    %45 = vector.load %arg2[%c1, %c0_32, %c0_33] : memref<3x128x128xbf16, #tpu.memory_space<vmem>>, vector<1x128x128xbf16>
    %46 = vector.shape_cast %45 : vector<1x128x128xbf16> to vector<128x128xbf16>
    %cst_34 = arith.constant dense<0.000000e+00> : vector<256x128xf32>
    %47 = tpu.matmul %44, %46, %cst_34 {dimension_numbers = #tpu.dot_dimension_numbers<[1], [0], [0], [1], [0, 0, 1, 1], [], []>} : vector<256x128xbf16>, vector<128x128xbf16>, vector<256x128xf32> -> vector<256x128xf32>
    %c1_35 = arith.constant 1 : index
    %c0_36 = arith.constant 0 : index
    %c0_37 = arith.constant 0 : index
    %48 = vector.load %arg3[%c1_35, %c0_36, %c0_37] : memref<3x1x128xf32, #tpu.memory_space<vmem>>, vector<1x1x128xf32>
    %49 = vector.shape_cast %48 : vector<1x1x128xf32> to vector<1x128xf32>
    %50 = vector.broadcast %49 : vector<1x128xf32> to vector<256x128xf32>
    %51 = arith.addf %47, %50 : vector<256x128xf32>
    %cst_38 = arith.constant 0.000000e+00 : f32
    %52 = vector.broadcast %cst_38 : f32 to vector<256x128xf32>
    %53 = arith.maximumf %51, %52 : vector<256x128xf32>
    %54 = arith.truncf %53 : vector<256x128xf32> to vector<256x128xbf16>
    %c1_39 = arith.constant 1 : index
    %c0_40 = arith.constant 0 : index
    %c0_41 = arith.constant 0 : index
    %55 = vector.load %arg4[%c1_39, %c0_40, %c0_41] : memref<3x128x128xbf16, #tpu.memory_space<vmem>>, vector<1x128x128xbf16>
    %56 = vector.shape_cast %55 : vector<1x128x128xbf16> to vector<128x128xbf16>
    %cst_42 = arith.constant dense<0.000000e+00> : vector<256x128xf32>
    %57 = tpu.matmul %54, %56, %cst_42 {dimension_numbers = #tpu.dot_dimension_numbers<[1], [0], [0], [1], [0, 0, 1, 1], [], []>} : vector<256x128xbf16>, vector<128x128xbf16>, vector<256x128xf32> -> vector<256x128xf32>
    %c1_43 = arith.constant 1 : index
    %c0_44 = arith.constant 0 : index
    %c0_45 = arith.constant 0 : index
    %58 = vector.load %arg5[%c1_43, %c0_44, %c0_45] : memref<3x1x128xf32, #tpu.memory_space<vmem>>, vector<1x1x128xf32>
    %59 = vector.shape_cast %58 : vector<1x1x128xf32> to vector<1x128xf32>
    %60 = vector.broadcast %59 : vector<1x128xf32> to vector<256x128xf32>
    %61 = arith.addf %57, %60 : vector<256x128xf32>
    %cst_46 = arith.constant 0.000000e+00 : f32
    %62 = vector.broadcast %cst_46 : f32 to vector<256x128xf32>
    %63 = arith.maximumf %61, %62 : vector<256x128xf32>
    %64 = arith.truncf %63 : vector<256x128xf32> to vector<256x128xbf16>
    %cst_47 = arith.constant dense<0.000000e+00> : vector<16x128xf32>
    %65 = tpu.matmul %1, %64, %cst_47 {dimension_numbers = #tpu.dot_dimension_numbers<[1], [0], [0], [1], [0, 0, 1, 1], [], []>} : vector<16x256xbf16>, vector<256x128xbf16>, vector<16x128xf32> -> vector<16x128xf32>
    %66 = vector.broadcast %2 : vector<16x1xf32> to vector<16x128xf32>
    %67 = arith.mulf %65, %66 : vector<16x128xf32>
    %68 = arith.truncf %67 : vector<16x128xf32> to vector<16x128xbf16>
    %c1_48 = arith.constant 1 : index
    %c0_49 = arith.constant 0 : index
    %c0_50 = arith.constant 0 : index
    %69 = vector.load %arg8[%c1_48, %c0_49, %c0_50] : memref<3x128x128xbf16, #tpu.memory_space<vmem>>, vector<1x128x128xbf16>
    %70 = vector.shape_cast %69 : vector<1x128x128xbf16> to vector<128x128xbf16>
    %cst_51 = arith.constant dense<0.000000e+00> : vector<16x128xf32>
    %71 = tpu.matmul %68, %70, %cst_51 {dimension_numbers = #tpu.dot_dimension_numbers<[1], [0], [0], [1], [0, 0, 1, 1], [], []>} : vector<16x128xbf16>, vector<128x128xbf16>, vector<16x128xf32> -> vector<16x128xf32>
    %72 = arith.addf %38, %71 : vector<16x128xf32>
    %cst_52 = arith.constant dense<0.000000e+00> : vector<256x128xf32>
    %73 = tpu.matmul %0, %64, %cst_52 {dimension_numbers = #tpu.dot_dimension_numbers<[1], [0], [0], [1], [0, 0, 1, 1], [], []>} : vector<256x256xbf16>, vector<256x128xbf16>, vector<256x128xf32> -> vector<256x128xf32>
    %74 = arith.extf %64 : vector<256x128xbf16> to vector<256x128xf32>
    %cst_53 = arith.constant 1.000000e+00 : f32
    %75 = vector.broadcast %cst_53 : f32 to vector<256x128xf32>
    %76 = arith.mulf %75, %74 : vector<256x128xf32>
    %77 = arith.addf %73, %76 : vector<256x128xf32>
    %78 = arith.truncf %77 : vector<256x128xf32> to vector<256x128xbf16>
    %c2 = arith.constant 2 : index
    %c0_54 = arith.constant 0 : index
    %c0_55 = arith.constant 0 : index
    %79 = vector.load %arg2[%c2, %c0_54, %c0_55] : memref<3x128x128xbf16, #tpu.memory_space<vmem>>, vector<1x128x128xbf16>
    %80 = vector.shape_cast %79 : vector<1x128x128xbf16> to vector<128x128xbf16>
    %cst_56 = arith.constant dense<0.000000e+00> : vector<256x128xf32>
    %81 = tpu.matmul %78, %80, %cst_56 {dimension_numbers = #tpu.dot_dimension_numbers<[1], [0], [0], [1], [0, 0, 1, 1], [], []>} : vector<256x128xbf16>, vector<128x128xbf16>, vector<256x128xf32> -> vector<256x128xf32>
    %c2_57 = arith.constant 2 : index
    %c0_58 = arith.constant 0 : index
    %c0_59 = arith.constant 0 : index
    %82 = vector.load %arg3[%c2_57, %c0_58, %c0_59] : memref<3x1x128xf32, #tpu.memory_space<vmem>>, vector<1x1x128xf32>
    %83 = vector.shape_cast %82 : vector<1x1x128xf32> to vector<1x128xf32>
    %84 = vector.broadcast %83 : vector<1x128xf32> to vector<256x128xf32>
    %85 = arith.addf %81, %84 : vector<256x128xf32>
    %cst_60 = arith.constant 0.000000e+00 : f32
    %86 = vector.broadcast %cst_60 : f32 to vector<256x128xf32>
    %87 = arith.maximumf %85, %86 : vector<256x128xf32>
    %88 = arith.truncf %87 : vector<256x128xf32> to vector<256x128xbf16>
    %c2_61 = arith.constant 2 : index
    %c0_62 = arith.constant 0 : index
    %c0_63 = arith.constant 0 : index
    %89 = vector.load %arg4[%c2_61, %c0_62, %c0_63] : memref<3x128x128xbf16, #tpu.memory_space<vmem>>, vector<1x128x128xbf16>
    %90 = vector.shape_cast %89 : vector<1x128x128xbf16> to vector<128x128xbf16>
    %cst_64 = arith.constant dense<0.000000e+00> : vector<256x128xf32>
    %91 = tpu.matmul %88, %90, %cst_64 {dimension_numbers = #tpu.dot_dimension_numbers<[1], [0], [0], [1], [0, 0, 1, 1], [], []>} : vector<256x128xbf16>, vector<128x128xbf16>, vector<256x128xf32> -> vector<256x128xf32>
    %c2_65 = arith.constant 2 : index
    %c0_66 = arith.constant 0 : index
    %c0_67 = arith.constant 0 : index
    %92 = vector.load %arg5[%c2_65, %c0_66, %c0_67] : memref<3x1x128xf32, #tpu.memory_space<vmem>>, vector<1x1x128xf32>
    %93 = vector.shape_cast %92 : vector<1x1x128xf32> to vector<1x128xf32>
    %94 = vector.broadcast %93 : vector<1x128xf32> to vector<256x128xf32>
    %95 = arith.addf %91, %94 : vector<256x128xf32>
    %cst_68 = arith.constant 0.000000e+00 : f32
    %96 = vector.broadcast %cst_68 : f32 to vector<256x128xf32>
    %97 = arith.maximumf %95, %96 : vector<256x128xf32>
    %98 = arith.truncf %97 : vector<256x128xf32> to vector<256x128xbf16>
    %cst_69 = arith.constant dense<0.000000e+00> : vector<16x128xf32>
    %99 = tpu.matmul %1, %98, %cst_69 {dimension_numbers = #tpu.dot_dimension_numbers<[1], [0], [0], [1], [0, 0, 1, 1], [], []>} : vector<16x256xbf16>, vector<256x128xbf16>, vector<16x128xf32> -> vector<16x128xf32>
    %100 = vector.broadcast %2 : vector<16x1xf32> to vector<16x128xf32>
    %101 = arith.mulf %99, %100 : vector<16x128xf32>
    %102 = arith.truncf %101 : vector<16x128xf32> to vector<16x128xbf16>
    %c2_70 = arith.constant 2 : index
    %c0_71 = arith.constant 0 : index
    %c0_72 = arith.constant 0 : index
    %103 = vector.load %arg8[%c2_70, %c0_71, %c0_72] : memref<3x128x128xbf16, #tpu.memory_space<vmem>>, vector<1x128x128xbf16>
    %104 = vector.shape_cast %103 : vector<1x128x128xbf16> to vector<128x128xbf16>
    %cst_73 = arith.constant dense<0.000000e+00> : vector<16x128xf32>
    %105 = tpu.matmul %102, %104, %cst_73 {dimension_numbers = #tpu.dot_dimension_numbers<[1], [0], [0], [1], [0, 0, 1, 1], [], []>} : vector<16x128xbf16>, vector<128x128xbf16>, vector<16x128xf32> -> vector<16x128xf32>
    %106 = arith.addf %72, %105 : vector<16x128xf32>
    %c0_74 = arith.constant 0 : index
    %c0_75 = arith.constant 0 : index
    %107 = vector.load %arg9[%c0_74, %c0_75] : memref<1x128xf32, #tpu.memory_space<vmem>>, vector<1x128xf32>
    %108 = vector.broadcast %107 : vector<1x128xf32> to vector<16x128xf32>
    %109 = arith.addf %106, %108 : vector<16x128xf32>
    %cst_76 = arith.constant 0.000000e+00 : f32
    %110 = vector.broadcast %cst_76 : f32 to vector<16x128xf32>
    %111 = arith.maximumf %109, %110 : vector<16x128xf32>
    %112 = arith.truncf %111 : vector<16x128xf32> to vector<16x128xbf16>
    %c0_77 = arith.constant 0 : index
    %c0_78 = arith.constant 0 : index
    %113 = vector.load %arg10[%c0_77, %c0_78] : memref<128x128xbf16, #tpu.memory_space<vmem>>, vector<128x128xbf16>
    %cst_79 = arith.constant dense<0.000000e+00> : vector<16x128xf32>
    %114 = tpu.matmul %112, %113, %cst_79 {dimension_numbers = #tpu.dot_dimension_numbers<[1], [0], [0], [1], [0, 0, 1, 1], [], []>} : vector<16x128xbf16>, vector<128x128xbf16>, vector<16x128xf32> -> vector<16x128xf32>
    %c0_80 = arith.constant 0 : index
    %c0_81 = arith.constant 0 : index
    %115 = vector.load %arg11[%c0_80, %c0_81] : memref<1x128xf32, #tpu.memory_space<vmem>>, vector<1x128xf32>
    %116 = vector.broadcast %115 : vector<1x128xf32> to vector<16x128xf32>
    %117 = arith.addf %114, %116 : vector<16x128xf32>
    %cst_82 = arith.constant dense<0xFF800000> : vector<16xf32>
    %118 = vector.multi_reduction <maximumf>, %117, %cst_82 [1] : vector<16x128xf32> to vector<16xf32>
    %119 = vector.shape_cast %118 : vector<16xf32> to vector<16x1xf32>
    %120 = vector.broadcast %119 : vector<16x1xf32> to vector<16x128xf32>
    %121 = arith.subf %117, %120 : vector<16x128xf32>
    %122 = math.exp %121 : vector<16x128xf32>
    %cst_83 = arith.constant dense<0.000000e+00> : vector<16xf32>
    %123 = vector.multi_reduction <add>, %122, %cst_83 [1] : vector<16x128xf32> to vector<16xf32>
    %124 = vector.shape_cast %123 : vector<16xf32> to vector<16x1xf32>
    %125 = math.log %124 : vector<16x1xf32>
    %126 = vector.broadcast %125 : vector<16x1xf32> to vector<16x128xf32>
    %127 = arith.subf %121, %126 : vector<16x128xf32>
    %c0_84 = arith.constant 0 : index
    %c0_85 = arith.constant 0 : index
    %128 = vector.load %arg12[%c0_84, %c0_85] : memref<16x128xf32, #tpu.memory_space<vmem>>, vector<16x128xf32>
    tpu.vector_store %arg12[%c0_84, %c0_85], %127 {strides = array<i32>} : memref<16x128xf32, #tpu.memory_space<vmem>>, vector<16x128xf32>,
    return
  }
}

</mosaic_0001>

<bundles_post_ra>
// kernel: tpu_custom_call.1
= control target key start
LH: loop header
LB: loop body
LE: loop exit
PB: predicated region body
PF: predicated region fallthrough
CT: control target
= control target key end

     0   :  { %17 = vsyncpa [#allocation3], 0  ;;  %s5720_s0 = inlined_call_operand.hbm [shape: bf16[256,256], index: 0, kind: input, shape index: {}]   ;;  %s5721_s1 = inlined_call_operand.hbm [shape: bf16[256,128], index: 1, kind: input, shape index: {}]   ;;  %s5722_s2 = inlined_call_operand.hbm [shape: bf16[3,128,128], index: 2, kind: input, shape index: {}]   ;;  %s5723_s3 = inlined_call_operand.vmem [shape: f32[3,1,128], index: 3, kind: input, shape index: {}]   ;;  %s5724_s4 = inlined_call_operand.hbm [shape: bf16[3,128,128], index: 4, kind: input, shape index: {}]   ;;  %s5725_s5 = inlined_call_operand.vmem [shape: f32[3,1,128], index: 5, kind: input, shape index: {}]   ;;  %s5726_s6 = inlined_call_operand.vmem [shape: bf16[16,256], index: 6, kind: input, shape index: {}]   ;;  %s5727_s7 = inlined_call_operand.vmem [shape: f32[16,1], index: 7, kind: input, shape index: {}]   ;;  %s5728_s8 = inlined_call_operand.hbm [shape: bf16[3,128,128], index: 8, kind: input, shape index: {}]   ;;  %s5729_s9 = inlined_call_operand.vmem [shape: f32[1,128], index: 9, kind: input, shape index: {}]   ;;  %s5730_s10 = inlined_call_operand.hbm [shape: bf16[128,128], index: 10, kind: input, shape index: {}]   ;;  %s5731_s11 = inlined_call_operand.vmem [shape: f32[1,128], index: 11, kind: input, shape index: {}]   ;;  %s5732_s12 = inlined_call_operand.hbm [shape: f32[16,128], index: 12, kind: output, shape index: {}]  }
   0x1   :  { %18 = vsyncpa [#allocation6], 0 }
   0x2   :  { %19 = vsyncpa [#allocation9], 0 }
   0x3   :  { %20 = vsyncpa [#allocation12], 0 }
   0x4   :  { %21 = vsyncpa [#allocation4], 0  ;;  %s4910_s21 = smov [#allocation5]   ;;  %s4746_s25 = scalar_lea.hbm %s5721_s1, 2048 }
   0x5   :  { %s39_s22 = sshll.u32 %s4910_s21, 4  ;;  %p4747_p0 = scmp.ne.s32.totalorder %s5721_s1, %s4746_s25  ;;  %s40_s22 = int_to_ptr.vmem [resolvable:$true] %s39_s22 }
   0x6   :  { %p4750_p1 = scmp.lt.u32.totalorder %s4746_s25, %s5721_s1 }
   0x8   :  { %p4752_p2 = pnand %p4750_p1, %p4747_p0 }
   0xa   :  { %4755 = shalt.err (!%p4752_p2)
}
   0xb   :  { %s4756_s30 = scalar_lea.vmem %s40_s22, 2048  ;;  %p4761_p4 = scmp.lt.s32.totalorder %s40_s22, %s40_s22 }
   0xc   :  { %p4757_p3 = scmp.ne.s32.totalorder %s40_s22, %s4756_s30  ;;  %p4762_p5 = scmp.lt.s32.totalorder %s4756_s30, %s4756_s30 }
   0xe   :  { %p4763_p6 = por %p4762_p5, %p4761_p4 }
  0x10   :  { %p4764_p7 = pnand %p4763_p6, %p4757_p3 }
  0x12   :  { %4767 = shalt.err (!%p4764_p7)
}
  0x13   :  { %s4911_s13 = smov 64   ;;  %s4912_s14 = smov 4  }
  0x14   :  { %45 = dma.hbm_to_vmem [thread:$0]  %s5721_s1, 2048, %s40_s22, [#allocation6], %s4911_s13, %s4911_s13, %s4912_s14  }
  0x15   :  { %s4913_s17 = smov [#allocation8]   ;;  %s4914_s19 = smov [#allocation2]  }
  0x16   :  { %s65_s18 = sshll.u32 %s4913_s17, 4  ;;  %s27_s20 = sshll.u32 %s4914_s19, 4  ;;  %s66_s18 = int_to_ptr.vmem [resolvable:$true] %s65_s18  ;;  %s28_s20 = int_to_ptr.vmem [resolvable:$true] %s27_s20 }
  0x17   :  { %s4768_s24 = scalar_lea.hbm %s5724_s4, 3072 }
  0x18   :  { %p4769_p8 = scmp.ne.s32.totalorder %s5724_s4, %s4768_s24  ;;  %p4772_p9 = scmp.lt.u32.totalorder %s4768_s24, %s5724_s4 }
  0x1a   :  { %p4774_p10 = pnand %p4772_p9, %p4769_p8 }
  0x1c   :  { %4777 = shalt.err (!%p4774_p10)
}
  0x1d   :  { %s4778_s1 = scalar_lea.vmem %s66_s18, 3072  ;;  %p4783_p12 = scmp.lt.s32.totalorder %s66_s18, %s66_s18 }
  0x1e   :  { %p4779_p11 = scmp.ne.s32.totalorder %s66_s18, %s4778_s1  ;;  %p4784_p13 = scmp.lt.s32.totalorder %s4778_s1, %s4778_s1 }
  0x20   :  { %p4785_p0 = por %p4784_p13, %p4783_p12 }
  0x22   :  { %p4786_p1 = pnand %p4785_p0, %p4779_p11 }
  0x24   :  { %4789 = shalt.err (!%p4786_p1)
}
  0x25   :  { %71 = dma.hbm_to_vmem [thread:$0]  %s5724_s4, 3072, %s66_s18, [#allocation9], %s4911_s13, %s4911_s13, %s4912_s14  }
  0x26   :  { %s4790_s16 = scalar_lea.hbm %s5720_s0, 4096 }
  0x27   :  { %p4791_p2 = scmp.ne.s32.totalorder %s5720_s0, %s4790_s16  ;;  %p4794_p3 = scmp.lt.u32.totalorder %s4790_s16, %s5720_s0 }
  0x29   :  { %p4796_p4 = pnand %p4794_p3, %p4791_p2 }
  0x2b   :  { %4799 = shalt.err (!%p4796_p4)
}
  0x2c   :  { %s4800_s24 = scalar_lea.vmem %s28_s20, 4096  ;;  %p4805_p6 = scmp.lt.s32.totalorder %s28_s20, %s28_s20 }
  0x2d   :  { %p4801_p5 = scmp.ne.s32.totalorder %s28_s20, %s4800_s24  ;;  %p4806_p7 = scmp.lt.s32.totalorder %s4800_s24, %s4800_s24 }
  0x2f   :  { %p4807_p8 = por %p4806_p7, %p4805_p6 }
  0x31   :  { %p4808_p9 = pnand %p4807_p8, %p4801_p5 }
  0x33   :  { %4811 = shalt.err (!%p4808_p9)
}
  0x34   :  { %s4915_s4 = smov 128   ;;  %s4916_s18 = smov 8  }
  0x35   :  { %33 = dma.hbm_to_vmem [thread:$0]  %s5720_s0, 4096, %s28_s20, [#allocation3], %s4915_s4, %s4915_s4, %s4916_s18  }
  0x36   :  { %s4917_s27 = smov [#allocation7]   ;;  %s4918_s1 = smov [#allocation10]  }
  0x37   :  { %s51_s28 = sshll.u32 %s4917_s27, 4  ;;  %s83_s22 = sshll.u32 %s4918_s1, 4  ;;  %s52_s28 = int_to_ptr.vmem [resolvable:$true] %s51_s28  ;;  %s84_s22 = int_to_ptr.vmem [resolvable:$true] %s83_s22 }
  0x38   :  { %s4812_s15 = scalar_lea.hbm %s5722_s2, 3072 }
  0x39   :  { %p4813_p10 = scmp.ne.s32.totalorder %s5722_s2, %s4812_s15  ;;  %p4816_p11 = scmp.lt.u32.totalorder %s4812_s15, %s5722_s2 }
  0x3b   :  { %p4818_p12 = pnand %p4816_p11, %p4813_p10 }
  0x3d   :  { %4821 = shalt.err (!%p4818_p12)
}
  0x3e   :  { %s4822_s0 = scalar_lea.vmem %s52_s28, 3072  ;;  %p4827_p0 = scmp.lt.s32.totalorder %s52_s28, %s52_s28 }
  0x3f   :  { %p4823_p13 = scmp.ne.s32.totalorder %s52_s28, %s4822_s0  ;;  %p4828_p1 = scmp.lt.s32.totalorder %s4822_s0, %s4822_s0 }
  0x41   :  { %p4829_p2 = por %p4828_p1, %p4827_p0 }
  0x43   :  { %p4830_p3 = pnand %p4829_p2, %p4823_p13 }
  0x45   :  { %4833 = shalt.err (!%p4830_p3)
}
  0x46   :  { %57 = dma.hbm_to_vmem [thread:$0]  %s5722_s2, 3072, %s52_s28, [#allocation6], %s4911_s13, %s4911_s13, %s4912_s14  }
  0x47   :  { %s4834_s26 = scalar_lea.hbm %s5728_s8, 3072 }
  0x48   :  { %p4835_p4 = scmp.ne.s32.totalorder %s5728_s8, %s4834_s26  ;;  %p4838_p5 = scmp.lt.u32.totalorder %s4834_s26, %s5728_s8 }
  0x4a   :  { %p4840_p6 = pnand %p4838_p5, %p4835_p4 }
  0x4c   :  { %4843 = shalt.err (!%p4840_p6)
}
  0x4d   :  { %s4844_s15 = scalar_lea.vmem %s84_s22, 3072  ;;  %p4849_p8 = scmp.lt.s32.totalorder %s84_s22, %s84_s22 }
  0x4e   :  { %p4845_p7 = scmp.ne.s32.totalorder %s84_s22, %s4844_s15  ;;  %p4850_p9 = scmp.lt.s32.totalorder %s4844_s15, %s4844_s15 }
  0x50   :  { %p4851_p10 = por %p4850_p9, %p4849_p8 }
  0x52   :  { %p4852_p11 = pnand %p4851_p10, %p4845_p7 }
  0x54   :  { %4855 = shalt.err (!%p4852_p11)
}
  0x55   :  { %89 = dma.hbm_to_vmem [thread:$0]  %s5728_s8, 3072, %s84_s22, [#allocation9], %s4911_s13, %s4911_s13, %s4912_s14  }
  0x56   :  { %s4919_s16 = smov [#allocation11]   ;;  %s4856_s0 = scalar_lea.hbm %s5730_s10, 1024 }
  0x57   :  { %s97_s17 = sshll.u32 %s4919_s16, 4  ;;  %p4857_p12 = scmp.ne.s32.totalorder %s5730_s10, %s4856_s0  ;;  %s98_s17 = int_to_ptr.vmem [resolvable:$true] %s97_s17 }
  0x58   :  { %p4860_p13 = scmp.lt.u32.totalorder %s4856_s0, %s5730_s10 }
  0x5a   :  { %p4862_p0 = pnand %p4860_p13, %p4857_p12 }
  0x5c   :  { %4865 = shalt.err (!%p4862_p0)
}
  0x5d   :  { %s4866_s26 = scalar_lea.vmem %s98_s17, 1024  ;;  %p4871_p2 = scmp.lt.s32.totalorder %s98_s17, %s98_s17 }
  0x5e   :  { %p4867_p1 = scmp.ne.s32.totalorder %s98_s17, %s4866_s26  ;;  %p4872_p3 = scmp.lt.s32.totalorder %s4866_s26, %s4866_s26 }
  0x60   :  { %p4873_p4 = por %p4872_p3, %p4871_p2 }
  0x62   :  { %p4874_p5 = pnand %p4873_p4, %p4867_p1 }
  0x64   :  { %4877 = shalt.err (!%p4874_p5)
}
  0x65   :  { %103 = dma.hbm_to_vmem [thread:$0]  %s5730_s10, 1024, %s98_s17, [#allocation12], %s4911_s13, %s4911_s13, %s4912_s14  }
  0x66   :  { %4900 = dma.done.wait [#allocation3], 4096  }
  0x67   :  { %4901 = vsyncadd [#allocation3], 4294963200 }
  0x68   :  { %4902 = dma.done.wait [#allocation6], 5120  }
  0x69   :  { %4903 = vsyncadd [#allocation6], 4294962176 }
  0x6a   :  { %4904 = dma.done.wait [#allocation9], 6144  }
  0x6b   :  { %4905 = vsyncadd [#allocation9], 4294961152 }
  0x6c   :  { %4906 = dma.done.wait [#allocation12], 1024  }
  0x6d   :  { %4907 = vsyncadd [#allocation12], 4294966272  ;;  %v5079_v0 = vld [vmem:[#allocation5 + $0x40] sm:$0xff]   ;;  %v5083_v2 = vld [vmem:[#allocation5 + $0x48] sm:$0xff]   ;;  %vm4922_vm0 = vmmov 0  }
  0x6e   :  { %v5081_v1 = vld [vmem:[#allocation5] sm:$0xff]   ;;  %v5085_v3 = vld [vmem:[#allocation5 + $0x8] sm:$0xff]   ;;  %v5087_v4 = vld [vmem:[#allocation5 + $0x50] sm:$0xff]   ;;  %3543 = vmatprep.subr.bf16.mxu0 %v5079_v0 }
  0x6f   :  { %3544 = vmatpush3.bf16.msra.mxu0 %v5081_v1  ;;  %v5092_v5 = vld [vmem:[#allocation5 + $0x10] sm:$0xff]   ;;  %v5094_v6 = vld [vmem:[#allocation5 + $0x58] sm:$0xff]   ;;  %v4524_v7 = vld [vmem:[#allocation2 + $0x4] ss:$8 sps:$4 sm:$0xff]   ;;  %v193_v56 = vunpack.c.l.bf16 %v5081_v1  ;;  %v194_v59 = vunpack.c.h.bf16 %v5081_v1 }
  0x70   :  { %3545 = vmatprep.subr.bf16.mxu0 %v5083_v2  ;;  %513 = vmatprep.mubr.bf16.mxu0 %v4524_v7  ;;  %v5098_v8 = vld [vmem:[#allocation5 + $0x18] sm:$0xff]   ;;  %v5100_v9 = vld [vmem:[#allocation5 + $0x60] sm:$0xff]   ;;  %v5106_v11 = vld [vmem:[#allocation5 + $0x68] sm:$0xff]  }
  0x71   :  { %v5104_v10 = vld [vmem:[#allocation5 + $0x20] sm:$0xff]   ;;  %v5110_v12 = vld [vmem:[#allocation5 + $0x28] sm:$0xff]   ;;  %v5112_v13 = vld [vmem:[#allocation5 + $0x70] sm:$0xff]  }
  0x72   :  { %v5116_v14 = vld [vmem:[#allocation5 + $0x30] sm:$0xff]   ;;  %v5118_v15 = vld [vmem:[#allocation5 + $0x78] sm:$0xff]   ;;  %v4572_v17 = vld [vmem:[#allocation7] sm:$0xff]  }
  0x73   :  { %3546 = vmatpush3.bf16.msra.mxu0 %v5085_v3  ;;  %v5122_v16 = vld [vmem:[#allocation5 + $0x38] sm:$0xff]   ;;  %v4573_v18 = vld [vmem:[#allocation7 + $0x8] sm:$0xff]   ;;  %4125 = vmatprep.subr.bf16.mxu1 %v4572_v17  ;;  %v4574_v21 = vld [vmem:[#allocation7 + $0x10] sm:$0xff]  }
  0x74   :  { %3547 = vmatprep.subr.bf16.mxu0 %v5087_v4  ;;  %v4526_v19 = vld [vmem:[#allocation2] ss:$8 sps:$4 sm:$0xff]   ;;  %v4527_v20 = vld [vmem:[#allocation2 + $0x14] ss:$8 sps:$4 sm:$0xff]   ;;  %4126 = vmatpush3.bf16.msra.mxu1 %v4572_v17  ;;  %v4529_v23 = vld [vmem:[#allocation2 + $0x10] ss:$8 sps:$4 sm:$0xff]  }
  0x75   :  { %4127 = vmatprep.subr.bf16.mxu1 %v4573_v18  ;;  %v4575_v22 = vld [vmem:[#allocation7 + $0x18] sm:$0xff]   ;;  %v4530_v24 = vld [vmem:[#allocation2 + $0x24] ss:$8 sps:$4 sm:$0xff]   ;;  %v4532_v25 = vld [vmem:[#allocation2 + $0x20] ss:$8 sps:$4 sm:$0xff]  }
  0x76   :  { %v4533_v26 = vld [vmem:[#allocation2 + $0x34] ss:$8 sps:$4 sm:$0xff]   ;;  %v4535_v27 = vld [vmem:[#allocation2 + $0x30] ss:$8 sps:$4 sm:$0xff]   ;;  %v4536_v28 = vld [vmem:[#allocation2 + $0x44] ss:$8 sps:$4 sm:$0xff]  }
  0x77   :  { %3548 = vmatpush3.bf16.msra.mxu0 %v5092_v5  ;;  %v4538_v29 = vld [vmem:[#allocation2 + $0x40] ss:$8 sps:$4 sm:$0xff]   ;;  %v4539_v30 = vld [vmem:[#allocation2 + $0x54] ss:$8 sps:$4 sm:$0xff]   ;;  %v4541_v31 = vld [vmem:[#allocation2 + $0x50] ss:$8 sps:$4 sm:$0xff]  }
  0x78   :  { %3549 = vmatprep.subr.bf16.mxu0 %v5094_v6  ;;  %4128 = vmatpush3.bf16.msra.mxu1 %v4573_v18  ;;  %v4542_v32 = vld [vmem:[#allocation2 + $0x64] ss:$8 sps:$4 sm:$0xff]   ;;  %v4544_v33 = vld [vmem:[#allocation2 + $0x60] ss:$8 sps:$4 sm:$0xff]   ;;  %v4545_v34 = vld [vmem:[#allocation2 + $0x74] ss:$8 sps:$4 sm:$0xff]  }
  0x79   :  { %4129 = vmatprep.subr.bf16.mxu1 %v4574_v21  ;;  %v4547_v35 = vld [vmem:[#allocation2 + $0x70] ss:$8 sps:$4 sm:$0xff]   ;;  %v4548_v36 = vld [vmem:[#allocation2 + $0x84] ss:$8 sps:$4 sm:$0xff]   ;;  %v4550_v37 = vld [vmem:[#allocation2 + $0x80] ss:$8 sps:$4 sm:$0xff]  }
  0x7a   :  { %v4551_v38 = vld [vmem:[#allocation2 + $0x94] ss:$8 sps:$4 sm:$0xff]   ;;  %v4553_v39 = vld [vmem:[#allocation2 + $0x90] ss:$8 sps:$4 sm:$0xff]   ;;  %v4554_v40 = vld [vmem:[#allocation2 + $0xa4] ss:$8 sps:$4 sm:$0xff]  }
  0x7b   :  { %3550 = vmatpush3.bf16.msra.mxu0 %v5098_v8  ;;  %v4556_v41 = vld [vmem:[#allocation2 + $0xa0] ss:$8 sps:$4 sm:$0xff]   ;;  %v4557_v42 = vld [vmem:[#allocation2 + $0xb4] ss:$8 sps:$4 sm:$0xff]   ;;  %v4559_v44 = vld [vmem:[#allocation2 + $0xb0] ss:$8 sps:$4 sm:$0xff]  }
  0x7c   :  { %3551 = vmatprep.subr.bf16.mxu0 %v5100_v9  ;;  %4130 = vmatpush3.bf16.msra.mxu1 %v4574_v21  ;;  %v4576_v43 = vld [vmem:[#allocation7 + $0x20] sm:$0xff]   ;;  %v4577_v46 = vld [vmem:[#allocation7 + $0x28] sm:$0xff]   ;;  %v4578_v47 = vld [vmem:[#allocation7 + $0x30] sm:$0xff]  }
  0x7d   :  { %4131 = vmatprep.subr.bf16.mxu1 %v4575_v22  ;;  %v4560_v45 = vld [vmem:[#allocation2 + $0xc4] ss:$8 sps:$4 sm:$0xff]   ;;  %v4562_v48 = vld [vmem:[#allocation2 + $0xc0] ss:$8 sps:$4 sm:$0xff]   ;;  %v4563_v49 = vld [vmem:[#allocation2 + $0xd4] ss:$8 sps:$4 sm:$0xff]  }
  0x7e   :  { %v4579_v50 = vld [vmem:[#allocation7 + $0x38] sm:$0xff]   ;;  %v4566_v52 = vld [vmem:[#allocation2 + $0xe4] ss:$8 sps:$4 sm:$0xff]   ;;  %v4568_v53 = vld [vmem:[#allocation2 + $0xe0] ss:$8 sps:$4 sm:$0xff]  }
  0x7f   :  { %3552 = vmatpush3.bf16.msra.mxu0 %v5104_v10  ;;  %v4565_v51 = vld [vmem:[#allocation2 + $0xd0] ss:$8 sps:$4 sm:$0xff]   ;;  %v4569_v54 = vld [vmem:[#allocation2 + $0xf4] ss:$8 sps:$4 sm:$0xff]   ;;  %v4580_v62 = vld [vmem:[#allocation8] sm:$0xff]  }
  0x80   :  { %3553 = vmatprep.subr.bf16.mxu0 %v5106_v11  ;;  %4132 = vmatpush3.bf16.msra.mxu1 %v4575_v22  ;;  %v4571_v55 = vld [vmem:[#allocation2 + $0xf0] ss:$8 sps:$4 sm:$0xff]   ;;  %v195_v22 = vunpack.c.l.bf16 %v5085_v3 }
  0x81   :  { %4133 = vmatprep.subr.bf16.mxu1 %v4576_v43 }
  0x83   :  { %3554 = vmatpush3.bf16.msra.mxu0 %v5110_v12 }
  0x84   :  { %3555 = vmatprep.subr.bf16.mxu0 %v5112_v13  ;;  %4134 = vmatpush3.bf16.msra.mxu1 %v4576_v43  ;;  %v4583_v43 = vld [vmem:[#allocation8 + $0x18] sm:$0xff]  }
  0x85   :  { %4135 = vmatprep.subr.bf16.mxu1 %v4577_v46 }
  0x87   :  { %3556 = vmatpush3.bf16.msra.mxu0 %v5116_v14 }
  0x88   :  { %3557 = vmatprep.subr.bf16.mxu0 %v5118_v15  ;;  %4136 = vmatpush3.bf16.msra.mxu1 %v4577_v46 }
  0x89   :  { %4137 = vmatprep.subr.bf16.mxu1 %v4578_v47 }
  0x8b   :  { %3558 = vmatpush3.bf16.msra.mxu0 %v5122_v16 }
  0x8c   :  { %4138 = vmatpush3.bf16.msra.mxu1 %v4578_v47 }
  0x8d   :  { %4139 = vmatprep.subr.bf16.mxu1 %v4579_v50 }
  0x8e   :  { %514 = vmatmul.mubr.bf16.vlgmr.msra.gmra.mrb[0].mxu0 %v4526_v19 }
  0x8f   :  { %521 = vmatprep.mubr.bf16.mxu0 %v4527_v20 }
  0x90   :  { %4140 = vmatpush3.bf16.msra.mxu1 %v4579_v50  ;;  %v4584_v50 = vld [vmem:[#allocation8 + $0x20] sm:$0xff]  }
  0x91   :  { %4173 = vmatprep.subr.bf16.mxu1 %v4580_v62 }
  0x96   :  { %522 = vmatmul.mubr.bf16.gmra.mrb[4].mxu0 %v4529_v23 }
  0x97   :  { %529 = vmatprep.mubr.bf16.mxu0 %v4530_v24 }
  0x9e   :  { %530 = vmatmul.mubr.bf16.gmra.mrb[8].mxu0 %v4532_v25  ;;  %v196_v25 = vunpack.c.h.bf16 %v5085_v3  ;;  %v4582_v3 = vld [vmem:[#allocation8 + $0x10] sm:$0xff]  }
  0x9f   :  { %537 = vmatprep.mubr.bf16.mxu0 %v4533_v26 }
  0xa6   :  { %538 = vmatmul.mubr.bf16.gmra.mrb[12].mxu0 %v4535_v27 }
  0xa7   :  { %545 = vmatprep.mubr.bf16.mxu0 %v4536_v28 }
  0xae   :  { %546 = vmatmul.mubr.bf16.gmra.mrb[16].mxu0 %v4538_v29 }
  0xaf   :  { %553 = vmatprep.mubr.bf16.mxu0 %v4539_v30 }
  0xb6   :  { %554 = vmatmul.mubr.bf16.gmra.mrb[20].mxu0 %v4541_v31  ;;  %v4581_v31 = vld [vmem:[#allocation8 + $0x8] sm:$0xff]  }
  0xb7   :  { %561 = vmatprep.mubr.bf16.mxu0 %v4542_v32 }
  0xbe   :  { %562 = vmatmul.mubr.bf16.gmra.mrb[24].mxu0 %v4544_v33  ;;  %v197_v33 = vunpack.c.l.bf16 %v5092_v5 }
  0xbf   :  { %569 = vmatprep.mubr.bf16.mxu0 %v4545_v34 }
  0xc6   :  { %570 = vmatmul.mubr.bf16.gmra.mrb[28].mxu0 %v4547_v35 }
  0xc7   :  { %577 = vmatprep.mubr.bf16.mxu0 %v4548_v36  ;;  %v198_v36 = vunpack.c.h.bf16 %v5092_v5  ;;  %v200_v5 = vunpack.c.h.bf16 %v5098_v8 }
  0xce   :  { %578 = vmatmul.mubr.bf16.gmra.mrb[32].mxu0 %v4550_v37 }
  0xcf   :  { %585 = vmatprep.mubr.bf16.mxu0 %v4551_v38 }
  0xd6   :  { %586 = vmatmul.mubr.bf16.gmra.mrb[36].mxu0 %v4553_v39 }
  0xd7   :  { %593 = vmatprep.mubr.bf16.mxu0 %v4554_v40 }
  0xde   :  { %594 = vmatmul.mubr.bf16.gmra.mrb[40].mxu0 %v4556_v41 }
  0xdf   :  { %601 = vmatprep.mubr.bf16.mxu0 %v4557_v42 }
  0xe6   :  { %602 = vmatmul.mubr.bf16.gmra.mrb[44].mxu0 %v4559_v44 }
  0xe7   :  { %609 = vmatprep.mubr.bf16.mxu0 %v4560_v45  ;;  %v199_v45 = vunpack.c.l.bf16 %v5098_v8  ;;  %v202_v8 = vunpack.c.h.bf16 %v5104_v10 }
  0xee   :  { %610 = vmatmul.mubr.bf16.gmra.mrb[48].mxu0 %v4562_v48 }
  0xef   :  { %617 = vmatprep.mubr.bf16.mxu0 %v4563_v49 }
  0xf6   :  { %618 = vmatmul.mubr.bf16.gmra.mrb[52].mxu0 %v4565_v51 }
  0xf7   :  { %625 = vmatprep.mubr.bf16.mxu0 %v4566_v52 }
  0xfe   :  { %626 = vmatmul.mubr.bf16.gmra.mrb[56].mxu0 %v4568_v53 }
  0xff   :  { %633 = vmatprep.mubr.bf16.mxu0 %v4569_v54 }
 0x106   :  { %634 = vmatmul.mubr.bf16.gmra.mrb[60].mxu0 %v4571_v55  ;;  %v4585_v55 = vld [vmem:[#allocation8 + $0x28] sm:$0xff]  }
 0x161   :  { %v3559_v57 = vpop.f32.mrb[0].mxu0 }
 0x162   :  { %v3560_v58 = vpop.f32.mrb[1].mxu0 }
 0x163   :  { %v3561_v60 = vadd.f32 %v3560_v58, %v3559_v57  ;;  %v3562_v61 = vpop.f32.mrb[2].mxu0  ;;  %v201_v57 = vunpack.c.l.bf16 %v5104_v10 }
 0x164   :  { %v3563_v63 = vpop.f32.mrb[3].mxu0 }
 0x165   :  { %v3564_v7 = vadd.f32 %v3563_v63, %v3562_v61  ;;  %v516_v17 = vadd.f32 %v3561_v60, %v193_v56 }
 0x167   :  { %v519_v18 = vadd.f32 %v3564_v7, %v194_v59 }
 0x169   :  { %v3565_v19 = vpop.f32.mrb[4].mxu0  ;;  %v642_v20 = vpack.c.bf16 %v519_v18, %v516_v17 }
 0x16a   :  { %v3566_v21 = vpop.f32.mrb[5].mxu0 }
 0x16b   :  { %v3567_v23 = vadd.f32 %v3566_v21, %v3565_v19  ;;  %v3568_v24 = vpop.f32.mrb[6].mxu0  ;;  %4141 = vmatprep.mubr.bf16.mxu1 %v642_v20  ;;  %v203_v19 = vunpack.c.l.bf16 %v5110_v12 }
 0x16c   :  { %v3569_v26 = vpop.f32.mrb[7].mxu0 }
 0x16d   :  { %v3570_v1 = vadd.f32 %v3569_v26, %v3568_v24  ;;  %v524_v27 = vadd.f32 %v3567_v23, %v195_v22  ;;  %v204_v22 = vunpack.c.h.bf16 %v5110_v12 }
 0x16f   :  { %v527_v28 = vadd.f32 %v3570_v1, %v196_v25 }
 0x171   :  { %v3571_v29 = vpop.f32.mrb[8].mxu0  ;;  %v643_v30 = vpack.c.bf16 %v527_v28, %v524_v27  ;;  %v205_v28 = vunpack.c.l.bf16 %v5116_v14 }
 0x172   :  { %v3572_v32 = vpop.f32.mrb[9].mxu0 }
 0x173   :  { %v3573_v34 = vadd.f32 %v3572_v32, %v3571_v29  ;;  %v3574_v35 = vpop.f32.mrb[10].mxu0  ;;  %4142 = vmatmul.mubr.bf16.vlgmr.msra.gmra.mrb[0].mxu1 %v643_v30 }
 0x174   :  { %v3575_v37 = vpop.f32.mrb[11].mxu0  ;;  %4174 = vmatpush3.bf16.msra.mxu1 %v4580_v62 }
 0x175   :  { %v3576_v38 = vadd.f32 %v3575_v37, %v3574_v35  ;;  %4175 = vmatprep.subr.bf16.mxu1 %v4581_v31  ;;  %v532_v39 = vadd.f32 %v3573_v34, %v197_v33 }
 0x177   :  { %v535_v40 = vadd.f32 %v3576_v38, %v198_v36  ;;  %v207_v38 = vunpack.c.l.bf16 %v5122_v16 }
 0x178   :  { %4176 = vmatpush3.bf16.msra.mxu1 %v4581_v31  ;;  %v206_v31 = vunpack.c.h.bf16 %v5116_v14  ;;  %v209_v14 = vunpack.c.l.bf16 %v5079_v0 }
 0x179   :  { %v3577_v41 = vpop.f32.mrb[12].mxu0  ;;  %v644_v42 = vpack.c.bf16 %v535_v40, %v532_v39  ;;  %4177 = vmatprep.subr.bf16.mxu1 %v4582_v3  ;;  %v208_v40 = vunpack.c.h.bf16 %v5122_v16 }
 0x17a   :  { %v3578_v44 = vpop.f32.mrb[13].mxu0 }
 0x17b   :  { %v3579_v46 = vadd.f32 %v3578_v44, %v3577_v41  ;;  %v3580_v47 = vpop.f32.mrb[14].mxu0  ;;  %4145 = vmatprep.mubr.bf16.mxu1 %v644_v42 }
 0x17c   :  { %v3581_v48 = vpop.f32.mrb[15].mxu0  ;;  %4178 = vmatpush3.bf16.msra.mxu1 %v4582_v3 }
 0x17d   :  { %v3582_v49 = vadd.f32 %v3581_v48, %v3580_v47  ;;  %4179 = vmatprep.subr.bf16.mxu1 %v4583_v43  ;;  %v540_v51 = vadd.f32 %v3579_v46, %v199_v45 }
 0x17f   :  { %v543_v52 = vadd.f32 %v3582_v49, %v200_v5  ;;  %v210_v5 = vunpack.c.h.bf16 %v5079_v0 }
 0x180   :  { %4180 = vmatpush3.bf16.msra.mxu1 %v4583_v43 }
 0x181   :  { %v3583_v53 = vpop.f32.mrb[16].mxu0  ;;  %v645_v54 = vpack.c.bf16 %v543_v52, %v540_v51  ;;  %4181 = vmatprep.subr.bf16.mxu1 %v4584_v50 }
 0x182   :  { %v3584_v56 = vpop.f32.mrb[17].mxu0 }
 0x183   :  { %v3585_v58 = vadd.f32 %v3584_v56, %v3583_v53  ;;  %v3586_v59 = vpop.f32.mrb[18].mxu0  ;;  %4146 = vmatmul.mubr.bf16.gmra.mrb[4].mxu1 %v645_v54  ;;  %v211_v56 = vunpack.c.l.bf16 %v5083_v2 }
 0x184   :  { %v3587_v60 = vpop.f32.mrb[19].mxu0  ;;  %4182 = vmatpush3.bf16.msra.mxu1 %v4584_v50 }
 0x185   :  { %v3588_v61 = vadd.f32 %v3587_v60, %v3586_v59  ;;  %4183 = vmatprep.subr.bf16.mxu1 %v4585_v55  ;;  %v548_v62 = vadd.f32 %v3585_v58, %v201_v57  ;;  %v212_v59 = vunpack.c.h.bf16 %v5083_v2 }
 0x187   :  { %v551_v63 = vadd.f32 %v3588_v61, %v202_v8 }
 0x188   :  { %4184 = vmatpush3.bf16.msra.mxu1 %v4585_v55 }
 0x189   :  { %v3589_v7 = vpop.f32.mrb[20].mxu0  ;;  %v646_v17 = vpack.c.bf16 %v551_v63, %v548_v62 }
 0x18a   :  { %v3590_v18 = vpop.f32.mrb[21].mxu0 }
 0x18b   :  { %v3591_v20 = vadd.f32 %v3590_v18, %v3589_v7  ;;  %v3592_v21 = vpop.f32.mrb[22].mxu0  ;;  %4149 = vmatprep.mubr.bf16.mxu1 %v646_v17  ;;  %v213_v17 = vunpack.c.l.bf16 %v5087_v4 }
 0x18c   :  { %v3593_v23 = vpop.f32.mrb[23].mxu0 }
 0x18d   :  { %v3594_v24 = vadd.f32 %v3593_v23, %v3592_v21  ;;  %v556_v10 = vadd.f32 %v3591_v20, %v203_v19  ;;  %v214_v20 = vunpack.c.h.bf16 %v5087_v4 }
 0x18f   :  { %v559_v25 = vadd.f32 %v3594_v24, %v204_v22 }
 0x191   :  { %v3595_v26 = vpop.f32.mrb[24].mxu0  ;;  %v647_v1 = vpack.c.bf16 %v559_v25, %v556_v10 }
 0x192   :  { %v3596_v27 = vpop.f32.mrb[25].mxu0 }
 0x193   :  { %v3597_v29 = vadd.f32 %v3596_v27, %v3595_v26  ;;  %v3598_v30 = vpop.f32.mrb[26].mxu0  ;;  %4150 = vmatmul.mubr.bf16.gmra.mrb[8].mxu1 %v647_v1  ;;  %v215_v26 = vunpack.c.l.bf16 %v5094_v6 }
 0x194   :  { %v3599_v32 = vpop.f32.mrb[27].mxu0 }
 0x195   :  { %v3600_v33 = vadd.f32 %v3599_v32, %v3598_v30  ;;  %v564_v34 = vadd.f32 %v3597_v29, %v205_v28  ;;  %v216_v28 = vunpack.c.h.bf16 %v5094_v6 }
 0x197   :  { %v567_v35 = vadd.f32 %v3600_v33, %v206_v31 }
 0x199   :  { %v3601_v36 = vpop.f32.mrb[28].mxu0  ;;  %v648_v12 = vpack.c.bf16 %v567_v35, %v564_v34  ;;  %v217_v35 = vunpack.c.l.bf16 %v5100_v9 }
 0x19a   :  { %v3602_v37 = vpop.f32.mrb[29].mxu0 }
 0x19b   :  { %v3603_v3 = vadd.f32 %v3602_v37, %v3601_v36  ;;  %v3604_v39 = vpop.f32.mrb[30].mxu0  ;;  %4153 = vmatprep.mubr.bf16.mxu1 %v648_v12  ;;  %v218_v37 = vunpack.c.h.bf16 %v5100_v9 }
 0x19c   :  { %v3605_v41 = vpop.f32.mrb[31].mxu0 }
 0x19d   :  { %v3606_v42 = vadd.f32 %v3605_v41, %v3604_v39  ;;  %v572_v43 = vadd.f32 %v3603_v3, %v207_v38  ;;  %v4586_v41 = vld [vmem:[#allocation8 + $0x30] sm:$0xff]  }
 0x19e   :  { %4185 = vmatprep.subr.bf16.mxu1 %v4586_v41 }
 0x19f   :  { %v575_v44 = vadd.f32 %v3606_v42, %v208_v40  ;;  %4186 = vmatpush3.bf16.msra.mxu1 %v4586_v41 }
 0x1a1   :  { %v3607_v45 = vpop.f32.mrb[32].mxu0  ;;  %v649_v46 = vpack.c.bf16 %v575_v44, %v572_v43  ;;  %v219_v44 = vunpack.c.l.bf16 %v5106_v11 }
 0x1a2   :  { %v3608_v47 = vpop.f32.mrb[33].mxu0 }
 0x1a3   :  { %v3609_v48 = vadd.f32 %v3608_v47, %v3607_v45  ;;  %v3610_v49 = vpop.f32.mrb[34].mxu0  ;;  %4154 = vmatmul.mubr.bf16.gmra.mrb[12].mxu1 %v649_v46  ;;  %v220_v46 = vunpack.c.h.bf16 %v5106_v11  ;;  %v4587_v47 = vld [vmem:[#allocation8 + $0x38] sm:$0xff]  }
 0x1a4   :  { %v3611_v50 = vpop.f32.mrb[35].mxu0  ;;  %4187 = vmatprep.subr.bf16.mxu1 %v4587_v47 }
 0x1a5   :  { %v580_v51 = vadd.f32 %v3609_v48, %v209_v14  ;;  %v3612_v52 = vadd.f32 %v3611_v50, %v3610_v49  ;;  %4188 = vmatpush3.bf16.msra.mxu1 %v4587_v47 }
 0x1a7   :  { %v583_v53 = vadd.f32 %v3612_v52, %v210_v5 }
 0x1a9   :  { %v3613_v54 = vpop.f32.mrb[36].mxu0  ;;  %v650_v16 = vpack.c.bf16 %v583_v53, %v580_v51  ;;  %v221_v53 = vunpack.c.l.bf16 %v5112_v13 }
 0x1aa   :  { %v3614_v55 = vpop.f32.mrb[37].mxu0 }
 0x1ab   :  { %v3615_v57 = vadd.f32 %v3614_v55, %v3613_v54  ;;  %v3616_v58 = vpop.f32.mrb[38].mxu0  ;;  %4157 = vmatprep.mubr.bf16.mxu1 %v650_v16  ;;  %v222_v55 = vunpack.c.h.bf16 %v5112_v13  ;;  %v5162_v13 = vld [vmem:[%s5723_s3] ss:$0 sm:$0xff] }
 0x1ac   :  { %v3617_v8 = vpop.f32.mrb[39].mxu0 }
 0x1ad   :  { %v3618_v60 = vadd.f32 %v3617_v8, %v3616_v58  ;;  %v588_v0 = vadd.f32 %v3615_v57, %v211_v56 }
 0x1af   :  { %v591_v61 = vadd.f32 %v3618_v60, %v212_v59 }
 0x1b1   :  { %v3619_v62 = vpop.f32.mrb[40].mxu0  ;;  %v651_v63 = vpack.c.bf16 %v591_v61, %v588_v0  ;;  %v223_v0 = vunpack.c.l.bf16 %v5118_v15 }
 0x1b2   :  { %v3620_v7 = vpop.f32.mrb[41].mxu0 }
 0x1b3   :  { %v3621_v18 = vadd.f32 %v3620_v7, %v3619_v62  ;;  %v3622_v19 = vpop.f32.mrb[42].mxu0  ;;  %4158 = vmatmul.mubr.bf16.gmra.mrb[16].mxu1 %v651_v63  ;;  %v224_v63 = vunpack.c.h.bf16 %v5118_v15 }
 0x1b4   :  { %v3623_v21 = vpop.f32.mrb[43].mxu0 }
 0x1b5   :  { %v3624_v22 = vadd.f32 %v3623_v21, %v3622_v19  ;;  %v596_v23 = vadd.f32 %v3621_v18, %v213_v17 }
 0x1b7   :  { %v599_v24 = vadd.f32 %v3624_v22, %v214_v20 }
 0x1b9   :  { %v3625_v10 = vpop.f32.mrb[44].mxu0  ;;  %v652_v2 = vpack.c.bf16 %v599_v24, %v596_v23 }
 0x1ba   :  { %v3626_v25 = vpop.f32.mrb[45].mxu0 }
 0x1bb   :  { %v3627_v1 = vadd.f32 %v3626_v25, %v3625_v10  ;;  %v3628_v27 = vpop.f32.mrb[46].mxu0  ;;  %4161 = vmatprep.mubr.bf16.mxu1 %v652_v2 }
 0x1bc   :  { %v3629_v29 = vpop.f32.mrb[47].mxu0 }
 0x1bd   :  { %v3630_v30 = vadd.f32 %v3629_v29, %v3628_v27  ;;  %v604_v31 = vadd.f32 %v3627_v1, %v215_v26 }
 0x1bf   :  { %v607_v32 = vadd.f32 %v3630_v30, %v216_v28 }
 0x1c1   :  { %v3631_v33 = vpop.f32.mrb[48].mxu0  ;;  %v653_v4 = vpack.c.bf16 %v607_v32, %v604_v31 }
 0x1c2   :  { %v3632_v34 = vpop.f32.mrb[49].mxu0 }
 0x1c3   :  { %v3633_v36 = vadd.f32 %v3632_v34, %v3631_v33  ;;  %v3634_v12 = vpop.f32.mrb[50].mxu0  ;;  %4162 = vmatmul.mubr.bf16.gmra.mrb[20].mxu1 %v653_v4 }
 0x1c4   :  { %v3635_v38 = vpop.f32.mrb[51].mxu0 }
 0x1c5   :  { %v3636_v3 = vadd.f32 %v3635_v38, %v3634_v12  ;;  %v612_v39 = vadd.f32 %v3633_v36, %v217_v35 }
 0x1c7   :  { %v615_v40 = vadd.f32 %v3636_v3, %v218_v37 }
 0x1c9   :  { %v3637_v6 = vpop.f32.mrb[52].mxu0  ;;  %v654_v42 = vpack.c.bf16 %v615_v40, %v612_v39 }
 0x1ca   :  { %v3638_v43 = vpop.f32.mrb[53].mxu0 }
 0x1cb   :  { %v3639_v14 = vadd.f32 %v3638_v43, %v3637_v6  ;;  %v3640_v45 = vpop.f32.mrb[54].mxu0  ;;  %4165 = vmatprep.mubr.bf16.mxu1 %v654_v42 }
 0x1cc   :  { %v3641_v5 = vpop.f32.mrb[55].mxu0 }
 0x1cd   :  { %v3642_v9 = vadd.f32 %v3641_v5, %v3640_v45  ;;  %v620_v48 = vadd.f32 %v3639_v14, %v219_v44 }
 0x1cf   :  { %v623_v49 = vadd.f32 %v3642_v9, %v220_v46 }
 0x1d1   :  { %v3643_v50 = vpop.f32.mrb[56].mxu0  ;;  %v655_v51 = vpack.c.bf16 %v623_v49, %v620_v48 }
 0x1d2   :  { %v3644_v52 = vpop.f32.mrb[57].mxu0 }
 0x1d3   :  { %v3645_v54 = vadd.f32 %v3644_v52, %v3643_v50  ;;  %v3646_v16 = vpop.f32.mrb[58].mxu0  ;;  %4166 = vmatmul.mubr.bf16.gmra.mrb[24].mxu1 %v655_v51 }
 0x1d4   :  { %v3647_v56 = vpop.f32.mrb[59].mxu0 }
 0x1d5   :  { %v3648_v57 = vadd.f32 %v3647_v56, %v3646_v16  ;;  %v628_v11 = vadd.f32 %v3645_v54, %v221_v53 }
 0x1d7   :  { %v631_v58 = vadd.f32 %v3648_v57, %v222_v55 }
 0x1d9   :  { %v3649_v59 = vpop.f32.mrb[60].mxu0  ;;  %v656_v8 = vpack.c.bf16 %v631_v58, %v628_v11 }
 0x1da   :  { %v3650_v60 = vpop.f32.mrb[61].mxu0 }
 0x1db   :  { %v3651_v61 = vadd.f32 %v3650_v60, %v3649_v59  ;;  %v3652_v62 = vpop.f32.mrb[62].mxu0  ;;  %4169 = vmatprep.mubr.bf16.mxu1 %v656_v8 }
 0x1dc   :  { %v3653_v7 = vpop.f32.mrb[63].mxu0 }
 0x1dd   :  { %v3654_v17 = vadd.f32 %v3653_v7, %v3652_v62  ;;  %v636_v18 = vadd.f32 %v3651_v61, %v223_v0 }
 0x1df   :  { %v639_v19 = vadd.f32 %v3654_v17, %v224_v63 }
 0x1e1   :  { %v657_v20 = vpack.c.bf16 %v639_v19, %v636_v18 }
 0x1e3   :  { %4170 = vmatmul.mubr.bf16.gmra.mrb[28].mxu1 %v657_v20 }
 0x246   :  { %v4143_v21 = vpop.f32.mrb[0].mxu1 }
 0x247   :  { %v772_v22 = vadd.f32 %v4143_v21, %v5162_v13  ;;  %v763_v23 = vpop.f32.mrb[1].mxu1 }
 0x248   :  { %v764_v24 = vadd.f32 %v5162_v13, %v763_v23  ;;  %v4144_v10 = vpop.f32.mrb[2].mxu1 }
 0x249   :  { %v775_v15 = vadd.f32 %v4144_v10, %v5162_v13  ;;  %v766_v2 = vpop.f32.mrb[3].mxu1  ;;  %v892_v26 = vmax.f32 %v772_v22, 0.0 }
 0x24a   :  { %v767_v25 = vadd.f32 %v5162_v13, %v766_v2  ;;  %v890_v27 = vmax.f32 %v764_v24, 0.0 }
 0x24b   :  { %v893_v1 = vmax.f32 %v775_v15, 0.0 }
 0x24c   :  { %v891_v28 = vmax.f32 %v767_v25, 0.0 }
 0x24d   :  { %v923_v29 = vpack.c.bf16 %v893_v1, %v892_v26 }
 0x24e   :  { %v922_v30 = vpack.c.bf16 %v891_v28, %v890_v27 }
 0x250   :  { %4189 = vmatprep.mubr.bf16.mxu1 %v922_v30 }
 0x251   :  { %4190 = vmatmul.mubr.bf16.vlgmr.msra.gmra.mrb[32].mxu1 %v923_v29 }
 0x256   :  { %v4147_v31 = vpop.f32.mrb[4].mxu1 }
 0x257   :  { %v788_v32 = vadd.f32 %v4147_v31, %v5162_v13  ;;  %v779_v33 = vpop.f32.mrb[5].mxu1 }
 0x258   :  { %v780_v4 = vadd.f32 %v5162_v13, %v779_v33  ;;  %v4148_v34 = vpop.f32.mrb[6].mxu1 }
 0x259   :  { %v791_v35 = vadd.f32 %v4148_v34, %v5162_v13  ;;  %v782_v36 = vpop.f32.mrb[7].mxu1  ;;  %v896_v37 = vmax.f32 %v788_v32, 0.0 }
 0x25a   :  { %v783_v12 = vadd.f32 %v5162_v13, %v782_v36  ;;  %v894_v3 = vmax.f32 %v780_v4, 0.0 }
 0x25b   :  { %v897_v38 = vmax.f32 %v791_v35, 0.0 }
 0x25c   :  { %v895_v39 = vmax.f32 %v783_v12, 0.0 }
 0x25d   :  { %v925_v40 = vpack.c.bf16 %v897_v38, %v896_v37 }
 0x25e   :  { %v924_v41 = vpack.c.bf16 %v895_v39, %v894_v3 }
 0x260   :  { %4193 = vmatprep.mubr.bf16.mxu1 %v924_v41 }
 0x261   :  { %4194 = vmatmul.mubr.bf16.gmra.mrb[36].mxu1 %v925_v40 }
 0x266   :  { %v4151_v6 = vpop.f32.mrb[8].mxu1 }
 0x267   :  { %v804_v42 = vadd.f32 %v4151_v6, %v5162_v13  ;;  %v795_v43 = vpop.f32.mrb[9].mxu1 }
 0x268   :  { %v796_v44 = vadd.f32 %v5162_v13, %v795_v43  ;;  %v4152_v14 = vpop.f32.mrb[10].mxu1 }
 0x269   :  { %v807_v45 = vadd.f32 %v4152_v14, %v5162_v13  ;;  %v798_v46 = vpop.f32.mrb[11].mxu1  ;;  %v900_v5 = vmax.f32 %v804_v42, 0.0 }
 0x26a   :  { %v799_v47 = vadd.f32 %v5162_v13, %v798_v46  ;;  %v898_v48 = vmax.f32 %v796_v44, 0.0 }
 0x26b   :  { %v901_v9 = vmax.f32 %v807_v45, 0.0 }
 0x26c   :  { %v899_v49 = vmax.f32 %v799_v47, 0.0 }
 0x26d   :  { %v927_v50 = vpack.c.bf16 %v901_v9, %v900_v5 }
 0x26e   :  { %v926_v51 = vpack.c.bf16 %v899_v49, %v898_v48 }
 0x270   :  { %4197 = vmatprep.mubr.bf16.mxu1 %v926_v51 }
 0x271   :  { %4198 = vmatmul.mubr.bf16.gmra.mrb[40].mxu1 %v927_v50 }
 0x276   :  { %v4155_v52 = vpop.f32.mrb[12].mxu1 }
 0x277   :  { %v820_v53 = vadd.f32 %v4155_v52, %v5162_v13  ;;  %v811_v54 = vpop.f32.mrb[13].mxu1 }
 0x278   :  { %v812_v16 = vadd.f32 %v5162_v13, %v811_v54  ;;  %v4156_v55 = vpop.f32.mrb[14].mxu1 }
 0x279   :  { %v823_v56 = vadd.f32 %v4156_v55, %v5162_v13  ;;  %v814_v57 = vpop.f32.mrb[15].mxu1  ;;  %v904_v58 = vmax.f32 %v820_v53, 0.0 }
 0x27a   :  { %v815_v11 = vadd.f32 %v5162_v13, %v814_v57  ;;  %v902_v8 = vmax.f32 %v812_v16, 0.0 }
 0x27b   :  { %v905_v59 = vmax.f32 %v823_v56, 0.0 }
 0x27c   :  { %v903_v60 = vmax.f32 %v815_v11, 0.0  ;;  %v4679_v11 = vld [vmem:[#allocation2 + $0x4] ss:$8 sps:$4 sm:$0xff]  }
 0x27d   :  { %v929_v0 = vpack.c.bf16 %v905_v59, %v904_v58  ;;  %v5199_v58 = vld [vmem:[%s5725_s5] ss:$0 sm:$0xff] }
 0x27e   :  { %v928_v61 = vpack.c.bf16 %v903_v60, %v902_v8 }
 0x280   :  { %4201 = vmatprep.mubr.bf16.mxu1 %v928_v61 }
 0x281   :  { %4202 = vmatmul.mubr.bf16.gmra.mrb[44].mxu1 %v929_v0 }
 0x286   :  { %v4159_v62 = vpop.f32.mrb[16].mxu1 }
 0x287   :  { %v836_v63 = vadd.f32 %v4159_v62, %v5162_v13  ;;  %v827_v7 = vpop.f32.mrb[17].mxu1 }
 0x288   :  { %v828_v17 = vadd.f32 %v5162_v13, %v827_v7  ;;  %v4160_v18 = vpop.f32.mrb[18].mxu1 }
 0x289   :  { %v839_v19 = vadd.f32 %v4160_v18, %v5162_v13  ;;  %v830_v20 = vpop.f32.mrb[19].mxu1  ;;  %v908_v22 = vmax.f32 %v836_v63, 0.0 }
 0x28a   :  { %v831_v21 = vadd.f32 %v5162_v13, %v830_v20  ;;  %v906_v24 = vmax.f32 %v828_v17, 0.0 }
 0x28b   :  { %v909_v23 = vmax.f32 %v839_v19, 0.0 }
 0x28c   :  { %v907_v10 = vmax.f32 %v831_v21, 0.0 }
 0x28d   :  { %v931_v15 = vpack.c.bf16 %v909_v23, %v908_v22 }
 0x28e   :  { %v930_v2 = vpack.c.bf16 %v907_v10, %v906_v24 }
 0x290   :  { %4205 = vmatprep.mubr.bf16.mxu1 %v930_v2 }
 0x291   :  { %4206 = vmatmul.mubr.bf16.gmra.mrb[48].mxu1 %v931_v15 }
 0x296   :  { %v4163_v25 = vpop.f32.mrb[20].mxu1 }
 0x297   :  { %v852_v26 = vadd.f32 %v4163_v25, %v5162_v13  ;;  %v843_v1 = vpop.f32.mrb[21].mxu1 }
 0x298   :  { %v844_v27 = vadd.f32 %v5162_v13, %v843_v1  ;;  %v4164_v28 = vpop.f32.mrb[22].mxu1 }
 0x299   :  { %v855_v29 = vadd.f32 %v4164_v28, %v5162_v13  ;;  %v846_v30 = vpop.f32.mrb[23].mxu1  ;;  %v912_v32 = vmax.f32 %v852_v26, 0.0 }
 0x29a   :  { %v847_v31 = vadd.f32 %v5162_v13, %v846_v30  ;;  %v910_v4 = vmax.f32 %v844_v27, 0.0 }
 0x29b   :  { %v913_v33 = vmax.f32 %v855_v29, 0.0 }
 0x29c   :  { %v911_v34 = vmax.f32 %v847_v31, 0.0 }
 0x29d   :  { %v933_v35 = vpack.c.bf16 %v913_v33, %v912_v32 }
 0x29e   :  { %v932_v36 = vpack.c.bf16 %v911_v34, %v910_v4 }
 0x2a0   :  { %4209 = vmatprep.mubr.bf16.mxu1 %v932_v36 }
 0x2a1   :  { %4210 = vmatmul.mubr.bf16.gmra.mrb[52].mxu1 %v933_v35 }
 0x2a6   :  { %v4167_v12 = vpop.f32.mrb[24].mxu1 }
 0x2a7   :  { %v868_v37 = vadd.f32 %v4167_v12, %v5162_v13  ;;  %v859_v38 = vpop.f32.mrb[25].mxu1 }
 0x2a8   :  { %v860_v3 = vadd.f32 %v5162_v13, %v859_v38  ;;  %v4168_v39 = vpop.f32.mrb[26].mxu1 }
 0x2a9   :  { %v871_v40 = vadd.f32 %v4168_v39, %v5162_v13  ;;  %v862_v41 = vpop.f32.mrb[27].mxu1  ;;  %v916_v42 = vmax.f32 %v868_v37, 0.0 }
 0x2aa   :  { %v863_v6 = vadd.f32 %v5162_v13, %v862_v41  ;;  %v914_v44 = vmax.f32 %v860_v3, 0.0 }
 0x2ab   :  { %v917_v43 = vmax.f32 %v871_v40, 0.0 }
 0x2ac   :  { %v915_v14 = vmax.f32 %v863_v6, 0.0 }
 0x2ad   :  { %v935_v45 = vpack.c.bf16 %v917_v43, %v916_v42 }
 0x2ae   :  { %v934_v46 = vpack.c.bf16 %v915_v14, %v914_v44 }
 0x2b0   :  { %4213 = vmatprep.mubr.bf16.mxu1 %v934_v46 }
 0x2b1   :  { %4214 = vmatmul.mubr.bf16.gmra.mrb[56].mxu1 %v935_v45 }
 0x2b6   :  { %v4171_v47 = vpop.f32.mrb[28].mxu1 }
 0x2b7   :  { %v884_v5 = vadd.f32 %v4171_v47, %v5162_v13  ;;  %v875_v9 = vpop.f32.mrb[29].mxu1 }
 0x2b8   :  { %v876_v48 = vadd.f32 %v5162_v13, %v875_v9  ;;  %v4172_v49 = vpop.f32.mrb[30].mxu1 }
 0x2b9   :  { %v887_v50 = vadd.f32 %v4172_v49, %v5162_v13  ;;  %v878_v51 = vpop.f32.mrb[31].mxu1  ;;  %v920_v53 = vmax.f32 %v884_v5, 0.0 }
 0x2ba   :  { %v879_v52 = vadd.f32 %v5162_v13, %v878_v51  ;;  %v918_v16 = vmax.f32 %v876_v48, 0.0 }
 0x2bb   :  { %v921_v54 = vmax.f32 %v887_v50, 0.0 }
 0x2bc   :  { %v919_v55 = vmax.f32 %v879_v52, 0.0 }
 0x2bd   :  { %v937_v56 = vpack.c.bf16 %v921_v54, %v920_v53 }
 0x2be   :  { %v936_v57 = vpack.c.bf16 %v919_v55, %v918_v16 }
 0x2c0   :  { %4217 = vmatprep.mubr.bf16.mxu1 %v936_v57 }
 0x2c1   :  { %4218 = vmatmul.mubr.bf16.gmra.mrb[60].mxu1 %v937_v56 }
 0x2c2   :  { %1362 = vmatprep.mubr.bf16.mxu1 %v4679_v11 }
 0x324   :  { %v4191_v59 = vpop.f32.mrb[32].mxu1 }
 0x325   :  { %v1052_v8 = vadd.f32 %v4191_v59, %v5199_v58  ;;  %v1043_v60 = vpop.f32.mrb[33].mxu1 }
 0x326   :  { %v1044_v13 = vadd.f32 %v5199_v58, %v1043_v60  ;;  %v4192_v0 = vpop.f32.mrb[34].mxu1 }
 0x327   :  { %v1055_v61 = vadd.f32 %v4192_v0, %v5199_v58  ;;  %v1046_v62 = vpop.f32.mrb[35].mxu1  ;;  %v1172_v7 = vmax.f32 %v1052_v8, 0.0 }
 0x328   :  { %v1047_v63 = vadd.f32 %v5199_v58, %v1046_v62  ;;  %v1170_v18 = vmax.f32 %v1044_v13, 0.0 }
 0x329   :  { %v1173_v17 = vmax.f32 %v1055_v61, 0.0 }
 0x32a   :  { %v1171_v19 = vmax.f32 %v1047_v63, 0.0 }
 0x32b   :  { %v5205_v20 = vpack.c.bf16 %v1173_v17, %v1172_v7 }
 0x32c   :  { %v5207_v21 = vpack.c.bf16 %v1171_v19, %v1170_v18 }
 0x334   :  { %v4195_v22 = vpop.f32.mrb[36].mxu1 }
 0x335   :  { %v1068_v23 = vadd.f32 %v4195_v22, %v5199_v58  ;;  %v1059_v24 = vpop.f32.mrb[37].mxu1 }
 0x336   :  { %v1060_v10 = vadd.f32 %v5199_v58, %v1059_v24  ;;  %v4196_v15 = vpop.f32.mrb[38].mxu1 }
 0x337   :  { %v1071_v2 = vadd.f32 %v4196_v15, %v5199_v58  ;;  %v1062_v25 = vpop.f32.mrb[39].mxu1  ;;  %v1176_v1 = vmax.f32 %v1068_v23, 0.0 }
 0x338   :  { %v1063_v26 = vadd.f32 %v5199_v58, %v1062_v25  ;;  %v1174_v28 = vmax.f32 %v1060_v10, 0.0 }
 0x339   :  { %v1177_v27 = vmax.f32 %v1071_v2, 0.0 }
 0x33a   :  { %v1175_v29 = vmax.f32 %v1063_v26, 0.0 }
 0x33b   :  { %v5213_v30 = vpack.c.bf16 %v1177_v27, %v1176_v1 }
 0x33c   :  { %v5215_v31 = vpack.c.bf16 %v1175_v29, %v1174_v28 }
 0x344   :  { %v4199_v32 = vpop.f32.mrb[40].mxu1 }
 0x345   :  { %v1084_v33 = vadd.f32 %v4199_v32, %v5199_v58  ;;  %v1075_v4 = vpop.f32.mrb[41].mxu1 }
 0x346   :  { %v1076_v34 = vadd.f32 %v5199_v58, %v1075_v4  ;;  %v4200_v35 = vpop.f32.mrb[42].mxu1 }
 0x347   :  { %v1087_v36 = vadd.f32 %v4200_v35, %v5199_v58  ;;  %v1078_v12 = vpop.f32.mrb[43].mxu1  ;;  %v1180_v38 = vmax.f32 %v1084_v33, 0.0 }
 0x348   :  { %v1079_v37 = vadd.f32 %v5199_v58, %v1078_v12  ;;  %v1178_v39 = vmax.f32 %v1076_v34, 0.0 }
 0x349   :  { %v1181_v3 = vmax.f32 %v1087_v36, 0.0 }
 0x34a   :  { %v1179_v40 = vmax.f32 %v1079_v37, 0.0 }
 0x34b   :  { %v5221_v41 = vpack.c.bf16 %v1181_v3, %v1180_v38 }
 0x34c   :  { %v5223_v6 = vpack.c.bf16 %v1179_v40, %v1178_v39 }
 0x354   :  { %v4203_v42 = vpop.f32.mrb[44].mxu1 }
 0x355   :  { %v1100_v43 = vadd.f32 %v4203_v42, %v5199_v58  ;;  %v1091_v44 = vpop.f32.mrb[45].mxu1 }
 0x356   :  { %v1092_v14 = vadd.f32 %v5199_v58, %v1091_v44  ;;  %v4204_v45 = vpop.f32.mrb[46].mxu1 }
 0x357   :  { %v1103_v46 = vadd.f32 %v4204_v45, %v5199_v58  ;;  %v1094_v47 = vpop.f32.mrb[47].mxu1  ;;  %v1184_v9 = vmax.f32 %v1100_v43, 0.0 }
 0x358   :  { %v1095_v5 = vadd.f32 %v5199_v58, %v1094_v47  ;;  %v1182_v49 = vmax.f32 %v1092_v14, 0.0 }
 0x359   :  { %v1185_v48 = vmax.f32 %v1103_v46, 0.0 }
 0x35a   :  { %v1183_v50 = vmax.f32 %v1095_v5, 0.0 }
 0x35b   :  { %v5229_v51 = vpack.c.bf16 %v1185_v48, %v1184_v9 }
 0x35c   :  { %v5231_v52 = vpack.c.bf16 %v1183_v50, %v1182_v49 }
 0x364   :  { %v4207_v53 = vpop.f32.mrb[48].mxu1 }
 0x365   :  { %v1116_v54 = vadd.f32 %v4207_v53, %v5199_v58  ;;  %v1107_v16 = vpop.f32.mrb[49].mxu1 }
 0x366   :  { %v1108_v55 = vadd.f32 %v5199_v58, %v1107_v16  ;;  %v4208_v56 = vpop.f32.mrb[50].mxu1  ;;  %v4588_v16 = vld [vmem:[%s5726_s6] ss:$8 sps:$4 sm:$0xff]  }
 0x367   :  { %v1119_v57 = vadd.f32 %v4208_v56, %v5199_v58  ;;  %v1110_v11 = vpop.f32.mrb[51].mxu1  ;;  %v1188_v8 = vmax.f32 %v1116_v54, 0.0  ;;  %v5294_v54 = vld [vmem:[%s5726_s6 + $0x4] ss:$8 sps:$4 sm:$0xff]   ;;  %v4680_v56 = vld [vmem:[#allocation2] ss:$8 sps:$4 sm:$0xff]  }
 0x368   :  { %v1111_v59 = vadd.f32 %v5199_v58, %v1110_v11  ;;  %v1186_v13 = vmax.f32 %v1108_v55, 0.0  ;;  %1260 = vmatprep.mubr.bf16.mxu0 %v5294_v54  ;;  %v4592_v55 = vld [vmem:[#allocation7 + $0x48] sm:$0xff]   ;;  %v4593_v11 = vld [vmem:[#allocation7 + $0x50] sm:$0xff]  }
 0x369   :  { %v1189_v60 = vmax.f32 %v1119_v57, 0.0  ;;  %v4681_v57 = vld [vmem:[#allocation2 + $0x14] ss:$8 sps:$4 sm:$0xff]  }
 0x36a   :  { %v1187_v0 = vmax.f32 %v1111_v59, 0.0  ;;  %v4594_v59 = vld [vmem:[#allocation7 + $0x58] sm:$0xff]  }
 0x36b   :  { %v5237_v61 = vpack.c.bf16 %v1189_v60, %v1188_v8  ;;  %v4682_v8 = vld [vmem:[#allocation2 + $0x10] ss:$8 sps:$4 sm:$0xff]   ;;  %v4683_v60 = vld [vmem:[#allocation2 + $0x24] ss:$8 sps:$4 sm:$0xff]  }
 0x36c   :  { %v5239_v62 = vpack.c.bf16 %v1187_v0, %v1186_v13  ;;  %v4684_v13 = vld [vmem:[#allocation2 + $0x20] ss:$8 sps:$4 sm:$0xff]   ;;  %v4685_v0 = vld [vmem:[#allocation2 + $0x34] ss:$8 sps:$4 sm:$0xff]  }
 0x36e   :  { %3703 = vmatprep.subr.bf16.mxu0 %v5239_v62  ;;  %3725 = vmatprep.subr.bf16.mxu1 %v5239_v62 }
 0x36f   :  { %3704 = vmatpush3.bf16.msra.mxu0 %v5207_v21  ;;  %3726 = vmatpush3.bf16.msra.mxu1 %v5207_v21 }
 0x370   :  { %3705 = vmatprep.subr.bf16.mxu0 %v5237_v61  ;;  %3727 = vmatprep.subr.bf16.mxu1 %v5237_v61 }
 0x373   :  { %3706 = vmatpush3.bf16.msra.mxu0 %v5205_v20  ;;  %3728 = vmatpush3.bf16.msra.mxu1 %v5205_v20 }
 0x374   :  { %v4211_v63 = vpop.f32.mrb[52].mxu1 }
 0x375   :  { %v1132_v7 = vadd.f32 %v4211_v63, %v5199_v58  ;;  %v1123_v17 = vpop.f32.mrb[53].mxu1  ;;  %v4686_v63 = vld [vmem:[#allocation2 + $0x30] ss:$8 sps:$4 sm:$0xff]  }
 0x376   :  { %v1124_v18 = vadd.f32 %v5199_v58, %v1123_v17  ;;  %v4212_v19 = vpop.f32.mrb[54].mxu1  ;;  %v4688_v17 = vld [vmem:[#allocation2 + $0x40] ss:$8 sps:$4 sm:$0xff]  }
 0x377   :  { %v1135_v22 = vadd.f32 %v4212_v19, %v5199_v58  ;;  %v1126_v23 = vpop.f32.mrb[55].mxu1  ;;  %v1192_v10 = vmax.f32 %v1132_v7, 0.0  ;;  %v4687_v7 = vld [vmem:[#allocation2 + $0x44] ss:$8 sps:$4 sm:$0xff]   ;;  %v4690_v19 = vld [vmem:[#allocation2 + $0x50] ss:$8 sps:$4 sm:$0xff]  }
 0x378   :  { %v1127_v24 = vadd.f32 %v5199_v58, %v1126_v23  ;;  %v1190_v2 = vmax.f32 %v1124_v18, 0.0  ;;  %v4689_v18 = vld [vmem:[#allocation2 + $0x54] ss:$8 sps:$4 sm:$0xff]   ;;  %v4692_v23 = vld [vmem:[#allocation2 + $0x60] ss:$8 sps:$4 sm:$0xff]  }
 0x379   :  { %v1193_v15 = vmax.f32 %v1135_v22, 0.0  ;;  %v4691_v22 = vld [vmem:[#allocation2 + $0x64] ss:$8 sps:$4 sm:$0xff]  }
 0x37a   :  { %v1191_v25 = vmax.f32 %v1127_v24, 0.0  ;;  %v4693_v24 = vld [vmem:[#allocation2 + $0x74] ss:$8 sps:$4 sm:$0xff]  }
 0x37b   :  { %v5253_v26 = vpack.c.bf16 %v1193_v15, %v1192_v10  ;;  %v4694_v10 = vld [vmem:[#allocation2 + $0x70] ss:$8 sps:$4 sm:$0xff]   ;;  %v4695_v15 = vld [vmem:[#allocation2 + $0x84] ss:$8 sps:$4 sm:$0xff]  }
 0x37c   :  { %v5255_v1 = vpack.c.bf16 %v1191_v25, %v1190_v2  ;;  %v4696_v2 = vld [vmem:[#allocation2 + $0x80] ss:$8 sps:$4 sm:$0xff]   ;;  %v4697_v25 = vld [vmem:[#allocation2 + $0x94] ss:$8 sps:$4 sm:$0xff]  }
 0x37e   :  { %3707 = vmatprep.subr.bf16.mxu0 %v5255_v1  ;;  %3729 = vmatprep.subr.bf16.mxu1 %v5255_v1 }
 0x37f   :  { %3708 = vmatpush3.bf16.msra.mxu0 %v5215_v31  ;;  %3730 = vmatpush3.bf16.msra.mxu1 %v5215_v31 }
 0x380   :  { %3709 = vmatprep.subr.bf16.mxu0 %v5253_v26  ;;  %3731 = vmatprep.subr.bf16.mxu1 %v5253_v26 }
 0x383   :  { %3710 = vmatpush3.bf16.msra.mxu0 %v5213_v30  ;;  %3732 = vmatpush3.bf16.msra.mxu1 %v5213_v30 }
 0x384   :  { %v4215_v27 = vpop.f32.mrb[56].mxu1 }
 0x385   :  { %v1148_v28 = vadd.f32 %v4215_v27, %v5199_v58  ;;  %v1139_v29 = vpop.f32.mrb[57].mxu1  ;;  %v4698_v27 = vld [vmem:[#allocation2 + $0x90] ss:$8 sps:$4 sm:$0xff]  }
 0x386   :  { %v1140_v32 = vadd.f32 %v5199_v58, %v1139_v29  ;;  %v4216_v33 = vpop.f32.mrb[58].mxu1  ;;  %v4700_v29 = vld [vmem:[#allocation2 + $0xa0] ss:$8 sps:$4 sm:$0xff]  }
 0x387   :  { %v1151_v4 = vadd.f32 %v4216_v33, %v5199_v58  ;;  %v1142_v34 = vpop.f32.mrb[59].mxu1  ;;  %v1196_v36 = vmax.f32 %v1148_v28, 0.0  ;;  %v4699_v28 = vld [vmem:[#allocation2 + $0xa4] ss:$8 sps:$4 sm:$0xff]  }
 0x388   :  { %v1143_v35 = vadd.f32 %v5199_v58, %v1142_v34  ;;  %v1194_v37 = vmax.f32 %v1140_v32, 0.0  ;;  %v4701_v32 = vld [vmem:[#allocation2 + $0xb4] ss:$8 sps:$4 sm:$0xff]   ;;  %v4595_v33 = vld [vmem:[#allocation7 + $0x60] sm:$0xff]   ;;  %v4702_v34 = vld [vmem:[#allocation2 + $0xb0] ss:$8 sps:$4 sm:$0xff]  }
 0x389   :  { %v1197_v12 = vmax.f32 %v1151_v4, 0.0  ;;  %v4596_v4 = vld [vmem:[#allocation7 + $0x68] sm:$0xff]  }
 0x38a   :  { %v1195_v38 = vmax.f32 %v1143_v35, 0.0  ;;  %v4703_v35 = vld [vmem:[#allocation2 + $0xc4] ss:$8 sps:$4 sm:$0xff]  }
 0x38b   :  { %v5269_v3 = vpack.c.bf16 %v1197_v12, %v1196_v36  ;;  %v4597_v36 = vld [vmem:[#allocation7 + $0x70] sm:$0xff]   ;;  %v4598_v12 = vld [vmem:[#allocation7 + $0x78] sm:$0xff]  }
 0x38c   :  { %v5271_v39 = vpack.c.bf16 %v1195_v38, %v1194_v37  ;;  %v4704_v37 = vld [vmem:[#allocation2 + $0xc0] ss:$8 sps:$4 sm:$0xff]   ;;  %v4705_v38 = vld [vmem:[#allocation2 + $0xd4] ss:$8 sps:$4 sm:$0xff]  }
 0x38e   :  { %3711 = vmatprep.subr.bf16.mxu0 %v5271_v39  ;;  %3733 = vmatprep.subr.bf16.mxu1 %v5271_v39 }
 0x38f   :  { %3712 = vmatpush3.bf16.msra.mxu0 %v5223_v6  ;;  %3734 = vmatpush3.bf16.msra.mxu1 %v5223_v6 }
 0x390   :  { %3713 = vmatprep.subr.bf16.mxu0 %v5269_v3  ;;  %3735 = vmatprep.subr.bf16.mxu1 %v5269_v3 }
 0x393   :  { %3714 = vmatpush3.bf16.msra.mxu0 %v5221_v41  ;;  %3736 = vmatpush3.bf16.msra.mxu1 %v5221_v41 }
 0x394   :  { %v4219_v40 = vpop.f32.mrb[60].mxu1 }
 0x395   :  { %v1164_v42 = vadd.f32 %v4219_v40, %v5199_v58  ;;  %v1155_v43 = vpop.f32.mrb[61].mxu1  ;;  %v4706_v40 = vld [vmem:[#allocation2 + $0xd0] ss:$8 sps:$4 sm:$0xff]  }
 0x396   :  { %v1156_v44 = vadd.f32 %v5199_v58, %v1155_v43  ;;  %v4220_v14 = vpop.f32.mrb[62].mxu1  ;;  %v4708_v43 = vld [vmem:[#allocation2 + $0xe0] ss:$8 sps:$4 sm:$0xff]  }
 0x397   :  { %v1167_v45 = vadd.f32 %v4220_v14, %v5199_v58  ;;  %v1158_v46 = vpop.f32.mrb[63].mxu1  ;;  %v1200_v5 = vmax.f32 %v1164_v42, 0.0  ;;  %v4707_v42 = vld [vmem:[#allocation2 + $0xe4] ss:$8 sps:$4 sm:$0xff]   ;;  %v4710_v14 = vld [vmem:[#allocation2 + $0xf0] ss:$8 sps:$4 sm:$0xff]  }
 0x398   :  { %v1159_v47 = vadd.f32 %v5199_v58, %v1158_v46  ;;  %v1198_v48 = vmax.f32 %v1156_v44, 0.0  ;;  %v4591_v58 = vld [vmem:[#allocation7 + $0x40] sm:$0xff]   ;;  %v4709_v44 = vld [vmem:[#allocation2 + $0xf4] ss:$8 sps:$4 sm:$0xff]   ;;  %v4920_v46 = vmov 0  }
 0x399   :  { %v1201_v9 = vmax.f32 %v1167_v45, 0.0  ;;  %v159_v45 = vld [vmem:[%s5727_s7] sm:$0xff]  ;;  %4507 = vset.pattern.permute.xlu0 %v4920_v46  ;;  %v1304_v46 = vunpack.c.l.bf16 %v5213_v30 }
 0x39a   :  { %v1199_v49 = vmax.f32 %v1159_v47, 0.0  ;;  %1271 = vperm.xlu0 %4507, %v159_v45   ;;  %v160_v47 = vld [vmem:[%s5727_s7 + $0x8] sm:$0xff] }
 0x39b   :  { %v5285_v50 = vpack.c.bf16 %v1201_v9, %v1200_v5 }
 0x39c   :  { %v5287_v53 = vpack.c.bf16 %v1199_v49, %v1198_v48 }
 0x39e   :  { %3715 = vmatprep.subr.bf16.mxu0 %v5287_v53  ;;  %3737 = vmatprep.subr.bf16.mxu1 %v5287_v53 }
 0x39f   :  { %3716 = vmatpush3.bf16.msra.mxu0 %v5231_v52  ;;  %3738 = vmatpush3.bf16.msra.mxu1 %v5231_v52 }
 0x3a0   :  { %3717 = vmatprep.subr.bf16.mxu0 %v5285_v50  ;;  %3739 = vmatprep.subr.bf16.mxu1 %v5285_v50 }
 0x3a1   :  { %1276 = vperm.xlu0 %4507, %v160_v47  }
 0x3a3   :  { %3718 = vmatpush3.bf16.msra.mxu0 %v5229_v51  ;;  %3740 = vmatpush3.bf16.msra.mxu1 %v5229_v51 }
 0x3a4   :  { %4221 = vmatprep.subr.bf16.mxu0 %v4591_v58 }
 0x3a6   :  { %1363 = vmatmul.mubr.bf16.vlgmr.msra.gmra.mrb[64].mxu1 %v4680_v56  ;;  %1261 = vmatmul.mubr.bf16.vlgmr.msra.gmra.mrb[64].mxu0 %v4588_v16  ;;  %v1298_v56 = vunpack.c.l.bf16 %v5207_v21 }
 0x3a7   :  { %1370 = vmatprep.mubr.bf16.mxu1 %v4681_v57  ;;  %4222 = vmatpush3.bf16.msra.mxu0 %v4591_v58  ;;  %v4599_v58 = vld [vmem:[#allocation8 + $0x40] sm:$0xff]   ;;  %v1299_v57 = vunpack.c.h.bf16 %v5207_v21  ;;  %v1301_v21 = vunpack.c.h.bf16 %v5205_v20 }
 0x3a8   :  { %4223 = vmatprep.subr.bf16.mxu0 %v4592_v55 }
 0x3ab   :  { %4224 = vmatpush3.bf16.msra.mxu0 %v4592_v55 }
 0x3ac   :  { %4225 = vmatprep.subr.bf16.mxu0 %v4593_v11 }
 0x3ae   :  { %1371 = vmatmul.mubr.bf16.gmra.mrb[68].mxu1 %v4682_v8 }
 0x3af   :  { %1378 = vmatprep.mubr.bf16.mxu1 %v4683_v60  ;;  %4226 = vmatpush3.bf16.msra.mxu0 %v4593_v11 }
 0x3b0   :  { %4227 = vmatprep.subr.bf16.mxu0 %v4594_v59 }
 0x3b3   :  { %4228 = vmatpush3.bf16.msra.mxu0 %v4594_v59 }
 0x3b4   :  { %4229 = vmatprep.subr.bf16.mxu0 %v4595_v33 }
 0x3b6   :  { %1379 = vmatmul.mubr.bf16.gmra.mrb[72].mxu1 %v4684_v13 }
 0x3b7   :  { %1386 = vmatprep.mubr.bf16.mxu1 %v4685_v0  ;;  %4230 = vmatpush3.bf16.msra.mxu0 %v4595_v33 }
 0x3b8   :  { %4231 = vmatprep.subr.bf16.mxu0 %v4596_v4 }
 0x3bb   :  { %4232 = vmatpush3.bf16.msra.mxu0 %v4596_v4 }
 0x3bc   :  { %4233 = vmatprep.subr.bf16.mxu0 %v4597_v36 }
 0x3be   :  { %1387 = vmatmul.mubr.bf16.gmra.mrb[76].mxu1 %v4686_v63 }
 0x3bf   :  { %1394 = vmatprep.mubr.bf16.mxu1 %v4687_v7  ;;  %4234 = vmatpush3.bf16.msra.mxu0 %v4597_v36 }
 0x3c0   :  { %4235 = vmatprep.subr.bf16.mxu0 %v4598_v12 }
 0x3c3   :  { %4236 = vmatpush3.bf16.msra.mxu0 %v4598_v12  ;;  %v4601_v12 = vld [vmem:[#allocation8 + $0x50] sm:$0xff]  }
 0x3c4   :  { %4269 = vmatprep.subr.bf16.mxu0 %v4599_v58 }
 0x3c6   :  { %1395 = vmatmul.mubr.bf16.gmra.mrb[80].mxu1 %v4688_v17 }
 0x3c7   :  { %1402 = vmatprep.mubr.bf16.mxu1 %v4689_v18 }
 0x3ce   :  { %1403 = vmatmul.mubr.bf16.gmra.mrb[84].mxu1 %v4690_v19 }
 0x3cf   :  { %1410 = vmatprep.mubr.bf16.mxu1 %v4691_v22 }
 0x3d6   :  { %1411 = vmatmul.mubr.bf16.gmra.mrb[88].mxu1 %v4692_v23 }
 0x3d7   :  { %1418 = vmatprep.mubr.bf16.mxu1 %v4693_v24  ;;  %v1300_v24 = vunpack.c.l.bf16 %v5205_v20 }
 0x3de   :  { %1419 = vmatmul.mubr.bf16.gmra.mrb[92].mxu1 %v4694_v10 }
 0x3df   :  { %1426 = vmatprep.mubr.bf16.mxu1 %v4695_v15 }
 0x3e6   :  { %1427 = vmatmul.mubr.bf16.gmra.mrb[96].mxu1 %v4696_v2 }
 0x3e7   :  { %1434 = vmatprep.mubr.bf16.mxu1 %v4697_v25 }
 0x3ee   :  { %1435 = vmatmul.mubr.bf16.gmra.mrb[100].mxu1 %v4698_v27 }
 0x3ef   :  { %1442 = vmatprep.mubr.bf16.mxu1 %v4699_v28  ;;  %v4600_v28 = vld [vmem:[#allocation8 + $0x48] sm:$0xff]  }
 0x3f6   :  { %1443 = vmatmul.mubr.bf16.gmra.mrb[104].mxu1 %v4700_v29 }
 0x3f7   :  { %1450 = vmatprep.mubr.bf16.mxu1 %v4701_v32 }
 0x3fe   :  { %1451 = vmatmul.mubr.bf16.gmra.mrb[108].mxu1 %v4702_v34  ;;  %v1302_v34 = vunpack.c.l.bf16 %v5215_v31 }
 0x3ff   :  { %1458 = vmatprep.mubr.bf16.mxu1 %v4703_v35  ;;  %v1303_v35 = vunpack.c.h.bf16 %v5215_v31  ;;  %v1305_v31 = vunpack.c.h.bf16 %v5213_v30  ;;  %v1307_v30 = vunpack.c.h.bf16 %v5223_v6 }
 0x406   :  { %1459 = vmatmul.mubr.bf16.gmra.mrb[112].mxu1 %v4704_v37 }
 0x407   :  { %1466 = vmatprep.mubr.bf16.mxu1 %v4705_v38 }
 0x40e   :  { %1467 = vmatmul.mubr.bf16.gmra.mrb[116].mxu1 %v4706_v40 }
 0x40f   :  { %1474 = vmatprep.mubr.bf16.mxu1 %v4707_v42  ;;  %v4602_v42 = vld [vmem:[#allocation8 + $0x58] sm:$0xff]  }
 0x416   :  { %1475 = vmatmul.mubr.bf16.gmra.mrb[120].mxu1 %v4708_v43 }
 0x417   :  { %1482 = vmatprep.mubr.bf16.mxu1 %v4709_v44 }
 0x41e   :  { %1483 = vmatmul.mubr.bf16.gmra.mrb[124].mxu1 %v4710_v14 }
 0x41f   :  { %2103 = vmatprep.mubr.bf16.mxu1 %v5294_v54 }
 0x479   :  { %v3741_v5 = vpop.f32.mrb[64].mxu1  ;;  %v3719_v16 = vpop.f32.mrb[64].mxu0 }
 0x47a   :  { %v3742_v9 = vpop.f32.mrb[65].mxu1  ;;  %v3720_v54 = vpop.f32.mrb[65].mxu0 }
 0x47b   :  { %v3743_v48 = vadd.f32 %v3742_v9, %v3741_v5  ;;  %v3744_v49 = vpop.f32.mrb[66].mxu1  ;;  %v5315_v59 = vadd.f32 %v3720_v54, %v3719_v16  ;;  %v3722_v8 = vpop.f32.mrb[66].mxu0  ;;  %v4603_v5 = vld [vmem:[#allocation8 + $0x60] sm:$0xff]   ;;  %v4604_v16 = vld [vmem:[#allocation8 + $0x68] sm:$0xff]  }
 0x47c   :  { %v3745_v55 = vpop.f32.mrb[67].mxu1  ;;  %v3723_v60 = vpop.f32.mrb[67].mxu0 }
 0x47d   :  { %v3746_v11 = vadd.f32 %v3745_v55, %v3744_v49  ;;  %v1365_v13 = vadd.f32 %v3743_v48, %v1298_v56  ;;  %v5317_v63 = vadd.f32 %v3723_v60, %v3722_v8 }
 0x47f   :  { %v1368_v0 = vadd.f32 %v3746_v11, %v1299_v57  ;;  %v1306_v11 = vunpack.c.l.bf16 %v5223_v6 }
 0x481   :  { %v3747_v7 = vpop.f32.mrb[68].mxu1  ;;  %v1491_v17 = vpack.c.bf16 %v1368_v0, %v1365_v13 }
 0x482   :  { %v3748_v18 = vpop.f32.mrb[69].mxu1 }
 0x483   :  { %v3749_v19 = vadd.f32 %v3748_v18, %v3747_v7  ;;  %v3750_v22 = vpop.f32.mrb[70].mxu1  ;;  %4237 = vmatprep.mubr.bf16.mxu0 %v1491_v17 }
 0x484   :  { %v3751_v23 = vpop.f32.mrb[71].mxu1 }
 0x485   :  { %v3752_v10 = vadd.f32 %v3751_v23, %v3750_v22  ;;  %v1373_v15 = vadd.f32 %v3749_v19, %v1300_v24  ;;  %v1308_v23 = vunpack.c.l.bf16 %v5221_v41  ;;  %v1309_v24 = vunpack.c.h.bf16 %v5221_v41 }
 0x487   :  { %v1376_v2 = vadd.f32 %v3752_v10, %v1301_v21 }
 0x489   :  { %v1492_v25 = vpack.c.bf16 %v1376_v2, %v1373_v15  ;;  %v3753_v27 = vpop.f32.mrb[72].mxu1 }
 0x48a   :  { %v3754_v29 = vpop.f32.mrb[73].mxu1 }
 0x48b   :  { %v3755_v32 = vadd.f32 %v3754_v29, %v3753_v27  ;;  %v3756_v33 = vpop.f32.mrb[74].mxu1  ;;  %4238 = vmatmul.mubr.bf16.vlgmr.msra.gmra.mrb[68].mxu0 %v1492_v25 }
 0x48c   :  { %v3757_v4 = vpop.f32.mrb[75].mxu1  ;;  %4270 = vmatpush3.bf16.msra.mxu0 %v4599_v58 }
 0x48d   :  { %v3758_v36 = vadd.f32 %v3757_v4, %v3756_v33  ;;  %4271 = vmatprep.subr.bf16.mxu0 %v4600_v28  ;;  %v1381_v20 = vadd.f32 %v3755_v32, %v1302_v34  ;;  %v1310_v32 = vunpack.c.l.bf16 %v5231_v52  ;;  %v1311_v33 = vunpack.c.h.bf16 %v5231_v52 }
 0x48f   :  { %v1384_v37 = vadd.f32 %v3758_v36, %v1303_v35 }
 0x490   :  { %4272 = vmatpush3.bf16.msra.mxu0 %v4600_v28 }
 0x491   :  { %v3759_v38 = vpop.f32.mrb[76].mxu1  ;;  %v1493_v40 = vpack.c.bf16 %v1384_v37, %v1381_v20  ;;  %4273 = vmatprep.subr.bf16.mxu0 %v4601_v12 }
 0x492   :  { %v3760_v43 = vpop.f32.mrb[77].mxu1 }
 0x493   :  { %v3761_v44 = vadd.f32 %v3760_v43, %v3759_v38  ;;  %v3762_v14 = vpop.f32.mrb[78].mxu1  ;;  %4241 = vmatprep.mubr.bf16.mxu0 %v1493_v40  ;;  %v1312_v40 = vunpack.c.l.bf16 %v5229_v51 }
 0x494   :  { %v3763_v45 = vpop.f32.mrb[79].mxu1  ;;  %4274 = vmatpush3.bf16.msra.mxu0 %v4601_v12 }
 0x495   :  { %v3764_v47 = vadd.f32 %v3763_v45, %v3762_v14  ;;  %4275 = vmatprep.subr.bf16.mxu0 %v4602_v42  ;;  %v1389_v9 = vadd.f32 %v3761_v44, %v1304_v46 }
 0x497   :  { %v1392_v48 = vadd.f32 %v3764_v47, %v1305_v31  ;;  %v1314_v31 = vunpack.c.l.bf16 %v5239_v62 }
 0x498   :  { %4276 = vmatpush3.bf16.msra.mxu0 %v4602_v42  ;;  %v1313_v42 = vunpack.c.h.bf16 %v5229_v51 }
 0x499   :  { %v3765_v49 = vpop.f32.mrb[80].mxu1  ;;  %v1494_v58 = vpack.c.bf16 %v1392_v48, %v1389_v9  ;;  %4277 = vmatprep.subr.bf16.mxu0 %v4603_v5 }
 0x49a   :  { %v3766_v55 = vpop.f32.mrb[81].mxu1 }
 0x49b   :  { %v3767_v54 = vadd.f32 %v3766_v55, %v3765_v49  ;;  %v3768_v56 = vpop.f32.mrb[82].mxu1  ;;  %4242 = vmatmul.mubr.bf16.gmra.mrb[72].mxu0 %v1494_v58  ;;  %v1315_v49 = vunpack.c.h.bf16 %v5239_v62  ;;  %v1318_v62 = vunpack.c.l.bf16 %v5255_v1 }
 0x49c   :  { %v3769_v57 = vpop.f32.mrb[83].mxu1  ;;  %4278 = vmatpush3.bf16.msra.mxu0 %v4603_v5 }
 0x49d   :  { %v3770_v8 = vadd.f32 %v3769_v57, %v3768_v56  ;;  %4279 = vmatprep.subr.bf16.mxu0 %v4604_v16  ;;  %v1397_v60 = vadd.f32 %v3767_v54, %v1306_v11  ;;  %v1316_v56 = vunpack.c.l.bf16 %v5237_v61 }
 0x49f   :  { %v1400_v13 = vadd.f32 %v3770_v8, %v1307_v30 }
 0x4a0   :  { %4280 = vmatpush3.bf16.msra.mxu0 %v4604_v16 }
 0x4a1   :  { %v3771_v0 = vpop.f32.mrb[84].mxu1  ;;  %v1495_v7 = vpack.c.bf16 %v1400_v13, %v1397_v60  ;;  %v1317_v60 = vunpack.c.h.bf16 %v5237_v61  ;;  %v1320_v61 = vunpack.c.l.bf16 %v5253_v26 }
 0x4a2   :  { %v3772_v17 = vpop.f32.mrb[85].mxu1 }
 0x4a3   :  { %v3773_v18 = vadd.f32 %v3772_v17, %v3771_v0  ;;  %v3774_v19 = vpop.f32.mrb[86].mxu1  ;;  %4245 = vmatprep.mubr.bf16.mxu0 %v1495_v7 }
 0x4a4   :  { %v3775_v22 = vpop.f32.mrb[87].mxu1 }
 0x4a5   :  { %v3776_v21 = vadd.f32 %v3775_v22, %v3774_v19  ;;  %v1405_v10 = vadd.f32 %v3773_v18, %v1308_v23 }
 0x4a7   :  { %v1408_v15 = vadd.f32 %v3776_v21, %v1309_v24  ;;  %v1319_v21 = vunpack.c.h.bf16 %v5255_v1  ;;  %v1322_v1 = vunpack.c.l.bf16 %v5271_v39 }
 0x4a9   :  { %v3777_v6 = vpop.f32.mrb[88].mxu1  ;;  %v1496_v2 = vpack.c.bf16 %v1408_v15, %v1405_v10 }
 0x4aa   :  { %v3778_v25 = vpop.f32.mrb[89].mxu1 }
 0x4ab   :  { %v3779_v27 = vadd.f32 %v3778_v25, %v3777_v6  ;;  %v3780_v28 = vpop.f32.mrb[90].mxu1  ;;  %4246 = vmatmul.mubr.bf16.gmra.mrb[76].mxu0 %v1496_v2 }
 0x4ac   :  { %v3781_v29 = vpop.f32.mrb[91].mxu1 }
 0x4ad   :  { %v3782_v4 = vadd.f32 %v3781_v29, %v3780_v28  ;;  %v1413_v34 = vadd.f32 %v3779_v27, %v1310_v32 }
 0x4af   :  { %v1416_v35 = vadd.f32 %v3782_v4, %v1311_v33  ;;  %v1321_v33 = vunpack.c.h.bf16 %v5253_v26 }
 0x4b1   :  { %v3783_v36 = vpop.f32.mrb[92].mxu1  ;;  %v1497_v12 = vpack.c.bf16 %v1416_v35, %v1413_v34 }
 0x4b2   :  { %v3784_v41 = vpop.f32.mrb[93].mxu1 }
 0x4b3   :  { %v3785_v20 = vadd.f32 %v3784_v41, %v3783_v36  ;;  %v3786_v37 = vpop.f32.mrb[94].mxu1  ;;  %4249 = vmatprep.mubr.bf16.mxu0 %v1497_v12 }
 0x4b4   :  { %v3787_v38 = vpop.f32.mrb[95].mxu1 }
 0x4b5   :  { %v3788_v43 = vadd.f32 %v3787_v38, %v3786_v37  ;;  %v1421_v44 = vadd.f32 %v3785_v20, %v1312_v40  ;;  %v1323_v40 = vunpack.c.h.bf16 %v5271_v39 }
 0x4b7   :  { %v1424_v14 = vadd.f32 %v3788_v43, %v1313_v42 }
 0x4b9   :  { %v3789_v45 = vpop.f32.mrb[96].mxu1  ;;  %v1498_v46 = vpack.c.bf16 %v1424_v14, %v1421_v44  ;;  %v4605_v44 = vld [vmem:[#allocation8 + $0x70] sm:$0xff]   ;;  %v5343_v14 = vpop.permute.xlu0 %1271 }
 0x4ba   :  { %v3790_v52 = vpop.f32.mrb[97].mxu1  ;;  %4281 = vmatprep.subr.bf16.mxu0 %v4605_v44  ;;  %v5348_v39 = vmul.f32 %v5315_v59, %v5343_v14 }
 0x4bb   :  { %v3791_v47 = vadd.f32 %v3790_v52, %v3789_v45  ;;  %v3792_v5 = vpop.f32.mrb[98].mxu1  ;;  %4250 = vmatmul.mubr.bf16.gmra.mrb[80].mxu0 %v1498_v46  ;;  %v1324_v52 = vunpack.c.l.bf16 %v5269_v3 }
 0x4bc   :  { %v3793_v9 = vpop.f32.mrb[99].mxu1  ;;  %4282 = vmatpush3.bf16.msra.mxu0 %v4605_v44 }
 0x4bd   :  { %v1429_v48 = vadd.f32 %v3791_v47, %v1314_v31  ;;  %v3794_v58 = vadd.f32 %v3793_v9, %v3792_v5  ;;  %v4606_v5 = vld [vmem:[#allocation8 + $0x78] sm:$0xff]  }
 0x4be   :  { %4283 = vmatprep.subr.bf16.mxu0 %v4606_v5 }
 0x4bf   :  { %v1432_v16 = vadd.f32 %v3794_v58, %v1315_v49  ;;  %v1325_v49 = vunpack.c.h.bf16 %v5269_v3 }
 0x4c0   :  { %4284 = vmatpush3.bf16.msra.mxu0 %v4606_v5 }
 0x4c1   :  { %v3795_v55 = vpop.f32.mrb[100].mxu1  ;;  %v1499_v54 = vpack.c.bf16 %v1432_v16, %v1429_v48  ;;  %v5351_v16 = vpop.permute.xlu0 %1276 }
 0x4c2   :  { %v3796_v51 = vpop.f32.mrb[101].mxu1 }
 0x4c3   :  { %v3797_v57 = vadd.f32 %v3796_v51, %v3795_v55  ;;  %v3798_v11 = vpop.f32.mrb[102].mxu1  ;;  %4253 = vmatprep.mubr.bf16.mxu0 %v1499_v54  ;;  %v5355_v55 = vmul.f32 %v5317_v63, %v5351_v16 }
 0x4c4   :  { %v3799_v30 = vpop.f32.mrb[103].mxu1 }
 0x4c5   :  { %v1437_v8 = vadd.f32 %v3797_v57, %v1316_v56  ;;  %v3800_v13 = vadd.f32 %v3799_v30, %v3798_v11  ;;  %v1281_v51 = vpack.c.bf16 %v5355_v55, %v5348_v39  ;;  %v1326_v11 = vunpack.c.l.bf16 %v5287_v53 }
 0x4c7   :  { %v1440_v0 = vadd.f32 %v3800_v13, %v1317_v60  ;;  %v1327_v13 = vunpack.c.h.bf16 %v5287_v53  ;;  %v5366_v53 = vld [vmem:[%s5723_s3 + $0x1] ss:$0 sm:$0xff] }
 0x4c9   :  { %v3801_v7 = vpop.f32.mrb[104].mxu1  ;;  %v1500_v17 = vpack.c.bf16 %v1440_v0, %v1437_v8 }
 0x4ca   :  { %v3802_v18 = vpop.f32.mrb[105].mxu1 }
 0x4cb   :  { %v3803_v19 = vadd.f32 %v3802_v18, %v3801_v7  ;;  %v3804_v22 = vpop.f32.mrb[106].mxu1  ;;  %4254 = vmatmul.mubr.bf16.gmra.mrb[84].mxu0 %v1500_v17 }
 0x4cc   :  { %v3805_v23 = vpop.f32.mrb[107].mxu1 }
 0x4cd   :  { %v1445_v24 = vadd.f32 %v3803_v19, %v1318_v62  ;;  %v3806_v10 = vadd.f32 %v3805_v23, %v3804_v22  ;;  %v1328_v62 = vunpack.c.l.bf16 %v5285_v50 }
 0x4cf   :  { %v1448_v15 = vadd.f32 %v3806_v10, %v1319_v21  ;;  %v1329_v21 = vunpack.c.h.bf16 %v5285_v50 }
 0x4d1   :  { %v3807_v6 = vpop.f32.mrb[108].mxu1  ;;  %v1501_v2 = vpack.c.bf16 %v1448_v15, %v1445_v24 }
 0x4d2   :  { %v3808_v25 = vpop.f32.mrb[109].mxu1 }
 0x4d3   :  { %v3809_v27 = vadd.f32 %v3808_v25, %v3807_v6  ;;  %v3810_v28 = vpop.f32.mrb[110].mxu1  ;;  %4257 = vmatprep.mubr.bf16.mxu0 %v1501_v2 }
 0x4d4   :  { %v3811_v29 = vpop.f32.mrb[111].mxu1 }
 0x4d5   :  { %v1453_v32 = vadd.f32 %v3809_v27, %v1320_v61  ;;  %v3812_v4 = vadd.f32 %v3811_v29, %v3810_v28 }
 0x4d7   :  { %v1456_v34 = vadd.f32 %v3812_v4, %v1321_v33 }
 0x4d9   :  { %v3813_v35 = vpop.f32.mrb[112].mxu1  ;;  %v1502_v36 = vpack.c.bf16 %v1456_v34, %v1453_v32 }
 0x4da   :  { %v3814_v12 = vpop.f32.mrb[113].mxu1 }
 0x4db   :  { %v3815_v41 = vadd.f32 %v3814_v12, %v3813_v35  ;;  %v3816_v20 = vpop.f32.mrb[114].mxu1  ;;  %4258 = vmatmul.mubr.bf16.gmra.mrb[88].mxu0 %v1502_v36 }
 0x4dc   :  { %v3817_v37 = vpop.f32.mrb[115].mxu1 }
 0x4dd   :  { %v1461_v38 = vadd.f32 %v3815_v41, %v1322_v1  ;;  %v3818_v42 = vadd.f32 %v3817_v37, %v3816_v20 }
 0x4df   :  { %v1464_v43 = vadd.f32 %v3818_v42, %v1323_v40 }
 0x4e1   :  { %v3819_v26 = vpop.f32.mrb[116].mxu1  ;;  %v1503_v45 = vpack.c.bf16 %v1464_v43, %v1461_v38 }
 0x4e2   :  { %v3820_v46 = vpop.f32.mrb[117].mxu1 }
 0x4e3   :  { %v3821_v31 = vadd.f32 %v3820_v46, %v3819_v26  ;;  %v3822_v47 = vpop.f32.mrb[118].mxu1  ;;  %4261 = vmatprep.mubr.bf16.mxu0 %v1503_v45 }
 0x4e4   :  { %v3823_v9 = vpop.f32.mrb[119].mxu1 }
 0x4e5   :  { %v1469_v48 = vadd.f32 %v3821_v31, %v1324_v52  ;;  %v3824_v58 = vadd.f32 %v3823_v9, %v3822_v47 }
 0x4e7   :  { %v1472_v54 = vadd.f32 %v3824_v58, %v1325_v49 }
 0x4e9   :  { %v3825_v56 = vpop.f32.mrb[120].mxu1  ;;  %v1504_v57 = vpack.c.bf16 %v1472_v54, %v1469_v48 }
 0x4ea   :  { %v3826_v59 = vpop.f32.mrb[121].mxu1 }
 0x4eb   :  { %v3827_v30 = vadd.f32 %v3826_v59, %v3825_v56  ;;  %v3828_v3 = vpop.f32.mrb[122].mxu1  ;;  %4262 = vmatmul.mubr.bf16.gmra.mrb[92].mxu0 %v1504_v57 }
 0x4ec   :  { %v3829_v8 = vpop.f32.mrb[123].mxu1 }
 0x4ed   :  { %v1477_v60 = vadd.f32 %v3827_v30, %v1326_v11  ;;  %v3830_v0 = vadd.f32 %v3829_v8, %v3828_v3 }
 0x4ef   :  { %v1480_v63 = vadd.f32 %v3830_v0, %v1327_v13 }
 0x4f1   :  { %v3831_v7 = vpop.f32.mrb[124].mxu1  ;;  %v1505_v17 = vpack.c.bf16 %v1480_v63, %v1477_v60 }
 0x4f2   :  { %v3832_v18 = vpop.f32.mrb[125].mxu1 }
 0x4f3   :  { %v3833_v19 = vadd.f32 %v3832_v18, %v3831_v7  ;;  %v3834_v22 = vpop.f32.mrb[126].mxu1  ;;  %4265 = vmatprep.mubr.bf16.mxu0 %v1505_v17 }
 0x4f4   :  { %v3835_v23 = vpop.f32.mrb[127].mxu1 }
 0x4f5   :  { %v1485_v24 = vadd.f32 %v3833_v19, %v1328_v62  ;;  %v3836_v10 = vadd.f32 %v3835_v23, %v3834_v22 }
 0x4f7   :  { %v1488_v15 = vadd.f32 %v3836_v10, %v1329_v21 }
 0x4f9   :  { %v1506_v6 = vpack.c.bf16 %v1488_v15, %v1485_v24 }
 0x4fb   :  { %4266 = vmatmul.mubr.bf16.gmra.mrb[96].mxu0 %v1506_v6 }
 0x55e   :  { %v4239_v2 = vpop.f32.mrb[68].mxu0 }
 0x55f   :  { %v1623_v25 = vadd.f32 %v4239_v2, %v5366_v53  ;;  %v1614_v61 = vpop.f32.mrb[69].mxu0 }
 0x560   :  { %v1615_v27 = vadd.f32 %v5366_v53, %v1614_v61  ;;  %v4240_v28 = vpop.f32.mrb[70].mxu0 }
 0x561   :  { %v1626_v29 = vadd.f32 %v4240_v28, %v5366_v53  ;;  %v1617_v32 = vpop.f32.mrb[71].mxu0  ;;  %v1743_v33 = vmax.f32 %v1623_v25, 0.0 }
 0x562   :  { %v1618_v50 = vadd.f32 %v5366_v53, %v1617_v32  ;;  %v1741_v34 = vmax.f32 %v1615_v27, 0.0 }
 0x563   :  { %v1744_v4 = vmax.f32 %v1626_v29, 0.0 }
 0x564   :  { %v1742_v35 = vmax.f32 %v1618_v50, 0.0 }
 0x565   :  { %v1774_v36 = vpack.c.bf16 %v1744_v4, %v1743_v33 }
 0x566   :  { %v1773_v12 = vpack.c.bf16 %v1742_v35, %v1741_v34 }
 0x568   :  { %4285 = vmatprep.mubr.bf16.mxu0 %v1773_v12 }
 0x569   :  { %4286 = vmatmul.mubr.bf16.vlgmr.msra.gmra.mrb[100].mxu0 %v1774_v36 }
 0x56e   :  { %v4243_v1 = vpop.f32.mrb[72].mxu0 }
 0x56f   :  { %v1639_v41 = vadd.f32 %v4243_v1, %v5366_v53  ;;  %v1630_v20 = vpop.f32.mrb[73].mxu0 }
 0x570   :  { %v1631_v37 = vadd.f32 %v5366_v53, %v1630_v20  ;;  %v4244_v38 = vpop.f32.mrb[74].mxu0 }
 0x571   :  { %v1642_v40 = vadd.f32 %v4244_v38, %v5366_v53  ;;  %v1633_v42 = vpop.f32.mrb[75].mxu0  ;;  %v1747_v44 = vmax.f32 %v1639_v41, 0.0 }
 0x572   :  { %v1634_v43 = vadd.f32 %v5366_v53, %v1633_v42  ;;  %v1745_v45 = vmax.f32 %v1631_v37, 0.0 }
 0x573   :  { %v1748_v26 = vmax.f32 %v1642_v40, 0.0 }
 0x574   :  { %v1746_v46 = vmax.f32 %v1634_v43, 0.0 }
 0x575   :  { %v1776_v52 = vpack.c.bf16 %v1748_v26, %v1747_v44 }
 0x576   :  { %v1775_v31 = vpack.c.bf16 %v1746_v46, %v1745_v45 }
 0x578   :  { %4289 = vmatprep.mubr.bf16.mxu0 %v1775_v31 }
 0x579   :  { %4290 = vmatmul.mubr.bf16.gmra.mrb[104].mxu0 %v1776_v52 }
 0x57e   :  { %v4247_v47 = vpop.f32.mrb[76].mxu0 }
 0x57f   :  { %v1655_v5 = vadd.f32 %v4247_v47, %v5366_v53  ;;  %v1646_v9 = vpop.f32.mrb[77].mxu0 }
 0x580   :  { %v1647_v48 = vadd.f32 %v5366_v53, %v1646_v9  ;;  %v4248_v49 = vpop.f32.mrb[78].mxu0 }
 0x581   :  { %v1658_v58 = vadd.f32 %v4248_v49, %v5366_v53  ;;  %v1649_v54 = vpop.f32.mrb[79].mxu0  ;;  %v1751_v57 = vmax.f32 %v1655_v5, 0.0 }
 0x582   :  { %v1650_v56 = vadd.f32 %v5366_v53, %v1649_v54  ;;  %v1749_v11 = vmax.f32 %v1647_v48, 0.0 }
 0x583   :  { %v1752_v59 = vmax.f32 %v1658_v58, 0.0 }
 0x584   :  { %v1750_v30 = vmax.f32 %v1650_v56, 0.0 }
 0x585   :  { %v1778_v3 = vpack.c.bf16 %v1752_v59, %v1751_v57 }
 0x586   :  { %v1777_v8 = vpack.c.bf16 %v1750_v30, %v1749_v11 }
 0x588   :  { %4293 = vmatprep.mubr.bf16.mxu0 %v1777_v8 }
 0x589   :  { %4294 = vmatmul.mubr.bf16.gmra.mrb[108].mxu0 %v1778_v3 }
 0x58e   :  { %v4251_v60 = vpop.f32.mrb[80].mxu0 }
 0x58f   :  { %v1671_v13 = vadd.f32 %v4251_v60, %v5366_v53  ;;  %v1662_v0 = vpop.f32.mrb[81].mxu0 }
 0x590   :  { %v1663_v63 = vadd.f32 %v5366_v53, %v1662_v0  ;;  %v4252_v7 = vpop.f32.mrb[82].mxu0 }
 0x591   :  { %v1674_v17 = vadd.f32 %v4252_v7, %v5366_v53  ;;  %v1665_v18 = vpop.f32.mrb[83].mxu0  ;;  %v1755_v19 = vmax.f32 %v1671_v13, 0.0 }
 0x592   :  { %v1666_v62 = vadd.f32 %v5366_v53, %v1665_v18  ;;  %v1753_v23 = vmax.f32 %v1663_v63, 0.0 }
 0x593   :  { %v1756_v22 = vmax.f32 %v1674_v17, 0.0 }
 0x594   :  { %v1754_v24 = vmax.f32 %v1666_v62, 0.0 }
 0x595   :  { %v1780_v21 = vpack.c.bf16 %v1756_v22, %v1755_v19 }
 0x596   :  { %v1779_v10 = vpack.c.bf16 %v1754_v24, %v1753_v23 }
 0x598   :  { %4297 = vmatprep.mubr.bf16.mxu0 %v1779_v10  ;;  %v4921_v10 = vmov 0.0  }
 0x599   :  { %4298 = vmatmul.mubr.bf16.gmra.mrb[112].mxu0 %v1780_v21  ;;  %v4607_v21 = vld [vmem:[#allocation10 + $0x40] sm:$0xff]   ;;  %4317 = vmatprep.subr.bf16.mxu0 %v4921_v10 }
 0x59a   :  { %4318 = vmatpush3.bf16.msra.mxu0 %v4607_v21 }
 0x59b   :  { %4319 = vmatprep.subr.bf16.mxu0 %v4921_v10 }
 0x59e   :  { %v4255_v15 = vpop.f32.mrb[84].mxu0 }
 0x59f   :  { %v1687_v6 = vadd.f32 %v4255_v15, %v5366_v53  ;;  %v1678_v2 = vpop.f32.mrb[85].mxu0  ;;  %v4608_v15 = vld [vmem:[#allocation10 + $0x48] sm:$0xff]  }
 0x5a0   :  { %v1679_v25 = vadd.f32 %v5366_v53, %v1678_v2  ;;  %v4256_v61 = vpop.f32.mrb[86].mxu0  ;;  %4320 = vmatpush3.bf16.msra.mxu0 %v4608_v15  ;;  %v4611_v2 = vld [vmem:[#allocation10 + $0x60] sm:$0xff]  }
 0x5a1   :  { %v1690_v27 = vadd.f32 %v4256_v61, %v5366_v53  ;;  %v1681_v28 = vpop.f32.mrb[87].mxu0  ;;  %v1759_v32 = vmax.f32 %v1687_v6, 0.0  ;;  %4321 = vmatprep.subr.bf16.mxu0 %v4921_v10  ;;  %v4610_v6 = vld [vmem:[#allocation10 + $0x58] sm:$0xff]   ;;  %v4613_v61 = vld [vmem:[#allocation10 + $0x70] sm:$0xff]  }
 0x5a2   :  { %v1682_v29 = vadd.f32 %v5366_v53, %v1681_v28  ;;  %v1757_v33 = vmax.f32 %v1679_v25, 0.0  ;;  %v4612_v25 = vld [vmem:[#allocation10 + $0x68] sm:$0xff]   ;;  %v5411_v28 = vld [vmem:[%s5725_s5 + $0x1] ss:$0 sm:$0xff] }
 0x5a3   :  { %v1760_v50 = vmax.f32 %v1690_v27, 0.0  ;;  %v4614_v27 = vld [vmem:[#allocation10 + $0x78] sm:$0xff]  }
 0x5a4   :  { %v1758_v4 = vmax.f32 %v1682_v29, 0.0 }
 0x5a5   :  { %v1782_v34 = vpack.c.bf16 %v1760_v50, %v1759_v32 }
 0x5a6   :  { %v1781_v35 = vpack.c.bf16 %v1758_v4, %v1757_v33 }
 0x5a8   :  { %4301 = vmatprep.mubr.bf16.mxu0 %v1781_v35 }
 0x5a9   :  { %4302 = vmatmul.mubr.bf16.gmra.mrb[116].mxu0 %v1782_v34 }
 0x5ae   :  { %v4259_v36 = vpop.f32.mrb[88].mxu0 }
 0x5af   :  { %v1703_v12 = vadd.f32 %v4259_v36, %v5366_v53  ;;  %v1694_v1 = vpop.f32.mrb[89].mxu0 }
 0x5b0   :  { %v1695_v41 = vadd.f32 %v5366_v53, %v1694_v1  ;;  %v4260_v20 = vpop.f32.mrb[90].mxu0 }
 0x5b1   :  { %v1706_v37 = vadd.f32 %v4260_v20, %v5366_v53  ;;  %v1697_v38 = vpop.f32.mrb[91].mxu0  ;;  %v1763_v42 = vmax.f32 %v1703_v12, 0.0 }
 0x5b2   :  { %v1698_v40 = vadd.f32 %v5366_v53, %v1697_v38  ;;  %v1761_v44 = vmax.f32 %v1695_v41, 0.0 }
 0x5b3   :  { %v1764_v43 = vmax.f32 %v1706_v37, 0.0 }
 0x5b4   :  { %v1762_v26 = vmax.f32 %v1698_v40, 0.0 }
 0x5b5   :  { %v1784_v45 = vpack.c.bf16 %v1764_v43, %v1763_v42 }
 0x5b6   :  { %v1783_v46 = vpack.c.bf16 %v1762_v26, %v1761_v44 }
 0x5b8   :  { %4305 = vmatprep.mubr.bf16.mxu0 %v1783_v46 }
 0x5b9   :  { %4306 = vmatmul.mubr.bf16.gmra.mrb[120].mxu0 %v1784_v45 }
 0x5be   :  { %v4263_v52 = vpop.f32.mrb[92].mxu0 }
 0x5bf   :  { %v1719_v31 = vadd.f32 %v4263_v52, %v5366_v53  ;;  %v1710_v47 = vpop.f32.mrb[93].mxu0 }
 0x5c0   :  { %v1711_v5 = vadd.f32 %v5366_v53, %v1710_v47  ;;  %v4264_v9 = vpop.f32.mrb[94].mxu0 }
 0x5c1   :  { %v1722_v48 = vadd.f32 %v4264_v9, %v5366_v53  ;;  %v1713_v49 = vpop.f32.mrb[95].mxu0  ;;  %v1767_v54 = vmax.f32 %v1719_v31, 0.0 }
 0x5c2   :  { %v1714_v58 = vadd.f32 %v5366_v53, %v1713_v49  ;;  %v1765_v57 = vmax.f32 %v1711_v5, 0.0 }
 0x5c3   :  { %v1768_v56 = vmax.f32 %v1722_v48, 0.0 }
 0x5c4   :  { %v1766_v59 = vmax.f32 %v1714_v58, 0.0 }
 0x5c5   :  { %v1786_v11 = vpack.c.bf16 %v1768_v56, %v1767_v54 }
 0x5c6   :  { %v1785_v30 = vpack.c.bf16 %v1766_v59, %v1765_v57 }
 0x5c8   :  { %4309 = vmatprep.mubr.bf16.mxu0 %v1785_v30 }
 0x5c9   :  { %4310 = vmatmul.mubr.bf16.gmra.mrb[124].mxu0 %v1786_v11 }
 0x5ce   :  { %v4267_v3 = vpop.f32.mrb[96].mxu0 }
 0x5cf   :  { %v1735_v8 = vadd.f32 %v4267_v3, %v5366_v53  ;;  %v1726_v60 = vpop.f32.mrb[97].mxu0 }
 0x5d0   :  { %v1727_v13 = vadd.f32 %v5366_v53, %v1726_v60  ;;  %v4268_v0 = vpop.f32.mrb[98].mxu0 }
 0x5d1   :  { %v1738_v63 = vadd.f32 %v4268_v0, %v5366_v53  ;;  %v1729_v7 = vpop.f32.mrb[99].mxu0  ;;  %v1771_v18 = vmax.f32 %v1735_v8, 0.0 }
 0x5d2   :  { %v1730_v17 = vadd.f32 %v5366_v53, %v1729_v7  ;;  %v1769_v19 = vmax.f32 %v1727_v13, 0.0  ;;  %v4609_v53 = vld [vmem:[#allocation10 + $0x50] sm:$0xff]  }
 0x5d3   :  { %v1772_v62 = vmax.f32 %v1738_v63, 0.0  ;;  %4322 = vmatpush3.bf16.msra.mxu0 %v4609_v53 }
 0x5d4   :  { %v1770_v22 = vmax.f32 %v1730_v17, 0.0  ;;  %4323 = vmatprep.subr.bf16.mxu0 %v4921_v10 }
 0x5d5   :  { %v1788_v23 = vpack.c.bf16 %v1772_v62, %v1771_v18 }
 0x5d6   :  { %v1787_v24 = vpack.c.bf16 %v1770_v22, %v1769_v19 }
 0x5d7   :  { %4324 = vmatpush3.bf16.msra.mxu0 %v4610_v6 }
 0x5d8   :  { %4313 = vmatprep.mubr.bf16.mxu0 %v1787_v24  ;;  %4325 = vmatprep.subr.bf16.mxu0 %v4921_v10 }
 0x5d9   :  { %4314 = vmatmul.mubr.bf16.gmra.mrb[128].mxu0 %v1788_v23 }
 0x5da   :  { %4333 = vmatprep.mubr.msk.bf16.mxu0 %vm4922_vm0, %v4921_v10 }
 0x5db   :  { %4326 = vmatpush3.bf16.msra.mxu0 %v4611_v2 }
 0x5dc   :  { %4327 = vmatprep.subr.bf16.mxu0 %v4921_v10 }
 0x5df   :  { %4328 = vmatpush3.bf16.msra.mxu0 %v4612_v25 }
 0x5e0   :  { %4329 = vmatprep.subr.bf16.mxu0 %v4921_v10 }
 0x5e3   :  { %4330 = vmatpush3.bf16.msra.mxu0 %v4613_v61 }
 0x5e4   :  { %4331 = vmatprep.subr.bf16.mxu0 %v4921_v10 }
 0x5e7   :  { %4332 = vmatpush3.bf16.msra.mxu0 %v4614_v27 }
 0x63c   :  { %v4287_v29 = vpop.f32.mrb[100].mxu0 }
 0x63d   :  { %v1905_v32 = vadd.f32 %v4287_v29, %v5411_v28  ;;  %v1896_v50 = vpop.f32.mrb[101].mxu0 }
 0x63e   :  { %v1897_v33 = vadd.f32 %v5411_v28, %v1896_v50  ;;  %v4288_v4 = vpop.f32.mrb[102].mxu0 }
 0x63f   :  { %v1908_v34 = vadd.f32 %v4288_v4, %v5411_v28  ;;  %v1899_v35 = vpop.f32.mrb[103].mxu0  ;;  %v2025_v12 = vmax.f32 %v1905_v32, 0.0 }
 0x640   :  { %v1900_v36 = vadd.f32 %v5411_v28, %v1899_v35  ;;  %v2023_v41 = vmax.f32 %v1897_v33, 0.0 }
 0x641   :  { %v2026_v1 = vmax.f32 %v1908_v34, 0.0 }
 0x642   :  { %v2024_v20 = vmax.f32 %v1900_v36, 0.0 }
 0x643   :  { %v5417_v37 = vpack.c.bf16 %v2026_v1, %v2025_v12 }
 0x644   :  { %v5419_v38 = vpack.c.bf16 %v2024_v20, %v2023_v41 }
 0x64c   :  { %v4291_v40 = vpop.f32.mrb[104].mxu0 }
 0x64d   :  { %v1921_v42 = vadd.f32 %v4291_v40, %v5411_v28  ;;  %v1912_v43 = vpop.f32.mrb[105].mxu0 }
 0x64e   :  { %v1913_v44 = vadd.f32 %v5411_v28, %v1912_v43  ;;  %v4292_v26 = vpop.f32.mrb[106].mxu0 }
 0x64f   :  { %v1924_v45 = vadd.f32 %v4292_v26, %v5411_v28  ;;  %v1915_v46 = vpop.f32.mrb[107].mxu0  ;;  %v2029_v31 = vmax.f32 %v1921_v42, 0.0 }
 0x650   :  { %v1916_v52 = vadd.f32 %v5411_v28, %v1915_v46  ;;  %v2027_v5 = vmax.f32 %v1913_v44, 0.0 }
 0x651   :  { %v2030_v47 = vmax.f32 %v1924_v45, 0.0 }
 0x652   :  { %v2028_v9 = vmax.f32 %v1916_v52, 0.0 }
 0x653   :  { %v5425_v48 = vpack.c.bf16 %v2030_v47, %v2029_v31 }
 0x654   :  { %v5427_v49 = vpack.c.bf16 %v2028_v9, %v2027_v5 }
 0x65c   :  { %v4295_v58 = vpop.f32.mrb[108].mxu0 }
 0x65d   :  { %v1937_v54 = vadd.f32 %v4295_v58, %v5411_v28  ;;  %v1928_v56 = vpop.f32.mrb[109].mxu0 }
 0x65e   :  { %v1929_v57 = vadd.f32 %v5411_v28, %v1928_v56  ;;  %v4296_v59 = vpop.f32.mrb[110].mxu0 }
 0x65f   :  { %v1940_v11 = vadd.f32 %v4296_v59, %v5411_v28  ;;  %v1931_v30 = vpop.f32.mrb[111].mxu0  ;;  %v2033_v8 = vmax.f32 %v1937_v54, 0.0 }
 0x660   :  { %v1932_v3 = vadd.f32 %v5411_v28, %v1931_v30  ;;  %v2031_v13 = vmax.f32 %v1929_v57, 0.0 }
 0x661   :  { %v2034_v60 = vmax.f32 %v1940_v11, 0.0 }
 0x662   :  { %v2032_v0 = vmax.f32 %v1932_v3, 0.0 }
 0x663   :  { %v5435_v63 = vpack.c.bf16 %v2034_v60, %v2033_v8 }
 0x664   :  { %v5437_v7 = vpack.c.bf16 %v2032_v0, %v2031_v13 }
 0x66c   :  { %v4299_v17 = vpop.f32.mrb[112].mxu0 }
 0x66d   :  { %v1953_v18 = vadd.f32 %v4299_v17, %v5411_v28  ;;  %v1944_v62 = vpop.f32.mrb[113].mxu0 }
 0x66e   :  { %v1945_v19 = vadd.f32 %v5411_v28, %v1944_v62  ;;  %v4300_v22 = vpop.f32.mrb[114].mxu0 }
 0x66f   :  { %v1956_v23 = vadd.f32 %v4300_v22, %v5411_v28  ;;  %v1947_v24 = vpop.f32.mrb[115].mxu0  ;;  %v2037_v15 = vmax.f32 %v1953_v18, 0.0 }
 0x670   :  { %v1948_v21 = vadd.f32 %v5411_v28, %v1947_v24  ;;  %v2035_v6 = vmax.f32 %v1945_v19, 0.0 }
 0x671   :  { %v2038_v53 = vmax.f32 %v1956_v23, 0.0 }
 0x672   :  { %v2036_v2 = vmax.f32 %v1948_v21, 0.0 }
 0x673   :  { %v5443_v25 = vpack.c.bf16 %v2038_v53, %v2037_v15 }
 0x674   :  { %v5445_v61 = vpack.c.bf16 %v2036_v2, %v2035_v6 }
 0x67c   :  { %v4303_v27 = vpop.f32.mrb[116].mxu0 }
 0x67d   :  { %v1969_v29 = vadd.f32 %v4303_v27, %v5411_v28  ;;  %v1960_v32 = vpop.f32.mrb[117].mxu0 }
 0x67e   :  { %v1961_v50 = vadd.f32 %v5411_v28, %v1960_v32  ;;  %v4304_v33 = vpop.f32.mrb[118].mxu0 }
 0x67f   :  { %v1972_v4 = vadd.f32 %v4304_v33, %v5411_v28  ;;  %v1963_v34 = vpop.f32.mrb[119].mxu0  ;;  %v2041_v36 = vmax.f32 %v1969_v29, 0.0 }
 0x680   :  { %v1964_v35 = vadd.f32 %v5411_v28, %v1963_v34  ;;  %v2039_v1 = vmax.f32 %v1961_v50, 0.0 }
 0x681   :  { %v2042_v12 = vmax.f32 %v1972_v4, 0.0 }
 0x682   :  { %v2040_v41 = vmax.f32 %v1964_v35, 0.0  ;;  %v4615_v35 = vld [vmem:[#allocation10] sm:$0xff]  }
 0x683   :  { %v5451_v20 = vpack.c.bf16 %v2042_v12, %v2041_v36  ;;  %v4616_v36 = vld [vmem:[#allocation10 + $0x8] sm:$0xff]   ;;  %v4617_v12 = vld [vmem:[#allocation10 + $0x10] sm:$0xff]  }
 0x684   :  { %v5453_v40 = vpack.c.bf16 %v2040_v41, %v2039_v1  ;;  %v4618_v1 = vld [vmem:[#allocation10 + $0x18] sm:$0xff]   ;;  %v4619_v41 = vld [vmem:[#allocation10 + $0x20] sm:$0xff]  }
 0x686   :  { %3885 = vmatprep.subr.bf16.mxu1 %v5453_v40  ;;  %3925 = vmatprep.subr.bf16.mxu0 %v5453_v40 }
 0x687   :  { %3886 = vmatpush3.bf16.msra.mxu1 %v5419_v38 }
 0x688   :  { %3887 = vmatprep.subr.bf16.mxu1 %v5451_v20 }
 0x68b   :  { %3888 = vmatpush3.bf16.msra.mxu1 %v5417_v37 }
 0x68c   :  { %v4307_v42 = vpop.f32.mrb[120].mxu0 }
 0x68d   :  { %v1985_v43 = vadd.f32 %v4307_v42, %v5411_v28  ;;  %v1976_v44 = vpop.f32.mrb[121].mxu0  ;;  %v4620_v42 = vld [vmem:[#allocation10 + $0x28] sm:$0xff]  }
 0x68e   :  { %v1977_v26 = vadd.f32 %v5411_v28, %v1976_v44  ;;  %v4308_v45 = vpop.f32.mrb[122].mxu0  ;;  %v4622_v44 = vld [vmem:[#allocation10 + $0x38] sm:$0xff]  }
 0x68f   :  { %v1988_v46 = vadd.f32 %v4308_v45, %v5411_v28  ;;  %v1979_v52 = vpop.f32.mrb[123].mxu0  ;;  %v2045_v47 = vmax.f32 %v1985_v43, 0.0  ;;  %v4621_v43 = vld [vmem:[#allocation10 + $0x30] sm:$0xff]  }
 0x690   :  { %v1980_v31 = vadd.f32 %v5411_v28, %v1979_v52  ;;  %v2043_v9 = vmax.f32 %v1977_v26, 0.0 }
 0x691   :  { %v2046_v5 = vmax.f32 %v1988_v46, 0.0 }
 0x692   :  { %v2044_v58 = vmax.f32 %v1980_v31, 0.0 }
 0x693   :  { %v5464_v54 = vpack.c.bf16 %v2046_v5, %v2045_v47 }
 0x694   :  { %v5466_v56 = vpack.c.bf16 %v2044_v58, %v2043_v9 }
 0x696   :  { %3889 = vmatprep.subr.bf16.mxu1 %v5466_v56 }
 0x697   :  { %3890 = vmatpush3.bf16.msra.mxu1 %v5427_v49 }
 0x698   :  { %3891 = vmatprep.subr.bf16.mxu1 %v5464_v54 }
 0x69b   :  { %3892 = vmatpush3.bf16.msra.mxu1 %v5425_v48 }
 0x69c   :  { %v4311_v57 = vpop.f32.mrb[124].mxu0 }
 0x69d   :  { %v2001_v59 = vadd.f32 %v4311_v57, %v5411_v28  ;;  %v1992_v11 = vpop.f32.mrb[125].mxu0  ;;  %v4712_v57 = vld [vmem:[#allocation2 + $0x4] ss:$8 sps:$4 sm:$0xff]  }
 0x69e   :  { %v1993_v30 = vadd.f32 %v5411_v28, %v1992_v11  ;;  %v4312_v3 = vpop.f32.mrb[126].mxu0  ;;  %v4713_v11 = vld [vmem:[#allocation2] ss:$8 sps:$4 sm:$0xff]  }
 0x69f   :  { %v2004_v8 = vadd.f32 %v4312_v3, %v5411_v28  ;;  %v1995_v60 = vpop.f32.mrb[127].mxu0  ;;  %v2049_v0 = vmax.f32 %v2001_v59, 0.0  ;;  %v4715_v3 = vld [vmem:[#allocation2 + $0x10] ss:$8 sps:$4 sm:$0xff]  }
 0x6a0   :  { %v1996_v13 = vadd.f32 %v5411_v28, %v1995_v60  ;;  %v2047_v18 = vmax.f32 %v1993_v30, 0.0  ;;  %v4714_v30 = vld [vmem:[#allocation2 + $0x14] ss:$8 sps:$4 sm:$0xff]   ;;  %v4717_v60 = vld [vmem:[#allocation2 + $0x20] ss:$8 sps:$4 sm:$0xff]  }
 0x6a1   :  { %v2050_v17 = vmax.f32 %v2004_v8, 0.0  ;;  %v4716_v8 = vld [vmem:[#allocation2 + $0x24] ss:$8 sps:$4 sm:$0xff]  }
 0x6a2   :  { %v2048_v62 = vmax.f32 %v1996_v13, 0.0  ;;  %v4718_v13 = vld [vmem:[#allocation2 + $0x34] ss:$8 sps:$4 sm:$0xff]  }
 0x6a3   :  { %v5476_v19 = vpack.c.bf16 %v2050_v17, %v2049_v0  ;;  %v4719_v0 = vld [vmem:[#allocation2 + $0x30] ss:$8 sps:$4 sm:$0xff]   ;;  %v4720_v17 = vld [vmem:[#allocation2 + $0x44] ss:$8 sps:$4 sm:$0xff]  }
 0x6a4   :  { %v5478_v22 = vpack.c.bf16 %v2048_v62, %v2047_v18  ;;  %v4721_v18 = vld [vmem:[#allocation2 + $0x40] ss:$8 sps:$4 sm:$0xff]   ;;  %v4722_v62 = vld [vmem:[#allocation2 + $0x54] ss:$8 sps:$4 sm:$0xff]  }
 0x6a6   :  { %3893 = vmatprep.subr.bf16.mxu1 %v5478_v22 }
 0x6a7   :  { %3894 = vmatpush3.bf16.msra.mxu1 %v5437_v7 }
 0x6a8   :  { %3895 = vmatprep.subr.bf16.mxu1 %v5476_v19 }
 0x6ab   :  { %3896 = vmatpush3.bf16.msra.mxu1 %v5435_v63 }
 0x6ac   :  { %v4315_v23 = vpop.f32.mrb[128].mxu0 }
 0x6ad   :  { %v2017_v24 = vadd.f32 %v4315_v23, %v5411_v28  ;;  %v2008_v21 = vpop.f32.mrb[129].mxu0  ;;  %v4723_v23 = vld [vmem:[#allocation2 + $0x50] ss:$8 sps:$4 sm:$0xff]  }
 0x6ae   :  { %v2009_v15 = vadd.f32 %v5411_v28, %v2008_v21  ;;  %v4316_v53 = vpop.f32.mrb[130].mxu0  ;;  %v4725_v21 = vld [vmem:[#allocation2 + $0x60] ss:$8 sps:$4 sm:$0xff]  }
 0x6af   :  { %v2020_v6 = vadd.f32 %v4316_v53, %v5411_v28  ;;  %v2011_v2 = vpop.f32.mrb[131].mxu0  ;;  %v2053_v29 = vmax.f32 %v2017_v24, 0.0  ;;  %v4724_v24 = vld [vmem:[#allocation2 + $0x64] ss:$8 sps:$4 sm:$0xff]  }
 0x6b0   :  { %v2012_v27 = vadd.f32 %v5411_v28, %v2011_v2  ;;  %v2051_v50 = vmax.f32 %v2009_v15, 0.0  ;;  %v4711_v28 = vld [vmem:[%s5726_s6] ss:$8 sps:$4 sm:$0xff]   ;;  %v4726_v15 = vld [vmem:[#allocation2 + $0x74] ss:$8 sps:$4 sm:$0xff]  }
 0x6b1   :  { %v2054_v32 = vmax.f32 %v2020_v6, 0.0  ;;  %v4623_v53 = vld [vmem:[#allocation7 + $0x80] sm:$0xff]   ;;  %v4624_v6 = vld [vmem:[#allocation7 + $0x88] sm:$0xff]   ;;  %v4727_v2 = vld [vmem:[#allocation2 + $0x70] ss:$8 sps:$4 sm:$0xff]  }
 0x6b2   :  { %v2052_v33 = vmax.f32 %v2012_v27, 0.0  ;;  %v4728_v27 = vld [vmem:[#allocation2 + $0x84] ss:$8 sps:$4 sm:$0xff]  }
 0x6b3   :  { %v5488_v4 = vpack.c.bf16 %v2054_v32, %v2053_v29  ;;  %v4625_v29 = vld [vmem:[#allocation7 + $0x90] sm:$0xff]   ;;  %v4626_v32 = vld [vmem:[#allocation7 + $0x98] sm:$0xff]  }
 0x6b4   :  { %v5490_v34 = vpack.c.bf16 %v2052_v33, %v2051_v50  ;;  %v4729_v50 = vld [vmem:[#allocation2 + $0x80] ss:$8 sps:$4 sm:$0xff]   ;;  %v4730_v33 = vld [vmem:[#allocation2 + $0x94] ss:$8 sps:$4 sm:$0xff]  }
 0x6b6   :  { %3897 = vmatprep.subr.bf16.mxu1 %v5490_v34 }
 0x6b7   :  { %3898 = vmatpush3.bf16.msra.mxu1 %v5445_v61 }
 0x6b8   :  { %3899 = vmatprep.subr.bf16.mxu1 %v5488_v4 }
 0x6bb   :  { %3900 = vmatpush3.bf16.msra.mxu1 %v5443_v25 }
 0x6bc   :  { %4337 = vmatprep.subr.bf16.mxu1 %v4921_v10 }
 0x6be   :  { %2104 = vmatmul.mubr.bf16.vlgmr.msra.gmra.mrb[128].mxu1 %v4711_v28  ;;  %v4732_v28 = vld [vmem:[#allocation2 + $0xa4] ss:$8 sps:$4 sm:$0xff]  }
 0x6bf   :  { %4338 = vmatpush3.bf16.msra.mxu1 %v4615_v35  ;;  %4353 = vmatprep.mubr.msk.bf16.mxu1 %vm4922_vm0, %v4921_v10  ;;  %v4731_v35 = vld [vmem:[#allocation2 + $0x90] ss:$8 sps:$4 sm:$0xff]  }
 0x6c0   :  { %4339 = vmatprep.subr.bf16.mxu1 %v4921_v10 }
 0x6c3   :  { %4340 = vmatpush3.bf16.msra.mxu1 %v4616_v36  ;;  %v4733_v36 = vld [vmem:[#allocation2 + $0xa0] ss:$8 sps:$4 sm:$0xff]  }
 0x6c4   :  { %4341 = vmatprep.subr.bf16.mxu1 %v4921_v10 }
 0x6c7   :  { %4342 = vmatpush3.bf16.msra.mxu1 %v4617_v12  ;;  %v4734_v12 = vld [vmem:[#allocation2 + $0xb4] ss:$8 sps:$4 sm:$0xff]  }
 0x6c8   :  { %4343 = vmatprep.subr.bf16.mxu1 %v4921_v10 }
 0x6cb   :  { %4344 = vmatpush3.bf16.msra.mxu1 %v4618_v1  ;;  %v4627_v1 = vld [vmem:[#allocation7 + $0xa0] sm:$0xff]  }
 0x6cc   :  { %4345 = vmatprep.subr.bf16.mxu1 %v4921_v10 }
 0x6cf   :  { %4346 = vmatpush3.bf16.msra.mxu1 %v4619_v41  ;;  %v4628_v41 = vld [vmem:[#allocation7 + $0xa8] sm:$0xff]  }
 0x6d0   :  { %4347 = vmatprep.subr.bf16.mxu1 %v4921_v10 }
 0x6d3   :  { %4348 = vmatpush3.bf16.msra.mxu1 %v4620_v42  ;;  %v4735_v42 = vld [vmem:[#allocation2 + $0xb0] ss:$8 sps:$4 sm:$0xff]  }
 0x6d4   :  { %4349 = vmatprep.subr.bf16.mxu1 %v4921_v10 }
 0x6d7   :  { %4350 = vmatpush3.bf16.msra.mxu1 %v4621_v43  ;;  %v4736_v43 = vld [vmem:[#allocation2 + $0xc4] ss:$8 sps:$4 sm:$0xff]  }
 0x6d8   :  { %4351 = vmatprep.subr.bf16.mxu1 %v4921_v10 }
 0x6db   :  { %4352 = vmatpush3.bf16.msra.mxu1 %v4622_v44  ;;  %v4629_v44 = vld [vmem:[#allocation7 + $0xb0] sm:$0xff]  }
 0x6dc   :  { %4357 = vmatprep.subr.bf16.mxu1 %v4623_v53 }
 0x6de   :  { %4354 = vmatmul.mubr.bf16.vlgmr.msra.gmra.mrb[132].mxu1 %v1281_v51 }
 0x6df   :  { %4358 = vmatpush3.bf16.msra.mxu1 %v4623_v53 }
 0x6e0   :  { %4359 = vmatprep.subr.bf16.mxu1 %v4624_v6 }
 0x6e3   :  { %4360 = vmatpush3.bf16.msra.mxu1 %v4624_v6 }
 0x6e4   :  { %4361 = vmatprep.subr.bf16.mxu1 %v4625_v29 }
 0x6e7   :  { %4362 = vmatpush3.bf16.msra.mxu1 %v4625_v29  ;;  %v2312_v29 = vunpack.c.l.bf16 %v5417_v37 }
 0x6e8   :  { %4363 = vmatprep.subr.bf16.mxu1 %v4626_v32 }
 0x6eb   :  { %4364 = vmatpush3.bf16.msra.mxu1 %v4626_v32  ;;  %v2313_v32 = vunpack.c.h.bf16 %v5417_v37 }
 0x6ec   :  { %4365 = vmatprep.subr.bf16.mxu1 %v4627_v1 }
 0x6ef   :  { %4366 = vmatpush3.bf16.msra.mxu1 %v4627_v1 }
 0x6f0   :  { %4367 = vmatprep.subr.bf16.mxu1 %v4628_v41 }
 0x6f3   :  { %4368 = vmatpush3.bf16.msra.mxu1 %v4628_v41 }
 0x6f4   :  { %4369 = vmatprep.subr.bf16.mxu1 %v4629_v44 }
 0x6f7   :  { %4370 = vmatpush3.bf16.msra.mxu1 %v4629_v44  ;;  %v2315_v44 = vunpack.c.h.bf16 %v5427_v49 }
 0x791   :  { %v3901_v26 = vpop.f32.mrb[128].mxu1 }
 0x792   :  { %v3902_v45 = vpop.f32.mrb[129].mxu1 }
 0x793   :  { %v3903_v46 = vadd.f32 %v3902_v45, %v3901_v26  ;;  %v3904_v52 = vpop.f32.mrb[130].mxu1  ;;  %v4630_v26 = vld [vmem:[#allocation7 + $0xb8] sm:$0xff]   ;;  %v4737_v45 = vld [vmem:[#allocation2 + $0xc0] ss:$8 sps:$4 sm:$0xff]  }
 0x794   :  { %v3905_v31 = vpop.f32.mrb[131].mxu1  ;;  %4371 = vmatprep.subr.bf16.mxu1 %v4630_v26 }
 0x795   :  { %v3906_v47 = vadd.f32 %v3905_v31, %v3904_v52  ;;  %v2112_v5 = vmul.f32 %v3903_v46, %v5343_v14  ;;  %v4738_v46 = vld [vmem:[#allocation2 + $0xd4] ss:$8 sps:$4 sm:$0xff]   ;;  %4372 = vmatpush3.bf16.msra.mxu1 %v4630_v26  ;;  %v4739_v52 = vld [vmem:[#allocation2 + $0xd0] ss:$8 sps:$4 sm:$0xff]   ;;  %v4740_v31 = vld [vmem:[#allocation2 + $0xe4] ss:$8 sps:$4 sm:$0xff]  }
 0x797   :  { %v2113_v9 = vmul.f32 %v3906_v47, %v5351_v16  ;;  %v4741_v47 = vld [vmem:[#allocation2 + $0xe0] ss:$8 sps:$4 sm:$0xff]  }
 0x799   :  { %v2114_v58 = vpack.c.bf16 %v2113_v9, %v2112_v5  ;;  %v4742_v5 = vld [vmem:[#allocation2 + $0xf4] ss:$8 sps:$4 sm:$0xff]   ;;  %v4743_v9 = vld [vmem:[#allocation2 + $0xf0] ss:$8 sps:$4 sm:$0xff]  }
 0x79b   :  { %4334 = vmatmul.mubr.bf16.vlgmr.msra.gmra.mrb[132].mxu0 %v2114_v58  ;;  %v4744_v58 = vld [vmem:[%s5726_s6 + $0x4] ss:$8 sps:$4 sm:$0xff]  }
 0x79c   :  { %3926 = vmatpush3.bf16.msra.mxu0 %v5419_v38  ;;  %2374 = vmatprep.mubr.bf16.mxu0 %v4712_v57 }
 0x79d   :  { %3927 = vmatprep.subr.bf16.mxu0 %v5451_v20 }
 0x7a0   :  { %3928 = vmatpush3.bf16.msra.mxu0 %v5417_v37 }
 0x7a1   :  { %3929 = vmatprep.subr.bf16.mxu0 %v5466_v56 }
 0x7a4   :  { %3930 = vmatpush3.bf16.msra.mxu0 %v5427_v49 }
 0x7a5   :  { %3931 = vmatprep.subr.bf16.mxu0 %v5464_v54 }
 0x7a8   :  { %3932 = vmatpush3.bf16.msra.mxu0 %v5425_v48 }
 0x7a9   :  { %3933 = vmatprep.subr.bf16.mxu0 %v5478_v22 }
 0x7ac   :  { %3934 = vmatpush3.bf16.msra.mxu0 %v5437_v7 }
 0x7ad   :  { %3935 = vmatprep.subr.bf16.mxu0 %v5476_v19 }
 0x7b0   :  { %3936 = vmatpush3.bf16.msra.mxu0 %v5435_v63 }
 0x7b1   :  { %3937 = vmatprep.subr.bf16.mxu0 %v5490_v34  ;;  %v5526_v39 = vpop.f32.mrb[132].mxu1 }
 0x7b2   :  { %v4355_v55 = vpop.f32.mrb[133].mxu1 }
 0x7b3   :  { %v5528_v51 = vpop.f32.mrb[134].mxu1 }
 0x7b4   :  { %3938 = vmatpush3.bf16.msra.mxu0 %v5445_v61  ;;  %v4356_v59 = vpop.f32.mrb[135].mxu1 }
 0x7b5   :  { %3939 = vmatprep.subr.bf16.mxu0 %v5488_v4 }
 0x7b8   :  { %3940 = vmatpush3.bf16.msra.mxu0 %v5443_v25 }
 0x7bb   :  { %2375 = vmatmul.mubr.bf16.vlgmr.msra.gmra.mrb[136].mxu0 %v4713_v11 }
 0x7bc   :  { %2382 = vmatprep.mubr.bf16.mxu0 %v4714_v30 }
 0x7c3   :  { %2383 = vmatmul.mubr.bf16.gmra.mrb[140].mxu0 %v4715_v3 }
 0x7c4   :  { %2390 = vmatprep.mubr.bf16.mxu0 %v4716_v8 }
 0x7cb   :  { %2391 = vmatmul.mubr.bf16.gmra.mrb[144].mxu0 %v4717_v60 }
 0x7cc   :  { %2398 = vmatprep.mubr.bf16.mxu0 %v4718_v13 }
 0x7d3   :  { %2399 = vmatmul.mubr.bf16.gmra.mrb[148].mxu0 %v4719_v0 }
 0x7d4   :  { %2406 = vmatprep.mubr.bf16.mxu0 %v4720_v17  ;;  %v4631_v17 = vld [vmem:[#allocation8 + $0x80] sm:$0xff]  }
 0x7d5   :  { %4405 = vmatprep.subr.bf16.mxu1 %v4631_v17 }
 0x7db   :  { %2407 = vmatmul.mubr.bf16.gmra.mrb[152].mxu0 %v4721_v18 }
 0x7dc   :  { %2414 = vmatprep.mubr.bf16.mxu0 %v4722_v62  ;;  %v2310_v62 = vunpack.c.l.bf16 %v5419_v38 }
 0x7e3   :  { %2415 = vmatmul.mubr.bf16.gmra.mrb[156].mxu0 %v4723_v23  ;;  %v2311_v23 = vunpack.c.h.bf16 %v5419_v38 }
 0x7e4   :  { %2422 = vmatprep.mubr.bf16.mxu0 %v4724_v24 }
 0x7eb   :  { %2423 = vmatmul.mubr.bf16.gmra.mrb[160].mxu0 %v4725_v21 }
 0x7ec   :  { %2430 = vmatprep.mubr.bf16.mxu0 %v4726_v15 }
 0x7f3   :  { %2431 = vmatmul.mubr.bf16.gmra.mrb[164].mxu0 %v4727_v2 }
 0x7f4   :  { %2438 = vmatprep.mubr.bf16.mxu0 %v4728_v27 }
 0x7fb   :  { %2439 = vmatmul.mubr.bf16.gmra.mrb[168].mxu0 %v4729_v50 }
 0x7fc   :  { %2446 = vmatprep.mubr.bf16.mxu0 %v4730_v33 }
 0x803   :  { %2447 = vmatmul.mubr.bf16.gmra.mrb[172].mxu0 %v4731_v35 }
 0x804   :  { %2454 = vmatprep.mubr.bf16.mxu0 %v4732_v28 }
 0x80b   :  { %2455 = vmatmul.mubr.bf16.gmra.mrb[176].mxu0 %v4733_v36  ;;  %v4632_v36 = vld [vmem:[#allocation8 + $0x88] sm:$0xff]  }
 0x80c   :  { %2462 = vmatprep.mubr.bf16.mxu0 %v4734_v12 }
 0x813   :  { %2463 = vmatmul.mubr.bf16.gmra.mrb[180].mxu0 %v4735_v42 }
 0x814   :  { %2470 = vmatprep.mubr.bf16.mxu0 %v4736_v43  ;;  %v2314_v43 = vunpack.c.l.bf16 %v5427_v49  ;;  %v2317_v49 = vunpack.c.h.bf16 %v5425_v48 }
 0x81b   :  { %2471 = vmatmul.mubr.bf16.gmra.mrb[184].mxu0 %v4737_v45  ;;  %v4633_v45 = vld [vmem:[#allocation8 + $0x90] sm:$0xff]  }
 0x81c   :  { %2478 = vmatprep.mubr.bf16.mxu0 %v4738_v46 }
 0x823   :  { %2479 = vmatmul.mubr.bf16.gmra.mrb[188].mxu0 %v4739_v52 }
 0x824   :  { %2486 = vmatprep.mubr.bf16.mxu0 %v4740_v31 }
 0x82b   :  { %2487 = vmatmul.mubr.bf16.gmra.mrb[192].mxu0 %v4741_v47  ;;  %v4634_v47 = vld [vmem:[#allocation8 + $0x98] sm:$0xff]  }
 0x82c   :  { %2494 = vmatprep.mubr.bf16.mxu0 %v4742_v5 }
 0x833   :  { %2495 = vmatmul.mubr.bf16.gmra.mrb[196].mxu0 %v4743_v9 }
 0x834   :  { %3115 = vmatprep.mubr.bf16.mxu0 %v4744_v58 }
 0x86e   :  { %v2214_v57 = vpop.f32.mrb[132].mxu0 }
 0x86f   :  { %v5537_v55 = vadd.f32 %v5526_v39, %v2214_v57  ;;  %v4335_v59 = vpop.f32.mrb[133].mxu0 }
 0x870   :  { %v2217_v11 = vpop.f32.mrb[134].mxu0  ;;  %v2316_v59 = vunpack.c.l.bf16 %v5425_v48  ;;  %v2319_v48 = vunpack.c.h.bf16 %v5437_v7 }
 0x871   :  { %v5540_v30 = vadd.f32 %v5528_v51, %v2217_v11  ;;  %v4336_v3 = vpop.f32.mrb[135].mxu0 }
 0x872   :  { %v4635_v3 = vld [vmem:[#allocation8 + $0xa0] sm:$0xff]  }
 0x88e   :  { %v3941_v8 = vpop.f32.mrb[136].mxu0 }
 0x88f   :  { %v3942_v60 = vpop.f32.mrb[137].mxu0 }
 0x890   :  { %v3943_v13 = vadd.f32 %v3942_v60, %v3941_v8  ;;  %v3944_v0 = vpop.f32.mrb[138].mxu0 }
 0x891   :  { %v3945_v18 = vpop.f32.mrb[139].mxu0 }
 0x892   :  { %v3946_v24 = vadd.f32 %v3945_v18, %v3944_v0  ;;  %v2377_v39 = vadd.f32 %v3943_v13, %v2310_v62 }
 0x894   :  { %v2380_v21 = vadd.f32 %v3946_v24, %v2311_v23 }
 0x896   :  { %v3947_v15 = vpop.f32.mrb[140].mxu0  ;;  %v2503_v53 = vpack.c.bf16 %v2380_v21, %v2377_v39  ;;  %v2318_v39 = vunpack.c.l.bf16 %v5437_v7 }
 0x897   :  { %v3948_v6 = vpop.f32.mrb[141].mxu0 }
 0x898   :  { %v3949_v51 = vadd.f32 %v3948_v6, %v3947_v15  ;;  %v3950_v2 = vpop.f32.mrb[142].mxu0  ;;  %4373 = vmatprep.mubr.bf16.mxu1 %v2503_v53 }
 0x899   :  { %v3951_v27 = vpop.f32.mrb[143].mxu0 }
 0x89a   :  { %v3952_v50 = vadd.f32 %v3951_v27, %v3950_v2  ;;  %v2385_v33 = vadd.f32 %v3949_v51, %v2312_v29 }
 0x89c   :  { %v2388_v35 = vadd.f32 %v3952_v50, %v2313_v32  ;;  %v2320_v50 = vunpack.c.l.bf16 %v5435_v63 }
 0x89e   :  { %v2504_v28 = vpack.c.bf16 %v2388_v35, %v2385_v33  ;;  %v3953_v38 = vpop.f32.mrb[144].mxu0  ;;  %v2321_v33 = vunpack.c.h.bf16 %v5435_v63 }
 0x89f   :  { %v3954_v12 = vpop.f32.mrb[145].mxu0 }
 0x8a0   :  { %v3955_v1 = vadd.f32 %v3954_v12, %v3953_v38  ;;  %v3956_v41 = vpop.f32.mrb[146].mxu0  ;;  %4374 = vmatmul.mubr.bf16.vlgmr.msra.gmra.mrb[136].mxu1 %v2504_v28 }
 0x8a1   :  { %v3957_v42 = vpop.f32.mrb[147].mxu0  ;;  %4406 = vmatpush3.bf16.msra.mxu1 %v4631_v17  ;;  %v4636_v17 = vld [vmem:[#allocation8 + $0xa8] sm:$0xff]  }
 0x8a2   :  { %v3958_v26 = vadd.f32 %v3957_v42, %v3956_v41  ;;  %4407 = vmatprep.subr.bf16.mxu1 %v4632_v36  ;;  %v2393_v37 = vadd.f32 %v3955_v1, %v2314_v43  ;;  %v2322_v43 = vunpack.c.l.bf16 %v5445_v61 }
 0x8a4   :  { %v2396_v46 = vadd.f32 %v3958_v26, %v2315_v44  ;;  %v2323_v44 = vunpack.c.h.bf16 %v5445_v61 }
 0x8a5   :  { %4408 = vmatpush3.bf16.msra.mxu1 %v4632_v36 }
 0x8a6   :  { %v3959_v52 = vpop.f32.mrb[148].mxu0  ;;  %v2505_v31 = vpack.c.bf16 %v2396_v46, %v2393_v37  ;;  %4409 = vmatprep.subr.bf16.mxu1 %v4633_v45 }
 0x8a7   :  { %v3960_v5 = vpop.f32.mrb[149].mxu0 }
 0x8a8   :  { %v3961_v9 = vadd.f32 %v3960_v5, %v3959_v52  ;;  %v3962_v58 = vpop.f32.mrb[150].mxu0  ;;  %4377 = vmatprep.mubr.bf16.mxu1 %v2505_v31 }
 0x8a9   :  { %v3963_v57 = vpop.f32.mrb[151].mxu0  ;;  %4410 = vmatpush3.bf16.msra.mxu1 %v4633_v45 }
 0x8aa   :  { %v3964_v11 = vadd.f32 %v3963_v57, %v3962_v58  ;;  %4411 = vmatprep.subr.bf16.mxu1 %v4634_v47  ;;  %v2401_v8 = vadd.f32 %v3961_v9, %v2316_v59  ;;  %v2324_v9 = vunpack.c.l.bf16 %v5443_v25  ;;  %v2325_v58 = vunpack.c.h.bf16 %v5443_v25 }
 0x8ac   :  { %v2404_v60 = vadd.f32 %v3964_v11, %v2317_v49 }
 0x8ad   :  { %4412 = vmatpush3.bf16.msra.mxu1 %v4634_v47 }
 0x8ae   :  { %v3965_v13 = vpop.f32.mrb[152].mxu0  ;;  %v2506_v0 = vpack.c.bf16 %v2404_v60, %v2401_v8  ;;  %4413 = vmatprep.subr.bf16.mxu1 %v4635_v3  ;;  %v2326_v8 = vunpack.c.l.bf16 %v5453_v40 }
 0x8af   :  { %v3966_v18 = vpop.f32.mrb[153].mxu0 }
 0x8b0   :  { %v3967_v62 = vadd.f32 %v3966_v18, %v3965_v13  ;;  %v3968_v23 = vpop.f32.mrb[154].mxu0  ;;  %4378 = vmatmul.mubr.bf16.gmra.mrb[140].mxu1 %v2506_v0  ;;  %v2327_v18 = vunpack.c.h.bf16 %v5453_v40 }
 0x8b1   :  { %v3969_v24 = vpop.f32.mrb[155].mxu0  ;;  %4414 = vmatpush3.bf16.msra.mxu1 %v4635_v3 }
 0x8b2   :  { %v3970_v21 = vadd.f32 %v3969_v24, %v3968_v23  ;;  %4415 = vmatprep.subr.bf16.mxu1 %v4636_v17  ;;  %v2409_v15 = vadd.f32 %v3967_v62, %v2318_v39 }
 0x8b4   :  { %v2412_v53 = vadd.f32 %v3970_v21, %v2319_v48 }
 0x8b5   :  { %4416 = vmatpush3.bf16.msra.mxu1 %v4636_v17 }
 0x8b6   :  { %v3971_v6 = vpop.f32.mrb[156].mxu0  ;;  %v2507_v51 = vpack.c.bf16 %v2412_v53, %v2409_v15  ;;  %v2328_v53 = vunpack.c.l.bf16 %v5451_v20 }
 0x8b7   :  { %v3972_v2 = vpop.f32.mrb[157].mxu0 }
 0x8b8   :  { %v3973_v27 = vadd.f32 %v3972_v2, %v3971_v6  ;;  %v3974_v29 = vpop.f32.mrb[158].mxu0  ;;  %4381 = vmatprep.mubr.bf16.mxu1 %v2507_v51  ;;  %v2329_v6 = vunpack.c.h.bf16 %v5451_v20 }
 0x8b9   :  { %v3975_v32 = vpop.f32.mrb[159].mxu0 }
 0x8ba   :  { %v3976_v35 = vadd.f32 %v3975_v32, %v3974_v29  ;;  %v2417_v28 = vadd.f32 %v3973_v27, %v2320_v50 }
 0x8bc   :  { %v2420_v38 = vadd.f32 %v3976_v35, %v2321_v33 }
 0x8be   :  { %v3977_v7 = vpop.f32.mrb[160].mxu0  ;;  %v2508_v36 = vpack.c.bf16 %v2420_v38, %v2417_v28  ;;  %v2330_v28 = vunpack.c.l.bf16 %v5466_v56  ;;  %v2331_v38 = vunpack.c.h.bf16 %v5466_v56 }
 0x8bf   :  { %v3978_v12 = vpop.f32.mrb[161].mxu0 }
 0x8c0   :  { %v3979_v1 = vadd.f32 %v3978_v12, %v3977_v7  ;;  %v3980_v41 = vpop.f32.mrb[162].mxu0  ;;  %4382 = vmatmul.mubr.bf16.gmra.mrb[144].mxu1 %v2508_v36 }
 0x8c1   :  { %v3981_v42 = vpop.f32.mrb[163].mxu0 }
 0x8c2   :  { %v3982_v26 = vadd.f32 %v3981_v42, %v3980_v41  ;;  %v2425_v45 = vadd.f32 %v3979_v1, %v2322_v43 }
 0x8c4   :  { %v2428_v37 = vadd.f32 %v3982_v26, %v2323_v44  ;;  %v2332_v26 = vunpack.c.l.bf16 %v5464_v54 }
 0x8c6   :  { %v3983_v46 = vpop.f32.mrb[164].mxu0  ;;  %v2509_v52 = vpack.c.bf16 %v2428_v37, %v2425_v45  ;;  %v2333_v45 = vunpack.c.h.bf16 %v5464_v54 }
 0x8c7   :  { %v3984_v63 = vpop.f32.mrb[165].mxu0 }
 0x8c8   :  { %v3985_v31 = vadd.f32 %v3984_v63, %v3983_v46  ;;  %v3986_v47 = vpop.f32.mrb[166].mxu0  ;;  %4385 = vmatprep.mubr.bf16.mxu1 %v2509_v52 }
 0x8c9   :  { %v3987_v5 = vpop.f32.mrb[167].mxu0 }
 0x8ca   :  { %v3988_v57 = vadd.f32 %v3987_v5, %v3986_v47  ;;  %v2433_v59 = vadd.f32 %v3985_v31, %v2324_v9 }
 0x8cc   :  { %v2436_v49 = vadd.f32 %v3988_v57, %v2325_v58  ;;  %v2334_v58 = vunpack.c.l.bf16 %v5478_v22  ;;  %v2335_v57 = vunpack.c.h.bf16 %v5478_v22 }
 0x8ce   :  { %v3989_v11 = vpop.f32.mrb[168].mxu0  ;;  %v2510_v3 = vpack.c.bf16 %v2436_v49, %v2433_v59 }
 0x8cf   :  { %v3990_v61 = vpop.f32.mrb[169].mxu0 }
 0x8d0   :  { %v3991_v60 = vadd.f32 %v3990_v61, %v3989_v11  ;;  %v3992_v13 = vpop.f32.mrb[170].mxu0  ;;  %4386 = vmatmul.mubr.bf16.gmra.mrb[148].mxu1 %v2510_v3  ;;  %v4637_v3 = vld [vmem:[#allocation8 + $0xb0] sm:$0xff]  }
 0x8d1   :  { %v3993_v0 = vpop.f32.mrb[171].mxu0  ;;  %4417 = vmatprep.subr.bf16.mxu1 %v4637_v3 }
 0x8d2   :  { %v2441_v17 = vadd.f32 %v3991_v60, %v2326_v8  ;;  %v3994_v62 = vadd.f32 %v3993_v0, %v3992_v13  ;;  %4418 = vmatpush3.bf16.msra.mxu1 %v4637_v3  ;;  %v4638_v0 = vld [vmem:[#allocation8 + $0xb8] sm:$0xff]  }
 0x8d3   :  { %4419 = vmatprep.subr.bf16.mxu1 %v4638_v0 }
 0x8d4   :  { %v2444_v23 = vadd.f32 %v3994_v62, %v2327_v18  ;;  %v2336_v18 = vunpack.c.l.bf16 %v5476_v19  ;;  %v2337_v62 = vunpack.c.h.bf16 %v5476_v19 }
 0x8d6   :  { %v3995_v24 = vpop.f32.mrb[172].mxu0  ;;  %v2511_v39 = vpack.c.bf16 %v2444_v23, %v2441_v17  ;;  %4420 = vmatpush3.bf16.msra.mxu1 %v4638_v0 }
 0x8d7   :  { %v3996_v25 = vpop.f32.mrb[173].mxu0  ;;  %4453 = vmatprep.subr.bf16.mxu1 %v4921_v10 }
 0x8d8   :  { %v3997_v48 = vadd.f32 %v3996_v25, %v3995_v24  ;;  %v3998_v21 = vpop.f32.mrb[174].mxu0  ;;  %4389 = vmatprep.mubr.bf16.mxu1 %v2511_v39 }
 0x8d9   :  { %v3999_v15 = vpop.f32.mrb[175].mxu0 }
 0x8da   :  { %v4000_v51 = vadd.f32 %v3999_v15, %v3998_v21  ;;  %v2449_v2 = vadd.f32 %v3997_v48, %v2328_v53 }
 0x8dc   :  { %v2452_v27 = vadd.f32 %v4000_v51, %v2329_v6  ;;  %v2338_v6 = vunpack.c.l.bf16 %v5490_v34  ;;  %v2339_v51 = vunpack.c.h.bf16 %v5490_v34  ;;  %v5578_v34 = vld [vmem:[%s5723_s3 + $0x2] ss:$0 sm:$0xff] }
 0x8de   :  { %v4001_v29 = vpop.f32.mrb[176].mxu0  ;;  %v2512_v32 = vpack.c.bf16 %v2452_v27, %v2449_v2 }
 0x8df   :  { %v4002_v50 = vpop.f32.mrb[177].mxu0 }
 0x8e0   :  { %v4003_v40 = vadd.f32 %v4002_v50, %v4001_v29  ;;  %v4004_v33 = vpop.f32.mrb[178].mxu0  ;;  %4390 = vmatmul.mubr.bf16.gmra.mrb[152].mxu1 %v2512_v32 }
 0x8e1   :  { %v4005_v35 = vpop.f32.mrb[179].mxu0 }
 0x8e2   :  { %v4006_v7 = vadd.f32 %v4005_v35, %v4004_v33  ;;  %v2457_v36 = vadd.f32 %v4003_v40, %v2330_v28  ;;  %v2340_v28 = vunpack.c.l.bf16 %v5488_v4 }
 0x8e4   :  { %v2460_v12 = vadd.f32 %v4006_v7, %v2331_v38  ;;  %v2341_v38 = vunpack.c.h.bf16 %v5488_v4 }
 0x8e6   :  { %v4007_v1 = vpop.f32.mrb[180].mxu0  ;;  %v2513_v41 = vpack.c.bf16 %v2460_v12, %v2457_v36 }
 0x8e7   :  { %v4008_v20 = vpop.f32.mrb[181].mxu0 }
 0x8e8   :  { %v4009_v42 = vadd.f32 %v4008_v20, %v4007_v1  ;;  %v4010_v43 = vpop.f32.mrb[182].mxu0  ;;  %4393 = vmatprep.mubr.bf16.mxu1 %v2513_v41 }
 0x8e9   :  { %v4011_v44 = vpop.f32.mrb[183].mxu0 }
 0x8ea   :  { %v4012_v37 = vadd.f32 %v4011_v44, %v4010_v43  ;;  %v2465_v46 = vadd.f32 %v4009_v42, %v2332_v26 }
 0x8ec   :  { %v2468_v52 = vadd.f32 %v4012_v37, %v2333_v45 }
 0x8ee   :  { %v4013_v63 = vpop.f32.mrb[184].mxu0  ;;  %v2514_v31 = vpack.c.bf16 %v2468_v52, %v2465_v46 }
 0x8ef   :  { %v4014_v56 = vpop.f32.mrb[185].mxu0 }
 0x8f0   :  { %v4015_v47 = vadd.f32 %v4014_v56, %v4013_v63  ;;  %v4016_v5 = vpop.f32.mrb[186].mxu0  ;;  %4394 = vmatmul.mubr.bf16.gmra.mrb[156].mxu1 %v2514_v31 }
 0x8f1   :  { %v4017_v9 = vpop.f32.mrb[187].mxu0 }
 0x8f2   :  { %v4018_v59 = vadd.f32 %v4017_v9, %v4016_v5  ;;  %v2473_v49 = vadd.f32 %v4015_v47, %v2334_v58 }
 0x8f4   :  { %v2476_v11 = vadd.f32 %v4018_v59, %v2335_v57 }
 0x8f6   :  { %v4019_v61 = vpop.f32.mrb[188].mxu0  ;;  %v2515_v54 = vpack.c.bf16 %v2476_v11, %v2473_v49 }
 0x8f7   :  { %v4020_v8 = vpop.f32.mrb[189].mxu0 }
 0x8f8   :  { %v4021_v60 = vadd.f32 %v4020_v8, %v4019_v61  ;;  %v4022_v13 = vpop.f32.mrb[190].mxu0  ;;  %4397 = vmatprep.mubr.bf16.mxu1 %v2515_v54 }
 0x8f9   :  { %v4023_v17 = vpop.f32.mrb[191].mxu0 }
 0x8fa   :  { %v4024_v23 = vadd.f32 %v4023_v17, %v4022_v13  ;;  %v2481_v22 = vadd.f32 %v4021_v60, %v2336_v18 }
 0x8fc   :  { %v2484_v24 = vadd.f32 %v4024_v23, %v2337_v62 }
 0x8fe   :  { %v4025_v39 = vpop.f32.mrb[192].mxu0  ;;  %v2516_v25 = vpack.c.bf16 %v2484_v24, %v2481_v22 }
 0x8ff   :  { %v4026_v48 = vpop.f32.mrb[193].mxu0 }
 0x900   :  { %v4027_v21 = vadd.f32 %v4026_v48, %v4025_v39  ;;  %v4028_v15 = vpop.f32.mrb[194].mxu0  ;;  %4398 = vmatmul.mubr.bf16.gmra.mrb[160].mxu1 %v2516_v25 }
 0x901   :  { %v4029_v53 = vpop.f32.mrb[195].mxu0 }
 0x902   :  { %v4030_v2 = vadd.f32 %v4029_v53, %v4028_v15  ;;  %v2489_v19 = vadd.f32 %v4027_v21, %v2338_v6 }
 0x904   :  { %v2492_v27 = vadd.f32 %v4030_v2, %v2339_v51 }
 0x906   :  { %v4031_v29 = vpop.f32.mrb[196].mxu0  ;;  %v2517_v32 = vpack.c.bf16 %v2492_v27, %v2489_v19 }
 0x907   :  { %v4032_v50 = vpop.f32.mrb[197].mxu0 }
 0x908   :  { %v4033_v40 = vadd.f32 %v4032_v50, %v4031_v29  ;;  %v4034_v33 = vpop.f32.mrb[198].mxu0  ;;  %4401 = vmatprep.mubr.bf16.mxu1 %v2517_v32 }
 0x909   :  { %v4035_v35 = vpop.f32.mrb[199].mxu0 }
 0x90a   :  { %v4036_v7 = vadd.f32 %v4035_v35, %v4034_v33  ;;  %v2497_v36 = vadd.f32 %v4033_v40, %v2340_v28 }
 0x90c   :  { %v2500_v12 = vadd.f32 %v4036_v7, %v2341_v38 }
 0x90e   :  { %v2518_v1 = vpack.c.bf16 %v2500_v12, %v2497_v36 }
 0x910   :  { %4402 = vmatmul.mubr.bf16.gmra.mrb[164].mxu1 %v2518_v1 }
 0x973   :  { %v4375_v41 = vpop.f32.mrb[136].mxu1 }
 0x974   :  { %v2635_v20 = vadd.f32 %v4375_v41, %v5578_v34  ;;  %v2626_v42 = vpop.f32.mrb[137].mxu1 }
 0x975   :  { %v2627_v43 = vadd.f32 %v5578_v34, %v2626_v42  ;;  %v4376_v44 = vpop.f32.mrb[138].mxu1 }
 0x976   :  { %v2638_v26 = vadd.f32 %v4376_v44, %v5578_v34  ;;  %v2629_v4 = vpop.f32.mrb[139].mxu1  ;;  %v2755_v37 = vmax.f32 %v2635_v20, 0.0 }
 0x977   :  { %v2630_v45 = vadd.f32 %v5578_v34, %v2629_v4  ;;  %v2753_v52 = vmax.f32 %v2627_v43, 0.0 }
 0x978   :  { %v2756_v46 = vmax.f32 %v2638_v26, 0.0 }
 0x979   :  { %v2754_v63 = vmax.f32 %v2630_v45, 0.0 }
 0x97a   :  { %v2786_v31 = vpack.c.bf16 %v2756_v46, %v2755_v37 }
 0x97b   :  { %v2785_v56 = vpack.c.bf16 %v2754_v63, %v2753_v52 }
 0x97d   :  { %4421 = vmatprep.mubr.bf16.mxu1 %v2785_v56 }
 0x97e   :  { %4422 = vmatmul.mubr.bf16.vlgmr.msra.gmra.mrb[168].mxu1 %v2786_v31 }
 0x983   :  { %v4379_v47 = vpop.f32.mrb[140].mxu1 }
 0x984   :  { %v2651_v5 = vadd.f32 %v4379_v47, %v5578_v34  ;;  %v2642_v9 = vpop.f32.mrb[141].mxu1 }
 0x985   :  { %v2643_v58 = vadd.f32 %v5578_v34, %v2642_v9  ;;  %v4380_v57 = vpop.f32.mrb[142].mxu1 }
 0x986   :  { %v2654_v59 = vadd.f32 %v4380_v57, %v5578_v34  ;;  %v2645_v49 = vpop.f32.mrb[143].mxu1  ;;  %v2759_v3 = vmax.f32 %v2651_v5, 0.0 }
 0x987   :  { %v2646_v11 = vadd.f32 %v5578_v34, %v2645_v49  ;;  %v2757_v54 = vmax.f32 %v2643_v58, 0.0 }
 0x988   :  { %v2760_v61 = vmax.f32 %v2654_v59, 0.0 }
 0x989   :  { %v2758_v8 = vmax.f32 %v2646_v11, 0.0 }
 0x98a   :  { %v2788_v60 = vpack.c.bf16 %v2760_v61, %v2759_v3 }
 0x98b   :  { %v2787_v13 = vpack.c.bf16 %v2758_v8, %v2757_v54 }
 0x98d   :  { %4425 = vmatprep.mubr.bf16.mxu1 %v2787_v13 }
 0x98e   :  { %4426 = vmatmul.mubr.bf16.gmra.mrb[172].mxu1 %v2788_v60 }
 0x993   :  { %v4383_v0 = vpop.f32.mrb[144].mxu1 }
 0x994   :  { %v2667_v17 = vadd.f32 %v4383_v0, %v5578_v34  ;;  %v2658_v18 = vpop.f32.mrb[145].mxu1 }
 0x995   :  { %v2659_v62 = vadd.f32 %v5578_v34, %v2658_v18  ;;  %v4384_v23 = vpop.f32.mrb[146].mxu1 }
 0x996   :  { %v2670_v22 = vadd.f32 %v4384_v23, %v5578_v34  ;;  %v2661_v24 = vpop.f32.mrb[147].mxu1  ;;  %v2763_v25 = vmax.f32 %v2667_v17, 0.0 }
 0x997   :  { %v2662_v39 = vadd.f32 %v5578_v34, %v2661_v24  ;;  %v2761_v21 = vmax.f32 %v2659_v62, 0.0 }
 0x998   :  { %v2764_v48 = vmax.f32 %v2670_v22, 0.0 }
 0x999   :  { %v2762_v15 = vmax.f32 %v2662_v39, 0.0 }
 0x99a   :  { %v2790_v53 = vpack.c.bf16 %v2764_v48, %v2763_v25 }
 0x99b   :  { %v2789_v6 = vpack.c.bf16 %v2762_v15, %v2761_v21 }
 0x99d   :  { %4429 = vmatprep.mubr.bf16.mxu1 %v2789_v6 }
 0x99e   :  { %4430 = vmatmul.mubr.bf16.gmra.mrb[176].mxu1 %v2790_v53 }
 0x9a3   :  { %v4387_v51 = vpop.f32.mrb[148].mxu1 }
 0x9a4   :  { %v2683_v2 = vadd.f32 %v4387_v51, %v5578_v34  ;;  %v2674_v19 = vpop.f32.mrb[149].mxu1 }
 0x9a5   :  { %v2675_v27 = vadd.f32 %v5578_v34, %v2674_v19  ;;  %v4388_v29 = vpop.f32.mrb[150].mxu1 }
 0x9a6   :  { %v2686_v32 = vadd.f32 %v4388_v29, %v5578_v34  ;;  %v2677_v50 = vpop.f32.mrb[151].mxu1  ;;  %v2767_v33 = vmax.f32 %v2683_v2, 0.0 }
 0x9a7   :  { %v2678_v40 = vadd.f32 %v5578_v34, %v2677_v50  ;;  %v2765_v28 = vmax.f32 %v2675_v27, 0.0 }
 0x9a8   :  { %v2768_v35 = vmax.f32 %v2686_v32, 0.0 }
 0x9a9   :  { %v2766_v38 = vmax.f32 %v2678_v40, 0.0 }
 0x9aa   :  { %v2792_v7 = vpack.c.bf16 %v2768_v35, %v2767_v33 }
 0x9ab   :  { %v2791_v36 = vpack.c.bf16 %v2766_v38, %v2765_v28 }
 0x9ad   :  { %4433 = vmatprep.mubr.bf16.mxu1 %v2791_v36 }
 0x9ae   :  { %4434 = vmatmul.mubr.bf16.gmra.mrb[180].mxu1 %v2792_v7  ;;  %v5617_v7 = vld [vmem:[%s5725_s5 + $0x2] ss:$0 sm:$0xff] }
 0x9b3   :  { %v4391_v12 = vpop.f32.mrb[152].mxu1 }
 0x9b4   :  { %v2699_v1 = vadd.f32 %v4391_v12, %v5578_v34  ;;  %v2690_v41 = vpop.f32.mrb[153].mxu1 }
 0x9b5   :  { %v2691_v20 = vadd.f32 %v5578_v34, %v2690_v41  ;;  %v4392_v42 = vpop.f32.mrb[154].mxu1 }
 0x9b6   :  { %v2702_v43 = vadd.f32 %v4392_v42, %v5578_v34  ;;  %v2693_v44 = vpop.f32.mrb[155].mxu1  ;;  %v2771_v4 = vmax.f32 %v2699_v1, 0.0 }
 0x9b7   :  { %v2694_v26 = vadd.f32 %v5578_v34, %v2693_v44  ;;  %v2769_v37 = vmax.f32 %v2691_v20, 0.0  ;;  %v4639_v20 = vld [vmem:[#allocation10 + $0x80] sm:$0xff]  }
 0x9b8   :  { %v2772_v45 = vmax.f32 %v2702_v43, 0.0  ;;  %4454 = vmatpush3.bf16.msra.mxu1 %v4639_v20 }
 0x9b9   :  { %v2770_v46 = vmax.f32 %v2694_v26, 0.0  ;;  %v4640_v26 = vld [vmem:[#allocation10 + $0x88] sm:$0xff]   ;;  %4455 = vmatprep.subr.bf16.mxu1 %v4921_v10 }
 0x9ba   :  { %v2794_v52 = vpack.c.bf16 %v2772_v45, %v2771_v4 }
 0x9bb   :  { %v2793_v63 = vpack.c.bf16 %v2770_v46, %v2769_v37 }
 0x9bc   :  { %4456 = vmatpush3.bf16.msra.mxu1 %v4640_v26 }
 0x9bd   :  { %4437 = vmatprep.mubr.bf16.mxu1 %v2793_v63  ;;  %4457 = vmatprep.subr.bf16.mxu1 %v4921_v10 }
 0x9be   :  { %4438 = vmatmul.mubr.bf16.gmra.mrb[184].mxu1 %v2794_v52 }
 0x9c3   :  { %v4395_v31 = vpop.f32.mrb[156].mxu1 }
 0x9c4   :  { %v2715_v56 = vadd.f32 %v4395_v31, %v5578_v34  ;;  %v2706_v47 = vpop.f32.mrb[157].mxu1  ;;  %v4641_v31 = vld [vmem:[#allocation10 + $0x90] sm:$0xff]  }
 0x9c5   :  { %v2707_v5 = vadd.f32 %v5578_v34, %v2706_v47  ;;  %v4396_v9 = vpop.f32.mrb[158].mxu1  ;;  %4458 = vmatpush3.bf16.msra.mxu1 %v4641_v31 }
 0x9c6   :  { %v2718_v58 = vadd.f32 %v4396_v9, %v5578_v34  ;;  %v2709_v57 = vpop.f32.mrb[159].mxu1  ;;  %v2775_v49 = vmax.f32 %v2715_v56, 0.0  ;;  %v4642_v56 = vld [vmem:[#allocation10 + $0x98] sm:$0xff]   ;;  %4459 = vmatprep.subr.bf16.mxu1 %v4921_v10 }
 0x9c7   :  { %v2710_v59 = vadd.f32 %v5578_v34, %v2709_v57  ;;  %v2773_v3 = vmax.f32 %v2707_v5, 0.0  ;;  %v4643_v5 = vld [vmem:[#allocation10 + $0xa0] sm:$0xff]  }
 0x9c8   :  { %v2776_v11 = vmax.f32 %v2718_v58, 0.0 }
 0x9c9   :  { %v2774_v61 = vmax.f32 %v2710_v59, 0.0  ;;  %4460 = vmatpush3.bf16.msra.mxu1 %v4642_v56 }
 0x9ca   :  { %v2796_v54 = vpack.c.bf16 %v2776_v11, %v2775_v49  ;;  %4461 = vmatprep.subr.bf16.mxu1 %v4921_v10 }
 0x9cb   :  { %v2795_v8 = vpack.c.bf16 %v2774_v61, %v2773_v3  ;;  %v4644_v61 = vld [vmem:[#allocation10 + $0xa8] sm:$0xff]  }
 0x9cd   :  { %4441 = vmatprep.mubr.bf16.mxu1 %v2795_v8  ;;  %4462 = vmatpush3.bf16.msra.mxu1 %v4643_v5 }
 0x9ce   :  { %4442 = vmatmul.mubr.bf16.gmra.mrb[188].mxu1 %v2796_v54  ;;  %4463 = vmatprep.subr.bf16.mxu1 %v4921_v10 }
 0x9d1   :  { %4464 = vmatpush3.bf16.msra.mxu1 %v4644_v61 }
 0x9d2   :  { %4465 = vmatprep.subr.bf16.mxu1 %v4921_v10 }
 0x9d3   :  { %v4399_v60 = vpop.f32.mrb[160].mxu1 }
 0x9d4   :  { %v2731_v13 = vadd.f32 %v4399_v60, %v5578_v34  ;;  %v2722_v0 = vpop.f32.mrb[161].mxu1 }
 0x9d5   :  { %v2723_v17 = vadd.f32 %v5578_v34, %v2722_v0  ;;  %v4400_v18 = vpop.f32.mrb[162].mxu1 }
 0x9d6   :  { %v2734_v62 = vadd.f32 %v4400_v18, %v5578_v34  ;;  %v2725_v23 = vpop.f32.mrb[163].mxu1  ;;  %v2779_v24 = vmax.f32 %v2731_v13, 0.0 }
 0x9d7   :  { %v2726_v22 = vadd.f32 %v5578_v34, %v2725_v23  ;;  %v2777_v25 = vmax.f32 %v2723_v17, 0.0 }
 0x9d8   :  { %v2780_v39 = vmax.f32 %v2734_v62, 0.0 }
 0x9d9   :  { %v2778_v48 = vmax.f32 %v2726_v22, 0.0 }
 0x9da   :  { %v2798_v21 = vpack.c.bf16 %v2780_v39, %v2779_v24 }
 0x9db   :  { %v2797_v15 = vpack.c.bf16 %v2778_v48, %v2777_v25 }
 0x9dd   :  { %4445 = vmatprep.mubr.bf16.mxu1 %v2797_v15 }
 0x9de   :  { %4446 = vmatmul.mubr.bf16.gmra.mrb[192].mxu1 %v2798_v21 }
 0x9e3   :  { %v4403_v53 = vpop.f32.mrb[164].mxu1 }
 0x9e4   :  { %v2747_v6 = vadd.f32 %v4403_v53, %v5578_v34  ;;  %v2738_v51 = vpop.f32.mrb[165].mxu1 }
 0x9e5   :  { %v2739_v2 = vadd.f32 %v5578_v34, %v2738_v51  ;;  %v4404_v19 = vpop.f32.mrb[166].mxu1 }
 0x9e6   :  { %v2750_v27 = vadd.f32 %v4404_v19, %v5578_v34  ;;  %v2741_v29 = vpop.f32.mrb[167].mxu1  ;;  %v2783_v50 = vmax.f32 %v2747_v6, 0.0 }
 0x9e7   :  { %v2742_v32 = vadd.f32 %v5578_v34, %v2741_v29  ;;  %v2781_v33 = vmax.f32 %v2739_v2, 0.0 }
 0x9e8   :  { %v2784_v40 = vmax.f32 %v2750_v27, 0.0 }
 0x9e9   :  { %v2782_v35 = vmax.f32 %v2742_v32, 0.0 }
 0x9ea   :  { %v2800_v28 = vpack.c.bf16 %v2784_v40, %v2783_v50 }
 0x9eb   :  { %v2799_v38 = vpack.c.bf16 %v2782_v35, %v2781_v33 }
 0x9ed   :  { %4449 = vmatprep.mubr.bf16.mxu1 %v2799_v38 }
 0x9ee   :  { %4450 = vmatmul.mubr.bf16.gmra.mrb[196].mxu1 %v2800_v28 }
 0x9ef   :  { %4469 = vmatprep.mubr.msk.bf16.mxu1 %vm4922_vm0, %v4921_v10 }
 0xa51   :  { %v4423_v36 = vpop.f32.mrb[168].mxu1 }
 0xa52   :  { %v2917_v12 = vadd.f32 %v4423_v36, %v5617_v7  ;;  %v2908_v34 = vpop.f32.mrb[169].mxu1 }
 0xa53   :  { %v2909_v1 = vadd.f32 %v5617_v7, %v2908_v34  ;;  %v4424_v41 = vpop.f32.mrb[170].mxu1 }
 0xa54   :  { %v2920_v42 = vadd.f32 %v4424_v41, %v5617_v7  ;;  %v2911_v43 = vpop.f32.mrb[171].mxu1  ;;  %v3037_v4 = vmax.f32 %v2917_v12, 0.0 }
 0xa55   :  { %v2912_v44 = vadd.f32 %v5617_v7, %v2911_v43  ;;  %v3035_v37 = vmax.f32 %v2909_v1, 0.0 }
 0xa56   :  { %v3038_v45 = vmax.f32 %v2920_v42, 0.0 }
 0xa57   :  { %v3036_v46 = vmax.f32 %v2912_v44, 0.0 }
 0xa58   :  { %v5624_v52 = vpack.c.bf16 %v3038_v45, %v3037_v4 }
 0xa59   :  { %v5626_v63 = vpack.c.bf16 %v3036_v46, %v3035_v37 }
 0xa61   :  { %v4427_v47 = vpop.f32.mrb[172].mxu1 }
 0xa62   :  { %v2933_v9 = vadd.f32 %v4427_v47, %v5617_v7  ;;  %v2924_v58 = vpop.f32.mrb[173].mxu1 }
 0xa63   :  { %v2925_v57 = vadd.f32 %v5617_v7, %v2924_v58  ;;  %v4428_v59 = vpop.f32.mrb[174].mxu1 }
 0xa64   :  { %v2936_v49 = vadd.f32 %v4428_v59, %v5617_v7  ;;  %v2927_v11 = vpop.f32.mrb[175].mxu1  ;;  %v3041_v54 = vmax.f32 %v2933_v9, 0.0 }
 0xa65   :  { %v2928_v3 = vadd.f32 %v5617_v7, %v2927_v11  ;;  %v3039_v60 = vmax.f32 %v2925_v57, 0.0 }
 0xa66   :  { %v3042_v8 = vmax.f32 %v2936_v49, 0.0 }
 0xa67   :  { %v3040_v13 = vmax.f32 %v2928_v3, 0.0 }
 0xa68   :  { %v5636_v0 = vpack.c.bf16 %v3042_v8, %v3041_v54 }
 0xa69   :  { %v5638_v17 = vpack.c.bf16 %v3040_v13, %v3039_v60 }
 0xa71   :  { %v4431_v18 = vpop.f32.mrb[176].mxu1 }
 0xa72   :  { %v2949_v62 = vadd.f32 %v4431_v18, %v5617_v7  ;;  %v2940_v23 = vpop.f32.mrb[177].mxu1 }
 0xa73   :  { %v2941_v22 = vadd.f32 %v5617_v7, %v2940_v23  ;;  %v4432_v24 = vpop.f32.mrb[178].mxu1 }
 0xa74   :  { %v2952_v39 = vadd.f32 %v4432_v24, %v5617_v7  ;;  %v2943_v25 = vpop.f32.mrb[179].mxu1  ;;  %v3045_v21 = vmax.f32 %v2949_v62, 0.0 }
 0xa75   :  { %v2944_v48 = vadd.f32 %v5617_v7, %v2943_v25  ;;  %v3043_v53 = vmax.f32 %v2941_v22, 0.0 }
 0xa76   :  { %v3046_v15 = vmax.f32 %v2952_v39, 0.0 }
 0xa77   :  { %v3044_v6 = vmax.f32 %v2944_v48, 0.0 }
 0xa78   :  { %v5645_v51 = vpack.c.bf16 %v3046_v15, %v3045_v21 }
 0xa79   :  { %v5647_v2 = vpack.c.bf16 %v3044_v6, %v3043_v53 }
 0xa81   :  { %v4435_v19 = vpop.f32.mrb[180].mxu1 }
 0xa82   :  { %v2965_v27 = vadd.f32 %v4435_v19, %v5617_v7  ;;  %v2956_v29 = vpop.f32.mrb[181].mxu1 }
 0xa83   :  { %v2957_v32 = vadd.f32 %v5617_v7, %v2956_v29  ;;  %v4436_v50 = vpop.f32.mrb[182].mxu1 }
 0xa84   :  { %v2968_v40 = vadd.f32 %v4436_v50, %v5617_v7  ;;  %v2959_v33 = vpop.f32.mrb[183].mxu1  ;;  %v3049_v28 = vmax.f32 %v2965_v27, 0.0 }
 0xa85   :  { %v2960_v35 = vadd.f32 %v5617_v7, %v2959_v33  ;;  %v3047_v36 = vmax.f32 %v2957_v32, 0.0 }
 0xa86   :  { %v3050_v38 = vmax.f32 %v2968_v40, 0.0 }
 0xa87   :  { %v3048_v12 = vmax.f32 %v2960_v35, 0.0 }
 0xa88   :  { %v5653_v34 = vpack.c.bf16 %v3050_v38, %v3049_v28 }
 0xa89   :  { %v5655_v1 = vpack.c.bf16 %v3048_v12, %v3047_v36 }
 0xa91   :  { %v4439_v41 = vpop.f32.mrb[184].mxu1 }
 0xa92   :  { %v2981_v20 = vadd.f32 %v4439_v41, %v5617_v7  ;;  %v2972_v42 = vpop.f32.mrb[185].mxu1 }
 0xa93   :  { %v2973_v43 = vadd.f32 %v5617_v7, %v2972_v42  ;;  %v4440_v44 = vpop.f32.mrb[186].mxu1  ;;  %v4648_v42 = vld [vmem:[#allocation11 + $0x8] sm:$0xff]  }
 0xa94   :  { %v2984_v26 = vadd.f32 %v4440_v44, %v5617_v7  ;;  %v2975_v4 = vpop.f32.mrb[187].mxu1  ;;  %v3053_v37 = vmax.f32 %v2981_v20, 0.0  ;;  %v4646_v20 = vld [vmem:[#allocation10 + $0xb8] sm:$0xff]   ;;  %v4651_v44 = vld [vmem:[#allocation11 + $0x20] sm:$0xff]  }
 0xa95   :  { %v2976_v45 = vadd.f32 %v5617_v7, %v2975_v4  ;;  %v3051_v31 = vmax.f32 %v2973_v43, 0.0  ;;  %v4650_v43 = vld [vmem:[#allocation11 + $0x18] sm:$0xff]  }
 0xa96   :  { %v3054_v46 = vmax.f32 %v2984_v26, 0.0 }
 0xa97   :  { %v3052_v56 = vmax.f32 %v2976_v45, 0.0 }
 0xa98   :  { %v3076_v47 = vpack.c.bf16 %v3054_v46, %v3053_v37 }
 0xa99   :  { %v3075_v5 = vpack.c.bf16 %v3052_v56, %v3051_v31 }
 0xa9b   :  { %4085 = vmatprep.subr.bf16.mxu0 %v3075_v5 }
 0xa9c   :  { %4086 = vmatpush3.bf16.msra.mxu0 %v5626_v63 }
 0xa9d   :  { %4087 = vmatprep.subr.bf16.mxu0 %v3076_v47 }
 0xaa0   :  { %4088 = vmatpush3.bf16.msra.mxu0 %v5624_v52 }
 0xaa1   :  { %v4443_v9 = vpop.f32.mrb[188].mxu1 }
 0xaa2   :  { %v2997_v58 = vadd.f32 %v4443_v9, %v5617_v7  ;;  %v2988_v57 = vpop.f32.mrb[189].mxu1  ;;  %v4652_v9 = vld [vmem:[#allocation11 + $0x28] sm:$0xff]  }
 0xaa3   :  { %v2989_v59 = vadd.f32 %v5617_v7, %v2988_v57  ;;  %v4444_v49 = vpop.f32.mrb[190].mxu1  ;;  %v4654_v57 = vld [vmem:[#allocation11 + $0x38] sm:$0xff]  }
 0xaa4   :  { %v3000_v11 = vadd.f32 %v4444_v49, %v5617_v7  ;;  %v2991_v3 = vpop.f32.mrb[191].mxu1  ;;  %v3057_v54 = vmax.f32 %v2997_v58, 0.0  ;;  %v4653_v58 = vld [vmem:[#allocation11 + $0x30] sm:$0xff]   ;;  %v3533_v49 = vld [vmem:[%s5729_s9] ss:$0 sm:$0xff]  ;;  %s4923_s9 = smov [#allocation13]  }
 0xaa5   :  { %v2992_v61 = vadd.f32 %v5617_v7, %v2991_v3  ;;  %v3055_v60 = vmax.f32 %v2989_v59, 0.0 }
 0xaa6   :  { %v3058_v8 = vmax.f32 %v3000_v11, 0.0 }
 0xaa7   :  { %v3056_v13 = vmax.f32 %v2992_v61, 0.0 }
 0xaa8   :  { %v3078_v63 = vpack.c.bf16 %v3058_v8, %v3057_v54 }
 0xaa9   :  { %v3077_v18 = vpack.c.bf16 %v3056_v13, %v3055_v60 }
 0xaab   :  { %4089 = vmatprep.subr.bf16.mxu0 %v3077_v18 }
 0xaac   :  { %4090 = vmatpush3.bf16.msra.mxu0 %v5638_v17 }
 0xaad   :  { %4091 = vmatprep.subr.bf16.mxu0 %v3078_v63 }
 0xab0   :  { %4092 = vmatpush3.bf16.msra.mxu0 %v5636_v0 }
 0xab1   :  { %v4447_v52 = vpop.f32.mrb[192].mxu1 }
 0xab2   :  { %v3013_v62 = vadd.f32 %v4447_v52, %v5617_v7  ;;  %v3004_v23 = vpop.f32.mrb[193].mxu1 }
 0xab3   :  { %v3005_v22 = vadd.f32 %v5617_v7, %v3004_v23  ;;  %v4448_v24 = vpop.f32.mrb[194].mxu1 }
 0xab4   :  { %v3016_v39 = vadd.f32 %v4448_v24, %v5617_v7  ;;  %v3007_v25 = vpop.f32.mrb[195].mxu1  ;;  %v3061_v21 = vmax.f32 %v3013_v62, 0.0 }
 0xab5   :  { %v3008_v48 = vadd.f32 %v5617_v7, %v3007_v25  ;;  %v3059_v53 = vmax.f32 %v3005_v22, 0.0 }
 0xab6   :  { %v3062_v15 = vmax.f32 %v3016_v39, 0.0 }
 0xab7   :  { %v3060_v6 = vmax.f32 %v3008_v48, 0.0 }
 0xab8   :  { %v3080_v17 = vpack.c.bf16 %v3062_v15, %v3061_v21 }
 0xab9   :  { %v3079_v19 = vpack.c.bf16 %v3060_v6, %v3059_v53 }
 0xabb   :  { %4093 = vmatprep.subr.bf16.mxu0 %v3079_v19 }
 0xabc   :  { %4094 = vmatpush3.bf16.msra.mxu0 %v5647_v2 }
 0xabd   :  { %4095 = vmatprep.subr.bf16.mxu0 %v3080_v17 }
 0xac0   :  { %4096 = vmatpush3.bf16.msra.mxu0 %v5645_v51  ;;  %v4745_v51 = vld [vmem:[%s5726_s6] ss:$8 sps:$4 sm:$0xff]  }
 0xac1   :  { %v4451_v0 = vpop.f32.mrb[196].mxu1 }
 0xac2   :  { %v3029_v27 = vadd.f32 %v4451_v0, %v5617_v7  ;;  %v3020_v29 = vpop.f32.mrb[197].mxu1 }
 0xac3   :  { %v3021_v32 = vadd.f32 %v5617_v7, %v3020_v29  ;;  %v4452_v50 = vpop.f32.mrb[198].mxu1 }
 0xac4   :  { %v3032_v40 = vadd.f32 %v4452_v50, %v5617_v7  ;;  %v3023_v33 = vpop.f32.mrb[199].mxu1  ;;  %v3065_v28 = vmax.f32 %v3029_v27, 0.0 }
 0xac5   :  { %v3024_v35 = vadd.f32 %v5617_v7, %v3023_v33  ;;  %v3063_v36 = vmax.f32 %v3021_v32, 0.0  ;;  %v4645_v7 = vld [vmem:[#allocation10 + $0xb0] sm:$0xff]  }
 0xac6   :  { %v3066_v38 = vmax.f32 %v3032_v40, 0.0  ;;  %4466 = vmatpush3.bf16.msra.mxu1 %v4645_v7 }
 0xac7   :  { %v3064_v12 = vmax.f32 %v3024_v35, 0.0  ;;  %4467 = vmatprep.subr.bf16.mxu1 %v4921_v10 }
 0xac8   :  { %v3082_v2 = vpack.c.bf16 %v3066_v38, %v3065_v28 }
 0xac9   :  { %v3081_v41 = vpack.c.bf16 %v3064_v12, %v3063_v36 }
 0xaca   :  { %4468 = vmatpush3.bf16.msra.mxu1 %v4646_v20 }
 0xacb   :  { %4097 = vmatprep.subr.bf16.mxu0 %v3081_v41 }
 0xacc   :  { %4098 = vmatpush3.bf16.msra.mxu0 %v5655_v1  ;;  %v4647_v1 = vld [vmem:[#allocation11] sm:$0xff]  }
 0xacd   :  { %4099 = vmatprep.subr.bf16.mxu0 %v3082_v2 }
 0xad0   :  { %4100 = vmatpush3.bf16.msra.mxu0 %v5653_v34  ;;  %v4649_v34 = vld [vmem:[#allocation11 + $0x10] sm:$0xff]  }
 0xad1   :  { %4473 = vmatprep.subr.bf16.mxu0 %v4921_v10 }
 0xad3   :  { %3116 = vmatmul.mubr.bf16.vlgmr.msra.gmra.mrb[200].mxu0 %v4745_v51 }
 0xad4   :  { %4489 = vmatprep.mubr.msk.bf16.mxu0 %vm4922_vm0, %v4921_v10  ;;  %4474 = vmatpush3.bf16.msra.mxu0 %v4647_v1 }
 0xad5   :  { %4475 = vmatprep.subr.bf16.mxu0 %v4921_v10 }
 0xad8   :  { %4476 = vmatpush3.bf16.msra.mxu0 %v4648_v42 }
 0xad9   :  { %4477 = vmatprep.subr.bf16.mxu0 %v4921_v10 }
 0xadc   :  { %4478 = vmatpush3.bf16.msra.mxu0 %v4649_v34 }
 0xadd   :  { %4479 = vmatprep.subr.bf16.mxu0 %v4921_v10 }
 0xae0   :  { %4480 = vmatpush3.bf16.msra.mxu0 %v4650_v43 }
 0xae1   :  { %4481 = vmatprep.subr.bf16.mxu0 %v4921_v10 }
 0xae4   :  { %4482 = vmatpush3.bf16.msra.mxu0 %v4651_v44 }
 0xae5   :  { %4483 = vmatprep.subr.bf16.mxu0 %v4921_v10 }
 0xae8   :  { %4484 = vmatpush3.bf16.msra.mxu0 %v4652_v9 }
 0xae9   :  { %4485 = vmatprep.subr.bf16.mxu0 %v4921_v10 }
 0xaec   :  { %4486 = vmatpush3.bf16.msra.mxu0 %v4653_v58 }
 0xaed   :  { %4487 = vmatprep.subr.bf16.mxu0 %v4921_v10  ;;  %v3534_v10 = vld [vmem:[%s5731_s11] ss:$0 sm:$0xff]  ;;  %s3386_s11 = sshll.u32 %s4923_s9, 4  ;;  %s3387_s11 = int_to_ptr.vmem [resolvable:$true] %s3386_s11 }
 0xaee   :  { %s4878_s1 = scalar_lea.vmem %s3387_s11, 256  ;;  %p4883_p7 = scmp.lt.s32.totalorder %s3387_s11, %s3387_s11 }
 0xaef   :  { %p4879_p6 = scmp.ne.s32.totalorder %s3387_s11, %s4878_s1  ;;  %p4884_p8 = scmp.lt.s32.totalorder %s4878_s1, %s4878_s1 }
 0xaf0   :  { %4488 = vmatpush3.bf16.msra.mxu0 %v4654_v57 }
 0xaf1   :  { %p4885_p9 = por %p4884_p8, %p4883_p7 }
 0xaf3   :  { %p4886_p10 = pnand %p4885_p9, %p4879_p6 }
 0xba6   :  { %v4101_v26 = vpop.f32.mrb[200].mxu0 }
 0xba7   :  { %v4102_v4 = vpop.f32.mrb[201].mxu0 }
 0xba8   :  { %v4103_v45 = vadd.f32 %v4102_v4, %v4101_v26  ;;  %v4104_v37 = vpop.f32.mrb[202].mxu0 }
 0xba9   :  { %v4105_v46 = vpop.f32.mrb[203].mxu0 }
 0xbaa   :  { %v4106_v31 = vadd.f32 %v4105_v46, %v4104_v37  ;;  %v3124_v56 = vmul.f32 %v4103_v45, %v5343_v14 }
 0xbac   :  { %v3125_v47 = vmul.f32 %v4106_v31, %v5351_v16 }
 0xbae   :  { %v3126_v5 = vpack.c.bf16 %v3125_v47, %v3124_v56 }
 0xbb0   :  { %4470 = vmatmul.mubr.bf16.vlgmr.msra.gmra.mrb[200].mxu1 %v3126_v5 }
 0xc83   :  { %v3226_v59 = vpop.f32.mrb[200].mxu1 }
 0xc84   :  { %v3233_v14 = vadd.f32 %v3226_v59, %v5537_v55  ;;  %v4471_v16 = vpop.f32.mrb[201].mxu1 }
 0xc85   :  { %v3229_v11 = vpop.f32.mrb[202].mxu1 }
 0xc86   :  { %v3242_v3 = vadd.f32 %v3533_v49, %v3233_v14  ;;  %v3234_v61 = vadd.f32 %v3229_v11, %v5540_v30  ;;  %v4472_v54 = vpop.f32.mrb[203].mxu1 }
 0xc88   :  { %v3243_v8 = vadd.f32 %v3533_v49, %v3234_v61  ;;  %v3244_v60 = vmax.f32 %v3242_v3, 0.0 }
 0xc8a   :  { %v3245_v13 = vmax.f32 %v3243_v8, 0.0 }
 0xc8c   :  { %v3246_v63 = vpack.c.bf16 %v3245_v13, %v3244_v60 }
 0xc8e   :  { %4490 = vmatmul.mubr.bf16.vlgmr.msra.gmra.mrb[204].mxu0 %v3246_v63 }
 0xd61   :  { %v3352_v18 = vpop.f32.mrb[204].mxu0 }
 0xd62   :  { %v3353_v52 = vadd.f32 %v3534_v10, %v3352_v18  ;;  %v4491_v62 = vpop.f32.mrb[205].mxu0 }
 0xd63   :  { %v3355_v23 = vpop.f32.mrb[206].mxu0 }
 0xd64   :  { %3359 = vmax.xlane.f32.xlu1 %v3353_v52  ;;  %v4492_v55 = vpop.f32.mrb[207].mxu0  ;;  %v3356_v22 = vadd.f32 %v3534_v10, %v3355_v23 }
 0xd68   :  { %3361 = vmax.xlane.f32.xlu1 %v3356_v22 }
 0xdf1   :  { %v3360_v24 = vpop.xlane.xlu1 %3359 }
 0xdf2   :  { %v3363_v30 = vsub.f32 %v3353_v52, %v3360_v24 }
 0xdf4   :  { %v3365_v39 = vmul.f32 1.442695, %v3363_v30 }
 0xdf5   :  { %v3362_v25 = vpop.xlane.xlu1 %3361 }
 0xdf6   :  { %4671 = vpow2.f32 %v3365_v39  ;;  %v3364_v48 = vsub.f32 %v3356_v22, %v3362_v25 }
 0xdf8   :  { %v3367_v21 = vmul.f32 1.442695, %v3364_v48 }
 0xdfa   :  { %4673 = vpow2.f32 %v3367_v21 }
 0xe00   :  { %v4672_v15 = vpop.eup %4671 }
 0xe01   :  { %3369 = vadd.xlane.f32.xlu0 %v4672_v15 }
 0xe04   :  { %v4674_v53 = vpop.eup %4673 }
 0xe05   :  { %3371 = vadd.xlane.f32.xlu1 %v4674_v53 }
 0xe8e   :  { %v3370_v6 = vpop.xlane.xlu0 %3369 }
 0xe8f   :  { %4675 = vlog2.f32 %v3370_v6 }
 0xe92   :  { %v3372_v17 = vpop.xlane.xlu1 %3371 }
 0xe93   :  { %4677 = vlog2.f32 %v3372_v17 }
 0xe99   :  { %v4676_v19 = vpop.eup %4675 }
 0xe9a   :  { %v3374_v0 = vmul.f32 0.6931472, %v4676_v19 }
 0xe9c   :  { %v3377_v27 = vsub.f32 %v3363_v30, %v3374_v0 }
 0xe9d   :  { %v4678_v29 = vpop.eup %4677 }
 0xe9e   :  { %3379 = vst [vmem:[#allocation13] sm:$0xff] %v3377_v27  ;;  %v3376_v32 = vmul.f32 0.6931472, %v4678_v29 }
 0xea0   :  { %v3378_v50 = vsub.f32 %v3364_v48, %v3376_v32 }
 0xea2   :  { %3380 = vst [vmem:[#allocation13 + $0x8] sm:$0xff] %v3378_v50 }
 0xea3   :  { %4889 = shalt.err (!%p4886_p10)
}
 0xea4   :  { %s4890_s15 = scalar_lea.hbm %s5732_s12, 256 }
 0xea5   :  { %p4891_p11 = scmp.ne.s32.totalorder %s5732_s12, %s4890_s15  ;;  %p4894_p12 = scmp.lt.u32.totalorder %s4890_s15, %s5732_s12 }
 0xea7   :  { %p4896_p13 = pnand %p4894_p12, %p4891_p11 }
 0xea9   :  { %4899 = shalt.err (!%p4896_p13)
}
 0xeaa   :  { %3392 = dma.vmem_to_hbm [thread:$0]  %s3387_s11, 256, %s5732_s12, [#allocation4], %s4915_s4, %s4915_s4, %s4916_s18  }
 0xeab   :  { %4908 = dma.done.wait [#allocation4], 256  }
 0xeac   :  { %4909 = vsyncadd [#allocation4], 4294967040 }
 0xead   :  { %3396 = vsyncpa [#allocation3], 1 }
 0xeae   :  { %3397 = vsyncpa [#allocation6], 1 }
 0xeaf   :  { %3398 = vsyncpa [#allocation9], 1 }
 0xeb0   :  { %3399 = vsyncpa [#allocation12], 1 }
 0xeb1   :  { %3400 = vsyncpa [#allocation4], 1 }

</bundles_post_ra>
